<compile_context>
chip_gen: v6e
topology: v6e:2x2x1
jax: 0.10.0
libtpu: 0.0.40
codegen_flags: <defaults>
</compile_context>

<pallas_src>
import numpy as np
import jax
import jax.numpy as jnp
from jax.experimental import pallas as pl
from jax.experimental.pallas import tpu as pltpu


# ----------------------------------------------------------------------------
# Fused forward kernel: one grid step == one image.
# ----------------------------------------------------------------------------
def _encoder_kernel(p1t_ref, w1t_ref, b1_ref, s_ref, w2_ref, b2_ref,
                    wfc_ref, bfc_ref, o_ref, sy_ref, y2_ref):
    f32 = jnp.float32
    bf16 = jnp.bfloat16

    n_taps = w2_ref.shape[0]      # 25 (5x5 kernel taps)
    c2 = wfc_ref.shape[0]         # 16 conv2 output channels
    ppad = wfc_ref.shape[1]       # conv2 spatial positions padded to 128

    # conv1 + ReLU, transposed/lane-dense: (16,75) @ (75, H1*W1) -> (16, H1*W1)
    y1t = jnp.dot(w1t_ref[...], p1t_ref[0].astype(bf16),
                  preferred_element_type=f32)
    y1t = jnp.maximum(y1t + b1_ref[...], 0.0)

    # In-kernel im2col for conv2: gather conv1 activations for all 25 taps with
    # a single 0/1-selection matmul.  sy[:, t*ppad + p] = y1 at the tap-t
    # shifted, stride-2 position of conv2 output p (exact copy: 0/1 weights).
    sy_ref[...] = jnp.dot(y1t.astype(bf16), s_ref[...],
                          preferred_element_type=f32)

    # conv2 + ReLU: accumulate the 25 taps, (16,16) @ (16, ppad) each.
    # Tap slices start at multiples of 128 lanes -> vreg-aligned loads.
    acc = jnp.zeros((c2, ppad), f32)
    for t in range(n_taps):
        chunk = sy_ref[:, t * ppad:(t + 1) * ppad].astype(bf16)
        acc = acc + jnp.dot(w2_ref[t], chunk, preferred_element_type=f32)
    y2_ref[...] = jnp.maximum(acc + b2_ref[...], 0.0)

    # AdaptiveAvgPool2d((5,7)) + flatten + FC folded into wfc_ref at init time:
    # out = relu( sum_c y2[c, :] @ wfc_ref[c] + bfc ).  Padded spatial lanes
    # (p >= 49) have zero FC weight, so their junk values contribute nothing.
    out = bfc_ref[...]
    for c in range(c2):
        out = out + jnp.dot(y2_ref[c:c + 1, :].astype(bf16), wfc_ref[c],
                            preferred_element_type=f32)
    o_ref[0] = jnp.maximum(out, 0.0)


# ----------------------------------------------------------------------------
# Plain-JAX glue: im2col for conv1 in transposed layout (B, k*k*C, Ho*Wo).
# ----------------------------------------------------------------------------
def _im2col_t(x_nhwc, k=5, s=2):
    B, H, W, C = x_nhwc.shape
    Ho = (H - k) // s + 1
    Wo = (W - k) // s + 1
    cols = []
    for kh in range(k):
        for kw in range(k):
            cols.append(x_nhwc[:, kh:kh + s * Ho:s, kw:kw + s * Wo:s, :])  # (B,Ho,Wo,C)
    p = jnp.stack(cols, axis=1)                       # (B, k*k, Ho, Wo, C)
    p = jnp.transpose(p, (0, 1, 4, 2, 3))             # (B, k*k, C, Ho, Wo)
    return p.reshape(B, k * k * C, Ho * Wo)


@jax.jit
def cnn_encoder_forward(obs_nchw, params):
    """obs_nchw: (B, in_channels, H, W) float32 -> (B, 256) float32."""
    x = jnp.transpose(obs_nchw, (0, 2, 3, 1))         # NCHW -> NHWC
    B = x.shape[0]
    p1t = _im2col_t(x, k=5, s=2)                      # (B, 75, H1*W1) f32
    KP, Q1 = p1t.shape[1], p1t.shape[2]

    C1 = params["w1t"].shape[0]                       # conv1 out channels (16)
    n_taps, C2, _ = params["w2t"].shape               # 25 taps, conv2 out channels
    ppad = params["wfc_s"].shape[1]                   # padded conv2 spatial (128)
    n_out = params["wfc_s"].shape[2]                  # 256

    out = pl.pallas_call(
        _encoder_kernel,
        out_shape=jax.ShapeDtypeStruct((B, 1, n_out), jnp.float32),
        grid=(B,),
        in_specs=[
            pl.BlockSpec((1, KP, Q1), lambda b: (b, 0, 0)),          # im2col'd image
            pl.BlockSpec((C1, KP), lambda b: (0, 0)),                # conv1 weight
            pl.BlockSpec((C1, 1), lambda b: (0, 0)),                 # conv1 bias
            pl.BlockSpec((Q1, n_taps * ppad), lambda b: (0, 0)),     # conv2 im2col selection
            pl.BlockSpec((n_taps, C2, C1), lambda b: (0, 0, 0)),     # conv2 per-tap weights
            pl.BlockSpec((C2, 1), lambda b: (0, 0)),                 # conv2 bias
            pl.BlockSpec((C2, ppad, n_out), lambda b: (0, 0, 0)),    # pool-folded FC weight
            pl.BlockSpec((1, n_out), lambda b: (0, 0)),              # FC bias
        ],
        out_specs=pl.BlockSpec((1, 1, n_out), lambda b: (b, 0, 0)),
        scratch_shapes=[
            pltpu.VMEM((C1, n_taps * ppad), jnp.float32),            # gathered taps
            pltpu.VMEM((C2, ppad), jnp.float32),                     # conv2 output
        ],
        compiler_params=pltpu.CompilerParams(dimension_semantics=("parallel",)),
    )(p1t, params["w1t"], params["b1"], params["s_t"], params["w2t"],
      params["b2"], params["wfc_s"], params["bfc"])

    return out.reshape(B, n_out)


# ----------------------------------------------------------------------------
# Init-time weight packing (host-side, numpy).
# ----------------------------------------------------------------------------
def _adaptive_pool_matrix(in_size, out_size):
    """Averaging matrix with exact torch.nn.AdaptiveAvgPool2d window semantics."""
    m = np.zeros((out_size, in_size), dtype=np.float32)
    for i in range(out_size):
        start = (i * in_size) // out_size
        end = -((-(i + 1) * in_size) // out_size)     # ceil((i+1)*in/out)
        m[i, start:end] = 1.0 / (end - start)
    return m


def _selection_matrix(H1, W1, H2, W2, k, s, ppad):
    """0/1 matrix: column t*ppad+p selects conv1 position (s*oh+kh, s*ow+kw)."""
    S = np.zeros((H1 * W1, k * k * ppad), dtype=np.float32)
    for kh in range(k):
        for kw in range(k):
            t = kh * k + kw
            for oh in range(H2):
                for ow in range(W2):
                    q = (s * oh + kh) * W1 + (s * ow + kw)
                    S[q, t * ppad + oh * W2 + ow] = 1.0
    return S


def init_params(key, in_channels=3, H=40, W=40, pool_hw=(5, 7), n_out=256):
    k, s = 5, 2
    H1, W1 = (H - k) // s + 1, (W - k) // s + 1
    H2, W2 = (H1 - k) // s + 1, (W1 - k) // s + 1
    ph, pw = pool_hw
    ppad = ((H2 * W2 + 127) // 128) * 128             # per-tap lane padding

    k1, k2, k3, k4, k5, k6 = jax.random.split(key, 6)
    raw = {
        "w1": jax.random.normal(k1, (16, in_channels, 5, 5), jnp.float32) * 0.10,
        "b1": jax.random.normal(k2, (16,), jnp.float32) * 0.10,
        "w2": jax.random.normal(k3, (16, 16, 5, 5), jnp.float32) * 0.05,
        "b2": jax.random.normal(k4, (16,), jnp.float32) * 0.05,
        "wfc": jax.random.normal(k5, (n_out, 16 * ph * pw), jnp.float32) * 0.05,
        "bfc": jax.random.normal(k6, (n_out,), jnp.float32) * 0.05,
    }

    w1 = np.asarray(raw["w1"])
    w2 = np.asarray(raw["w2"])
    wfc = np.asarray(raw["wfc"])

    # conv weights in (tap-major, in-channel-fastest) matmul layout.
    w1t = w1.transpose(0, 2, 3, 1).reshape(16, k * k * in_channels)   # (16, 75)
    w2t = w2.transpose(2, 3, 0, 1).reshape(k * k, 16, 16)             # (25, oc, ic)

    # conv2 im2col as a matmul.
    s_t = _selection_matrix(H1, W1, H2, W2, k, s, ppad)               # (H1*W1, 25*ppad)

    # Fold AdaptiveAvgPool2d + PyTorch NCHW flatten into the FC weight.
    Ph = _adaptive_pool_matrix(H2, ph)                                # (5, H2)
    Pw = _adaptive_pool_matrix(W2, pw)                                # (7, W2)
    wfc4 = wfc.reshape(n_out, 16, ph, pw)
    weff = np.einsum("ah,bw,ocab->chwo", Ph, Pw, wfc4)                # (16, H2, W2, 256)
    wfc_s = np.zeros((16, ppad, n_out), dtype=np.float32)
    wfc_s[:, :H2 * W2, :] = weff.reshape(16, H2 * W2, n_out)

    params = {
        "w1t": jnp.asarray(w1t, jnp.bfloat16),
        "b1": jnp.asarray(raw["b1"]).reshape(16, 1),
        "s_t": jnp.asarray(s_t, jnp.bfloat16),        # 0/1 -> exact in bf16
        "w2t": jnp.asarray(w2t, jnp.bfloat16),
        "b2": jnp.asarray(raw["b2"]).reshape(16, 1),
        "wfc_s": jnp.asarray(wfc_s, jnp.bfloat16),
        "bfc": jnp.asarray(raw["bfc"]).reshape(1, n_out),
    }
    return params, raw


# ----------------------------------------------------------------------------
# Pure-JAX f32 reference (HIGHEST precision) for correctness.
# ----------------------------------------------------------------------------
def reference_forward(obs, raw):
    dn = ("NCHW", "OIHW", "NCHW")
    x = jax.lax.conv_general_dilated(
        obs, raw["w1"], (2, 2), "VALID", dimension_numbers=dn,
        precision=jax.lax.Precision.HIGHEST)
    x = jax.nn.relu(x + raw["b1"][None, :, None, None])
    x = jax.lax.conv_general_dilated(
        x, raw["w2"], (2, 2), "VALID", dimension_numbers=dn,
        precision=jax.lax.Precision.HIGHEST)
    x = jax.nn.relu(x + raw["b2"][None, :, None, None])
    B, C, H2, W2 = x.shape
    Ph = jnp.asarray(_adaptive_pool_matrix(H2, 5))
    Pw = jnp.asarray(_adaptive_pool_matrix(W2, 7))
    x = jnp.einsum("oh,bchw,pw->bcop", Ph, x, Pw,
                   precision=jax.lax.Precision.HIGHEST)
    x = x.reshape(B, -1)
    y = jnp.dot(x, raw["wfc"].T, precision=jax.lax.Precision.HIGHEST) + raw["bfc"]
    return jax.nn.relu(y)


if __name__ == "__main__":
    key = jax.random.PRNGKey(0)
    kx, kp = jax.random.split(key)

    # B=2, in_channels=3, 40x40 -> conv1: 18x18, conv2: 7x7, pool -> 5x7, fc -> 256
    obs = jax.random.normal(kx, (2, 3, 40, 40), jnp.float32)
    params, raw = init_params(kp, in_channels=3, H=40, W=40)

    out = cnn_encoder_forward(obs, params)
    out = jax.block_until_ready(out)
    assert out.shape == (2, 256)

    ref = reference_forward(obs, raw)
    # bf16 operands (f32 accumulation) vs f32/HIGHEST reference -> relaxed tolerance.
    np.testing.assert_allclose(np.asarray(out), np.asarray(ref), rtol=2e-2, atol=2e-2)

    print("KERNEL_OK")
</pallas_src>

<mosaic_0001>
module attributes {stable_mosaic.version = 11 : i64} {
  func.func @_encoder_kernel(%arg0: i32, %arg1: memref<1x75x324xf32, #tpu.memory_space<vmem>>, %arg2: memref<16x75xbf16, #tpu.memory_space<vmem>>, %arg3: memref<16x1xf32, #tpu.memory_space<vmem>>, %arg4: memref<324x3200xbf16, #tpu.memory_space<vmem>>, %arg5: memref<25x16x16xbf16, #tpu.memory_space<vmem>>, %arg6: memref<16x1xf32, #tpu.memory_space<vmem>>, %arg7: memref<16x128x256xbf16, #tpu.memory_space<vmem>>, %arg8: memref<1x256xf32, #tpu.memory_space<vmem>>, %arg9: memref<1x1x256xf32, #tpu.memory_space<vmem>>, %arg10: memref<16x3200xf32, #tpu.memory_space<vmem>>, %arg11: memref<16x128xf32, #tpu.memory_space<vmem>>) attributes {dimension_semantics = [#tpu.dimension_semantics<parallel>], iteration_bounds = array<i64: 2>, scalar_prefetch = 0 : i64, scratch_operands = 2 : i64, tpu.core_type = #tpu.core_type<tc>, window_params = [{transform_indices = @transform_0, window_bounds = array<i64: 1, 75, 324>}, {pipeline_mode = #tpu.pipeline_mode<synchronous>, transform_indices = @transform_1, window_bounds = array<i64: 16, 75>}, {pipeline_mode = #tpu.pipeline_mode<synchronous>, transform_indices = @transform_2, window_bounds = array<i64: 16, 1>}, {pipeline_mode = #tpu.pipeline_mode<synchronous>, transform_indices = @transform_3, window_bounds = array<i64: 324, 3200>}, {pipeline_mode = #tpu.pipeline_mode<synchronous>, transform_indices = @transform_4, window_bounds = array<i64: 25, 16, 16>}, {pipeline_mode = #tpu.pipeline_mode<synchronous>, transform_indices = @transform_5, window_bounds = array<i64: 16, 1>}, {pipeline_mode = #tpu.pipeline_mode<synchronous>, transform_indices = @transform_6, window_bounds = array<i64: 16, 128, 256>}, {pipeline_mode = #tpu.pipeline_mode<synchronous>, transform_indices = @transform_7, window_bounds = array<i64: 1, 256>}, {transform_indices = @transform_8, window_bounds = array<i64: 1, 1, 256>}]} {
    %c0 = arith.constant 0 : index
    %c0_0 = arith.constant 0 : index
    %0 = vector.load %arg2[%c0, %c0_0] : memref<16x75xbf16, #tpu.memory_space<vmem>>, vector<16x75xbf16>
    %c0_1 = arith.constant 0 : index
    %c0_2 = arith.constant 0 : index
    %c0_3 = arith.constant 0 : index
    %1 = vector.load %arg1[%c0_1, %c0_2, %c0_3] : memref<1x75x324xf32, #tpu.memory_space<vmem>>, vector<1x75x324xf32>
    %2 = vector.shape_cast %1 : vector<1x75x324xf32> to vector<75x324xf32>
    %3 = arith.truncf %2 : vector<75x324xf32> to vector<75x324xbf16>
    %cst = arith.constant dense<0.000000e+00> : vector<16x324xf32>
    %4 = tpu.matmul %0, %3, %cst {dimension_numbers = #tpu.dot_dimension_numbers<[1], [0], [0], [1], [0, 0, 1, 1], [], []>} : vector<16x75xbf16>, vector<75x324xbf16>, vector<16x324xf32> -> vector<16x324xf32>
    %c0_4 = arith.constant 0 : index
    %c0_5 = arith.constant 0 : index
    %5 = vector.load %arg3[%c0_4, %c0_5] : memref<16x1xf32, #tpu.memory_space<vmem>>, vector<16x1xf32>
    %6 = vector.broadcast %5 : vector<16x1xf32> to vector<16x324xf32>
    %7 = arith.addf %4, %6 : vector<16x324xf32>
    %cst_6 = arith.constant 0.000000e+00 : f32
    %8 = vector.broadcast %cst_6 : f32 to vector<16x324xf32>
    %9 = arith.maximumf %7, %8 : vector<16x324xf32>
    %10 = arith.truncf %9 : vector<16x324xf32> to vector<16x324xbf16>
    %c0_7 = arith.constant 0 : index
    %c0_8 = arith.constant 0 : index
    %11 = vector.load %arg4[%c0_7, %c0_8] : memref<324x3200xbf16, #tpu.memory_space<vmem>>, vector<324x3200xbf16>
    %cst_9 = arith.constant dense<0.000000e+00> : vector<16x3200xf32>
    %12 = tpu.matmul %10, %11, %cst_9 {dimension_numbers = #tpu.dot_dimension_numbers<[1], [0], [0], [1], [0, 0, 1, 1], [], []>} : vector<16x324xbf16>, vector<324x3200xbf16>, vector<16x3200xf32> -> vector<16x3200xf32>
    %c0_10 = arith.constant 0 : index
    %c0_11 = arith.constant 0 : index
    %13 = vector.load %arg10[%c0_10, %c0_11] : memref<16x3200xf32, #tpu.memory_space<vmem>>, vector<16x3200xf32>
    tpu.vector_store %arg10[%c0_10, %c0_11], %12 {strides = array<i32>} : memref<16x3200xf32, #tpu.memory_space<vmem>>, vector<16x3200xf32>,
    %cst_12 = arith.constant 0.000000e+00 : f32
    %14 = vector.broadcast %cst_12 : f32 to vector<16x128xf32>
    %c0_13 = arith.constant 0 : index
    %c0_14 = arith.constant 0 : index
    %15 = vector.load %arg10[%c0_13, %c0_14] : memref<16x3200xf32, #tpu.memory_space<vmem>>, vector<16x128xf32>
    %16 = arith.truncf %15 : vector<16x128xf32> to vector<16x128xbf16>
    %c0_15 = arith.constant 0 : index
    %c0_16 = arith.constant 0 : index
    %c0_17 = arith.constant 0 : index
    %17 = vector.load %arg5[%c0_15, %c0_16, %c0_17] : memref<25x16x16xbf16, #tpu.memory_space<vmem>>, vector<1x16x16xbf16>
    %18 = vector.shape_cast %17 : vector<1x16x16xbf16> to vector<16x16xbf16>
    %cst_18 = arith.constant dense<0.000000e+00> : vector<16x128xf32>
    %19 = tpu.matmul %18, %16, %cst_18 {dimension_numbers = #tpu.dot_dimension_numbers<[1], [0], [0], [1], [0, 0, 1, 1], [], []>} : vector<16x16xbf16>, vector<16x128xbf16>, vector<16x128xf32> -> vector<16x128xf32>
    %20 = arith.addf %14, %19 : vector<16x128xf32>
    %c0_19 = arith.constant 0 : index
    %c128 = arith.constant 128 : index
    %21 = vector.load %arg10[%c0_19, %c128] : memref<16x3200xf32, #tpu.memory_space<vmem>>, vector<16x128xf32>
    %22 = arith.truncf %21 : vector<16x128xf32> to vector<16x128xbf16>
    %c1 = arith.constant 1 : index
    %c0_20 = arith.constant 0 : index
    %c0_21 = arith.constant 0 : index
    %23 = vector.load %arg5[%c1, %c0_20, %c0_21] : memref<25x16x16xbf16, #tpu.memory_space<vmem>>, vector<1x16x16xbf16>
    %24 = vector.shape_cast %23 : vector<1x16x16xbf16> to vector<16x16xbf16>
    %cst_22 = arith.constant dense<0.000000e+00> : vector<16x128xf32>
    %25 = tpu.matmul %24, %22, %cst_22 {dimension_numbers = #tpu.dot_dimension_numbers<[1], [0], [0], [1], [0, 0, 1, 1], [], []>} : vector<16x16xbf16>, vector<16x128xbf16>, vector<16x128xf32> -> vector<16x128xf32>
    %26 = arith.addf %20, %25 : vector<16x128xf32>
    %c0_23 = arith.constant 0 : index
    %c256 = arith.constant 256 : index
    %27 = vector.load %arg10[%c0_23, %c256] : memref<16x3200xf32, #tpu.memory_space<vmem>>, vector<16x128xf32>
    %28 = arith.truncf %27 : vector<16x128xf32> to vector<16x128xbf16>
    %c2 = arith.constant 2 : index
    %c0_24 = arith.constant 0 : index
    %c0_25 = arith.constant 0 : index
    %29 = vector.load %arg5[%c2, %c0_24, %c0_25] : memref<25x16x16xbf16, #tpu.memory_space<vmem>>, vector<1x16x16xbf16>
    %30 = vector.shape_cast %29 : vector<1x16x16xbf16> to vector<16x16xbf16>
    %cst_26 = arith.constant dense<0.000000e+00> : vector<16x128xf32>
    %31 = tpu.matmul %30, %28, %cst_26 {dimension_numbers = #tpu.dot_dimension_numbers<[1], [0], [0], [1], [0, 0, 1, 1], [], []>} : vector<16x16xbf16>, vector<16x128xbf16>, vector<16x128xf32> -> vector<16x128xf32>
    %32 = arith.addf %26, %31 : vector<16x128xf32>
    %c0_27 = arith.constant 0 : index
    %c384 = arith.constant 384 : index
    %33 = vector.load %arg10[%c0_27, %c384] : memref<16x3200xf32, #tpu.memory_space<vmem>>, vector<16x128xf32>
    %34 = arith.truncf %33 : vector<16x128xf32> to vector<16x128xbf16>
    %c3 = arith.constant 3 : index
    %c0_28 = arith.constant 0 : index
    %c0_29 = arith.constant 0 : index
    %35 = vector.load %arg5[%c3, %c0_28, %c0_29] : memref<25x16x16xbf16, #tpu.memory_space<vmem>>, vector<1x16x16xbf16>
    %36 = vector.shape_cast %35 : vector<1x16x16xbf16> to vector<16x16xbf16>
    %cst_30 = arith.constant dense<0.000000e+00> : vector<16x128xf32>
    %37 = tpu.matmul %36, %34, %cst_30 {dimension_numbers = #tpu.dot_dimension_numbers<[1], [0], [0], [1], [0, 0, 1, 1], [], []>} : vector<16x16xbf16>, vector<16x128xbf16>, vector<16x128xf32> -> vector<16x128xf32>
    %38 = arith.addf %32, %37 : vector<16x128xf32>
    %c0_31 = arith.constant 0 : index
    %c512 = arith.constant 512 : index
    %39 = vector.load %arg10[%c0_31, %c512] : memref<16x3200xf32, #tpu.memory_space<vmem>>, vector<16x128xf32>
    %40 = arith.truncf %39 : vector<16x128xf32> to vector<16x128xbf16>
    %c4 = arith.constant 4 : index
    %c0_32 = arith.constant 0 : index
    %c0_33 = arith.constant 0 : index
    %41 = vector.load %arg5[%c4, %c0_32, %c0_33] : memref<25x16x16xbf16, #tpu.memory_space<vmem>>, vector<1x16x16xbf16>
    %42 = vector.shape_cast %41 : vector<1x16x16xbf16> to vector<16x16xbf16>
    %cst_34 = arith.constant dense<0.000000e+00> : vector<16x128xf32>
    %43 = tpu.matmul %42, %40, %cst_34 {dimension_numbers = #tpu.dot_dimension_numbers<[1], [0], [0], [1], [0, 0, 1, 1], [], []>} : vector<16x16xbf16>, vector<16x128xbf16>, vector<16x128xf32> -> vector<16x128xf32>
    %44 = arith.addf %38, %43 : vector<16x128xf32>
    %c0_35 = arith.constant 0 : index
    %c640 = arith.constant 640 : index
    %45 = vector.load %arg10[%c0_35, %c640] : memref<16x3200xf32, #tpu.memory_space<vmem>>, vector<16x128xf32>
    %46 = arith.truncf %45 : vector<16x128xf32> to vector<16x128xbf16>
    %c5 = arith.constant 5 : index
    %c0_36 = arith.constant 0 : index
    %c0_37 = arith.constant 0 : index
    %47 = vector.load %arg5[%c5, %c0_36, %c0_37] : memref<25x16x16xbf16, #tpu.memory_space<vmem>>, vector<1x16x16xbf16>
    %48 = vector.shape_cast %47 : vector<1x16x16xbf16> to vector<16x16xbf16>
    %cst_38 = arith.constant dense<0.000000e+00> : vector<16x128xf32>
    %49 = tpu.matmul %48, %46, %cst_38 {dimension_numbers = #tpu.dot_dimension_numbers<[1], [0], [0], [1], [0, 0, 1, 1], [], []>} : vector<16x16xbf16>, vector<16x128xbf16>, vector<16x128xf32> -> vector<16x128xf32>
    %50 = arith.addf %44, %49 : vector<16x128xf32>
    %c0_39 = arith.constant 0 : index
    %c768 = arith.constant 768 : index
    %51 = vector.load %arg10[%c0_39, %c768] : memref<16x3200xf32, #tpu.memory_space<vmem>>, vector<16x128xf32>
    %52 = arith.truncf %51 : vector<16x128xf32> to vector<16x128xbf16>
    %c6 = arith.constant 6 : index
    %c0_40 = arith.constant 0 : index
    %c0_41 = arith.constant 0 : index
    %53 = vector.load %arg5[%c6, %c0_40, %c0_41] : memref<25x16x16xbf16, #tpu.memory_space<vmem>>, vector<1x16x16xbf16>
    %54 = vector.shape_cast %53 : vector<1x16x16xbf16> to vector<16x16xbf16>
    %cst_42 = arith.constant dense<0.000000e+00> : vector<16x128xf32>
    %55 = tpu.matmul %54, %52, %cst_42 {dimension_numbers = #tpu.dot_dimension_numbers<[1], [0], [0], [1], [0, 0, 1, 1], [], []>} : vector<16x16xbf16>, vector<16x128xbf16>, vector<16x128xf32> -> vector<16x128xf32>
    %56 = arith.addf %50, %55 : vector<16x128xf32>
    %c0_43 = arith.constant 0 : index
    %c896 = arith.constant 896 : index
    %57 = vector.load %arg10[%c0_43, %c896] : memref<16x3200xf32, #tpu.memory_space<vmem>>, vector<16x128xf32>
    %58 = arith.truncf %57 : vector<16x128xf32> to vector<16x128xbf16>
    %c7 = arith.constant 7 : index
    %c0_44 = arith.constant 0 : index
    %c0_45 = arith.constant 0 : index
    %59 = vector.load %arg5[%c7, %c0_44, %c0_45] : memref<25x16x16xbf16, #tpu.memory_space<vmem>>, vector<1x16x16xbf16>
    %60 = vector.shape_cast %59 : vector<1x16x16xbf16> to vector<16x16xbf16>
    %cst_46 = arith.constant dense<0.000000e+00> : vector<16x128xf32>
    %61 = tpu.matmul %60, %58, %cst_46 {dimension_numbers = #tpu.dot_dimension_numbers<[1], [0], [0], [1], [0, 0, 1, 1], [], []>} : vector<16x16xbf16>, vector<16x128xbf16>, vector<16x128xf32> -> vector<16x128xf32>
    %62 = arith.addf %56, %61 : vector<16x128xf32>
    %c0_47 = arith.constant 0 : index
    %c1024 = arith.constant 1024 : index
    %63 = vector.load %arg10[%c0_47, %c1024] : memref<16x3200xf32, #tpu.memory_space<vmem>>, vector<16x128xf32>
    %64 = arith.truncf %63 : vector<16x128xf32> to vector<16x128xbf16>
    %c8 = arith.constant 8 : index
    %c0_48 = arith.constant 0 : index
    %c0_49 = arith.constant 0 : index
    %65 = vector.load %arg5[%c8, %c0_48, %c0_49] : memref<25x16x16xbf16, #tpu.memory_space<vmem>>, vector<1x16x16xbf16>
    %66 = vector.shape_cast %65 : vector<1x16x16xbf16> to vector<16x16xbf16>
    %cst_50 = arith.constant dense<0.000000e+00> : vector<16x128xf32>
    %67 = tpu.matmul %66, %64, %cst_50 {dimension_numbers = #tpu.dot_dimension_numbers<[1], [0], [0], [1], [0, 0, 1, 1], [], []>} : vector<16x16xbf16>, vector<16x128xbf16>, vector<16x128xf32> -> vector<16x128xf32>
    %68 = arith.addf %62, %67 : vector<16x128xf32>
    %c0_51 = arith.constant 0 : index
    %c1152 = arith.constant 1152 : index
    %69 = vector.load %arg10[%c0_51, %c1152] : memref<16x3200xf32, #tpu.memory_space<vmem>>, vector<16x128xf32>
    %70 = arith.truncf %69 : vector<16x128xf32> to vector<16x128xbf16>
    %c9 = arith.constant 9 : index
    %c0_52 = arith.constant 0 : index
    %c0_53 = arith.constant 0 : index
    %71 = vector.load %arg5[%c9, %c0_52, %c0_53] : memref<25x16x16xbf16, #tpu.memory_space<vmem>>, vector<1x16x16xbf16>
    %72 = vector.shape_cast %71 : vector<1x16x16xbf16> to vector<16x16xbf16>
    %cst_54 = arith.constant dense<0.000000e+00> : vector<16x128xf32>
    %73 = tpu.matmul %72, %70, %cst_54 {dimension_numbers = #tpu.dot_dimension_numbers<[1], [0], [0], [1], [0, 0, 1, 1], [], []>} : vector<16x16xbf16>, vector<16x128xbf16>, vector<16x128xf32> -> vector<16x128xf32>
    %74 = arith.addf %68, %73 : vector<16x128xf32>
    %c0_55 = arith.constant 0 : index
    %c1280 = arith.constant 1280 : index
    %75 = vector.load %arg10[%c0_55, %c1280] : memref<16x3200xf32, #tpu.memory_space<vmem>>, vector<16x128xf32>
    %76 = arith.truncf %75 : vector<16x128xf32> to vector<16x128xbf16>
    %c10 = arith.constant 10 : index
    %c0_56 = arith.constant 0 : index
    %c0_57 = arith.constant 0 : index
    %77 = vector.load %arg5[%c10, %c0_56, %c0_57] : memref<25x16x16xbf16, #tpu.memory_space<vmem>>, vector<1x16x16xbf16>
    %78 = vector.shape_cast %77 : vector<1x16x16xbf16> to vector<16x16xbf16>
    %cst_58 = arith.constant dense<0.000000e+00> : vector<16x128xf32>
    %79 = tpu.matmul %78, %76, %cst_58 {dimension_numbers = #tpu.dot_dimension_numbers<[1], [0], [0], [1], [0, 0, 1, 1], [], []>} : vector<16x16xbf16>, vector<16x128xbf16>, vector<16x128xf32> -> vector<16x128xf32>
    %80 = arith.addf %74, %79 : vector<16x128xf32>
    %c0_59 = arith.constant 0 : index
    %c1408 = arith.constant 1408 : index
    %81 = vector.load %arg10[%c0_59, %c1408] : memref<16x3200xf32, #tpu.memory_space<vmem>>, vector<16x128xf32>
    %82 = arith.truncf %81 : vector<16x128xf32> to vector<16x128xbf16>
    %c11 = arith.constant 11 : index
    %c0_60 = arith.constant 0 : index
    %c0_61 = arith.constant 0 : index
    %83 = vector.load %arg5[%c11, %c0_60, %c0_61] : memref<25x16x16xbf16, #tpu.memory_space<vmem>>, vector<1x16x16xbf16>
    %84 = vector.shape_cast %83 : vector<1x16x16xbf16> to vector<16x16xbf16>
    %cst_62 = arith.constant dense<0.000000e+00> : vector<16x128xf32>
    %85 = tpu.matmul %84, %82, %cst_62 {dimension_numbers = #tpu.dot_dimension_numbers<[1], [0], [0], [1], [0, 0, 1, 1], [], []>} : vector<16x16xbf16>, vector<16x128xbf16>, vector<16x128xf32> -> vector<16x128xf32>
    %86 = arith.addf %80, %85 : vector<16x128xf32>
    %c0_63 = arith.constant 0 : index
    %c1536 = arith.constant 1536 : index
    %87 = vector.load %arg10[%c0_63, %c1536] : memref<16x3200xf32, #tpu.memory_space<vmem>>, vector<16x128xf32>
    %88 = arith.truncf %87 : vector<16x128xf32> to vector<16x128xbf16>
    %c12 = arith.constant 12 : index
    %c0_64 = arith.constant 0 : index
    %c0_65 = arith.constant 0 : index
    %89 = vector.load %arg5[%c12, %c0_64, %c0_65] : memref<25x16x16xbf16, #tpu.memory_space<vmem>>, vector<1x16x16xbf16>
    %90 = vector.shape_cast %89 : vector<1x16x16xbf16> to vector<16x16xbf16>
    %cst_66 = arith.constant dense<0.000000e+00> : vector<16x128xf32>
    %91 = tpu.matmul %90, %88, %cst_66 {dimension_numbers = #tpu.dot_dimension_numbers<[1], [0], [0], [1], [0, 0, 1, 1], [], []>} : vector<16x16xbf16>, vector<16x128xbf16>, vector<16x128xf32> -> vector<16x128xf32>
    %92 = arith.addf %86, %91 : vector<16x128xf32>
    %c0_67 = arith.constant 0 : index
    %c1664 = arith.constant 1664 : index
    %93 = vector.load %arg10[%c0_67, %c1664] : memref<16x3200xf32, #tpu.memory_space<vmem>>, vector<16x128xf32>
    %94 = arith.truncf %93 : vector<16x128xf32> to vector<16x128xbf16>
    %c13 = arith.constant 13 : index
    %c0_68 = arith.constant 0 : index
    %c0_69 = arith.constant 0 : index
    %95 = vector.load %arg5[%c13, %c0_68, %c0_69] : memref<25x16x16xbf16, #tpu.memory_space<vmem>>, vector<1x16x16xbf16>
    %96 = vector.shape_cast %95 : vector<1x16x16xbf16> to vector<16x16xbf16>
    %cst_70 = arith.constant dense<0.000000e+00> : vector<16x128xf32>
    %97 = tpu.matmul %96, %94, %cst_70 {dimension_numbers = #tpu.dot_dimension_numbers<[1], [0], [0], [1], [0, 0, 1, 1], [], []>} : vector<16x16xbf16>, vector<16x128xbf16>, vector<16x128xf32> -> vector<16x128xf32>
    %98 = arith.addf %92, %97 : vector<16x128xf32>
    %c0_71 = arith.constant 0 : index
    %c1792 = arith.constant 1792 : index
    %99 = vector.load %arg10[%c0_71, %c1792] : memref<16x3200xf32, #tpu.memory_space<vmem>>, vector<16x128xf32>
    %100 = arith.truncf %99 : vector<16x128xf32> to vector<16x128xbf16>
    %c14 = arith.constant 14 : index
    %c0_72 = arith.constant 0 : index
    %c0_73 = arith.constant 0 : index
    %101 = vector.load %arg5[%c14, %c0_72, %c0_73] : memref<25x16x16xbf16, #tpu.memory_space<vmem>>, vector<1x16x16xbf16>
    %102 = vector.shape_cast %101 : vector<1x16x16xbf16> to vector<16x16xbf16>
    %cst_74 = arith.constant dense<0.000000e+00> : vector<16x128xf32>
    %103 = tpu.matmul %102, %100, %cst_74 {dimension_numbers = #tpu.dot_dimension_numbers<[1], [0], [0], [1], [0, 0, 1, 1], [], []>} : vector<16x16xbf16>, vector<16x128xbf16>, vector<16x128xf32> -> vector<16x128xf32>
    %104 = arith.addf %98, %103 : vector<16x128xf32>
    %c0_75 = arith.constant 0 : index
    %c1920 = arith.constant 1920 : index
    %105 = vector.load %arg10[%c0_75, %c1920] : memref<16x3200xf32, #tpu.memory_space<vmem>>, vector<16x128xf32>
    %106 = arith.truncf %105 : vector<16x128xf32> to vector<16x128xbf16>
    %c15 = arith.constant 15 : index
    %c0_76 = arith.constant 0 : index
    %c0_77 = arith.constant 0 : index
    %107 = vector.load %arg5[%c15, %c0_76, %c0_77] : memref<25x16x16xbf16, #tpu.memory_space<vmem>>, vector<1x16x16xbf16>
    %108 = vector.shape_cast %107 : vector<1x16x16xbf16> to vector<16x16xbf16>
    %cst_78 = arith.constant dense<0.000000e+00> : vector<16x128xf32>
    %109 = tpu.matmul %108, %106, %cst_78 {dimension_numbers = #tpu.dot_dimension_numbers<[1], [0], [0], [1], [0, 0, 1, 1], [], []>} : vector<16x16xbf16>, vector<16x128xbf16>, vector<16x128xf32> -> vector<16x128xf32>
    %110 = arith.addf %104, %109 : vector<16x128xf32>
    %c0_79 = arith.constant 0 : index
    %c2048 = arith.constant 2048 : index
    %111 = vector.load %arg10[%c0_79, %c2048] : memref<16x3200xf32, #tpu.memory_space<vmem>>, vector<16x128xf32>
    %112 = arith.truncf %111 : vector<16x128xf32> to vector<16x128xbf16>
    %c16 = arith.constant 16 : index
    %c0_80 = arith.constant 0 : index
    %c0_81 = arith.constant 0 : index
    %113 = vector.load %arg5[%c16, %c0_80, %c0_81] : memref<25x16x16xbf16, #tpu.memory_space<vmem>>, vector<1x16x16xbf16>
    %114 = vector.shape_cast %113 : vector<1x16x16xbf16> to vector<16x16xbf16>
    %cst_82 = arith.constant dense<0.000000e+00> : vector<16x128xf32>
    %115 = tpu.matmul %114, %112, %cst_82 {dimension_numbers = #tpu.dot_dimension_numbers<[1], [0], [0], [1], [0, 0, 1, 1], [], []>} : vector<16x16xbf16>, vector<16x128xbf16>, vector<16x128xf32> -> vector<16x128xf32>
    %116 = arith.addf %110, %115 : vector<16x128xf32>
    %c0_83 = arith.constant 0 : index
    %c2176 = arith.constant 2176 : index
    %117 = vector.load %arg10[%c0_83, %c2176] : memref<16x3200xf32, #tpu.memory_space<vmem>>, vector<16x128xf32>
    %118 = arith.truncf %117 : vector<16x128xf32> to vector<16x128xbf16>
    %c17 = arith.constant 17 : index
    %c0_84 = arith.constant 0 : index
    %c0_85 = arith.constant 0 : index
    %119 = vector.load %arg5[%c17, %c0_84, %c0_85] : memref<25x16x16xbf16, #tpu.memory_space<vmem>>, vector<1x16x16xbf16>
    %120 = vector.shape_cast %119 : vector<1x16x16xbf16> to vector<16x16xbf16>
    %cst_86 = arith.constant dense<0.000000e+00> : vector<16x128xf32>
    %121 = tpu.matmul %120, %118, %cst_86 {dimension_numbers = #tpu.dot_dimension_numbers<[1], [0], [0], [1], [0, 0, 1, 1], [], []>} : vector<16x16xbf16>, vector<16x128xbf16>, vector<16x128xf32> -> vector<16x128xf32>
    %122 = arith.addf %116, %121 : vector<16x128xf32>
    %c0_87 = arith.constant 0 : index
    %c2304 = arith.constant 2304 : index
    %123 = vector.load %arg10[%c0_87, %c2304] : memref<16x3200xf32, #tpu.memory_space<vmem>>, vector<16x128xf32>
    %124 = arith.truncf %123 : vector<16x128xf32> to vector<16x128xbf16>
    %c18 = arith.constant 18 : index
    %c0_88 = arith.constant 0 : index
    %c0_89 = arith.constant 0 : index
    %125 = vector.load %arg5[%c18, %c0_88, %c0_89] : memref<25x16x16xbf16, #tpu.memory_space<vmem>>, vector<1x16x16xbf16>
    %126 = vector.shape_cast %125 : vector<1x16x16xbf16> to vector<16x16xbf16>
    %cst_90 = arith.constant dense<0.000000e+00> : vector<16x128xf32>
    %127 = tpu.matmul %126, %124, %cst_90 {dimension_numbers = #tpu.dot_dimension_numbers<[1], [0], [0], [1], [0, 0, 1, 1], [], []>} : vector<16x16xbf16>, vector<16x128xbf16>, vector<16x128xf32> -> vector<16x128xf32>
    %128 = arith.addf %122, %127 : vector<16x128xf32>
    %c0_91 = arith.constant 0 : index
    %c2432 = arith.constant 2432 : index
    %129 = vector.load %arg10[%c0_91, %c2432] : memref<16x3200xf32, #tpu.memory_space<vmem>>, vector<16x128xf32>
    %130 = arith.truncf %129 : vector<16x128xf32> to vector<16x128xbf16>
    %c19 = arith.constant 19 : index
    %c0_92 = arith.constant 0 : index
    %c0_93 = arith.constant 0 : index
    %131 = vector.load %arg5[%c19, %c0_92, %c0_93] : memref<25x16x16xbf16, #tpu.memory_space<vmem>>, vector<1x16x16xbf16>
    %132 = vector.shape_cast %131 : vector<1x16x16xbf16> to vector<16x16xbf16>
    %cst_94 = arith.constant dense<0.000000e+00> : vector<16x128xf32>
    %133 = tpu.matmul %132, %130, %cst_94 {dimension_numbers = #tpu.dot_dimension_numbers<[1], [0], [0], [1], [0, 0, 1, 1], [], []>} : vector<16x16xbf16>, vector<16x128xbf16>, vector<16x128xf32> -> vector<16x128xf32>
    %134 = arith.addf %128, %133 : vector<16x128xf32>
    %c0_95 = arith.constant 0 : index
    %c2560 = arith.constant 2560 : index
    %135 = vector.load %arg10[%c0_95, %c2560] : memref<16x3200xf32, #tpu.memory_space<vmem>>, vector<16x128xf32>
    %136 = arith.truncf %135 : vector<16x128xf32> to vector<16x128xbf16>
    %c20 = arith.constant 20 : index
    %c0_96 = arith.constant 0 : index
    %c0_97 = arith.constant 0 : index
    %137 = vector.load %arg5[%c20, %c0_96, %c0_97] : memref<25x16x16xbf16, #tpu.memory_space<vmem>>, vector<1x16x16xbf16>
    %138 = vector.shape_cast %137 : vector<1x16x16xbf16> to vector<16x16xbf16>
    %cst_98 = arith.constant dense<0.000000e+00> : vector<16x128xf32>
    %139 = tpu.matmul %138, %136, %cst_98 {dimension_numbers = #tpu.dot_dimension_numbers<[1], [0], [0], [1], [0, 0, 1, 1], [], []>} : vector<16x16xbf16>, vector<16x128xbf16>, vector<16x128xf32> -> vector<16x128xf32>
    %140 = arith.addf %134, %139 : vector<16x128xf32>
    %c0_99 = arith.constant 0 : index
    %c2688 = arith.constant 2688 : index
    %141 = vector.load %arg10[%c0_99, %c2688] : memref<16x3200xf32, #tpu.memory_space<vmem>>, vector<16x128xf32>
    %142 = arith.truncf %141 : vector<16x128xf32> to vector<16x128xbf16>
    %c21 = arith.constant 21 : index
    %c0_100 = arith.constant 0 : index
    %c0_101 = arith.constant 0 : index
    %143 = vector.load %arg5[%c21, %c0_100, %c0_101] : memref<25x16x16xbf16, #tpu.memory_space<vmem>>, vector<1x16x16xbf16>
    %144 = vector.shape_cast %143 : vector<1x16x16xbf16> to vector<16x16xbf16>
    %cst_102 = arith.constant dense<0.000000e+00> : vector<16x128xf32>
    %145 = tpu.matmul %144, %142, %cst_102 {dimension_numbers = #tpu.dot_dimension_numbers<[1], [0], [0], [1], [0, 0, 1, 1], [], []>} : vector<16x16xbf16>, vector<16x128xbf16>, vector<16x128xf32> -> vector<16x128xf32>
    %146 = arith.addf %140, %145 : vector<16x128xf32>
    %c0_103 = arith.constant 0 : index
    %c2816 = arith.constant 2816 : index
    %147 = vector.load %arg10[%c0_103, %c2816] : memref<16x3200xf32, #tpu.memory_space<vmem>>, vector<16x128xf32>
    %148 = arith.truncf %147 : vector<16x128xf32> to vector<16x128xbf16>
    %c22 = arith.constant 22 : index
    %c0_104 = arith.constant 0 : index
    %c0_105 = arith.constant 0 : index
    %149 = vector.load %arg5[%c22, %c0_104, %c0_105] : memref<25x16x16xbf16, #tpu.memory_space<vmem>>, vector<1x16x16xbf16>
    %150 = vector.shape_cast %149 : vector<1x16x16xbf16> to vector<16x16xbf16>
    %cst_106 = arith.constant dense<0.000000e+00> : vector<16x128xf32>
    %151 = tpu.matmul %150, %148, %cst_106 {dimension_numbers = #tpu.dot_dimension_numbers<[1], [0], [0], [1], [0, 0, 1, 1], [], []>} : vector<16x16xbf16>, vector<16x128xbf16>, vector<16x128xf32> -> vector<16x128xf32>
    %152 = arith.addf %146, %151 : vector<16x128xf32>
    %c0_107 = arith.constant 0 : index
    %c2944 = arith.constant 2944 : index
    %153 = vector.load %arg10[%c0_107, %c2944] : memref<16x3200xf32, #tpu.memory_space<vmem>>, vector<16x128xf32>
    %154 = arith.truncf %153 : vector<16x128xf32> to vector<16x128xbf16>
    %c23 = arith.constant 23 : index
    %c0_108 = arith.constant 0 : index
    %c0_109 = arith.constant 0 : index
    %155 = vector.load %arg5[%c23, %c0_108, %c0_109] : memref<25x16x16xbf16, #tpu.memory_space<vmem>>, vector<1x16x16xbf16>
    %156 = vector.shape_cast %155 : vector<1x16x16xbf16> to vector<16x16xbf16>
    %cst_110 = arith.constant dense<0.000000e+00> : vector<16x128xf32>
    %157 = tpu.matmul %156, %154, %cst_110 {dimension_numbers = #tpu.dot_dimension_numbers<[1], [0], [0], [1], [0, 0, 1, 1], [], []>} : vector<16x16xbf16>, vector<16x128xbf16>, vector<16x128xf32> -> vector<16x128xf32>
    %158 = arith.addf %152, %157 : vector<16x128xf32>
    %c0_111 = arith.constant 0 : index
    %c3072 = arith.constant 3072 : index
    %159 = vector.load %arg10[%c0_111, %c3072] : memref<16x3200xf32, #tpu.memory_space<vmem>>, vector<16x128xf32>
    %160 = arith.truncf %159 : vector<16x128xf32> to vector<16x128xbf16>
    %c24 = arith.constant 24 : index
    %c0_112 = arith.constant 0 : index
    %c0_113 = arith.constant 0 : index
    %161 = vector.load %arg5[%c24, %c0_112, %c0_113] : memref<25x16x16xbf16, #tpu.memory_space<vmem>>, vector<1x16x16xbf16>
    %162 = vector.shape_cast %161 : vector<1x16x16xbf16> to vector<16x16xbf16>
    %cst_114 = arith.constant dense<0.000000e+00> : vector<16x128xf32>
    %163 = tpu.matmul %162, %160, %cst_114 {dimension_numbers = #tpu.dot_dimension_numbers<[1], [0], [0], [1], [0, 0, 1, 1], [], []>} : vector<16x16xbf16>, vector<16x128xbf16>, vector<16x128xf32> -> vector<16x128xf32>
    %164 = arith.addf %158, %163 : vector<16x128xf32>
    %c0_115 = arith.constant 0 : index
    %c0_116 = arith.constant 0 : index
    %165 = vector.load %arg6[%c0_115, %c0_116] : memref<16x1xf32, #tpu.memory_space<vmem>>, vector<16x1xf32>
    %166 = vector.broadcast %165 : vector<16x1xf32> to vector<16x128xf32>
    %167 = arith.addf %164, %166 : vector<16x128xf32>
    %cst_117 = arith.constant 0.000000e+00 : f32
    %168 = vector.broadcast %cst_117 : f32 to vector<16x128xf32>
    %169 = arith.maximumf %167, %168 : vector<16x128xf32>
    %c0_118 = arith.constant 0 : index
    %c0_119 = arith.constant 0 : index
    %170 = vector.load %arg11[%c0_118, %c0_119] : memref<16x128xf32, #tpu.memory_space<vmem>>, vector<16x128xf32>
    tpu.vector_store %arg11[%c0_118, %c0_119], %169 {strides = array<i32>} : memref<16x128xf32, #tpu.memory_space<vmem>>, vector<16x128xf32>,
    %c0_120 = arith.constant 0 : index
    %c0_121 = arith.constant 0 : index
    %171 = vector.load %arg8[%c0_120, %c0_121] : memref<1x256xf32, #tpu.memory_space<vmem>>, vector<1x256xf32>
    %c0_122 = arith.constant 0 : index
    %c0_123 = arith.constant 0 : index
    %172 = vector.load %arg11[%c0_122, %c0_123] : memref<16x128xf32, #tpu.memory_space<vmem>>, vector<1x128xf32>
    %173 = arith.truncf %172 : vector<1x128xf32> to vector<1x128xbf16>
    %c0_124 = arith.constant 0 : index
    %c0_125 = arith.constant 0 : index
    %c0_126 = arith.constant 0 : index
    %174 = vector.load %arg7[%c0_124, %c0_125, %c0_126] : memref<16x128x256xbf16, #tpu.memory_space<vmem>>, vector<1x128x256xbf16>
    %175 = vector.shape_cast %174 : vector<1x128x256xbf16> to vector<128x256xbf16>
    %cst_127 = arith.constant dense<0.000000e+00> : vector<1x256xf32>
    %176 = tpu.matmul %173, %175, %cst_127 {dimension_numbers = #tpu.dot_dimension_numbers<[1], [0], [0], [1], [0, 0, 1, 1], [], []>} : vector<1x128xbf16>, vector<128x256xbf16>, vector<1x256xf32> -> vector<1x256xf32>
    %177 = arith.addf %171, %176 : vector<1x256xf32>
    %c1_128 = arith.constant 1 : index
    %c0_129 = arith.constant 0 : index
    %178 = vector.load %arg11[%c1_128, %c0_129] : memref<16x128xf32, #tpu.memory_space<vmem>>, vector<1x128xf32>
    %179 = arith.truncf %178 : vector<1x128xf32> to vector<1x128xbf16>
    %c1_130 = arith.constant 1 : index
    %c0_131 = arith.constant 0 : index
    %c0_132 = arith.constant 0 : index
    %180 = vector.load %arg7[%c1_130, %c0_131, %c0_132] : memref<16x128x256xbf16, #tpu.memory_space<vmem>>, vector<1x128x256xbf16>
    %181 = vector.shape_cast %180 : vector<1x128x256xbf16> to vector<128x256xbf16>
    %cst_133 = arith.constant dense<0.000000e+00> : vector<1x256xf32>
    %182 = tpu.matmul %179, %181, %cst_133 {dimension_numbers = #tpu.dot_dimension_numbers<[1], [0], [0], [1], [0, 0, 1, 1], [], []>} : vector<1x128xbf16>, vector<128x256xbf16>, vector<1x256xf32> -> vector<1x256xf32>
    %183 = arith.addf %177, %182 : vector<1x256xf32>
    %c2_134 = arith.constant 2 : index
    %c0_135 = arith.constant 0 : index
    %184 = vector.load %arg11[%c2_134, %c0_135] : memref<16x128xf32, #tpu.memory_space<vmem>>, vector<1x128xf32>
    %185 = arith.truncf %184 : vector<1x128xf32> to vector<1x128xbf16>
    %c2_136 = arith.constant 2 : index
    %c0_137 = arith.constant 0 : index
    %c0_138 = arith.constant 0 : index
    %186 = vector.load %arg7[%c2_136, %c0_137, %c0_138] : memref<16x128x256xbf16, #tpu.memory_space<vmem>>, vector<1x128x256xbf16>
    %187 = vector.shape_cast %186 : vector<1x128x256xbf16> to vector<128x256xbf16>
    %cst_139 = arith.constant dense<0.000000e+00> : vector<1x256xf32>
    %188 = tpu.matmul %185, %187, %cst_139 {dimension_numbers = #tpu.dot_dimension_numbers<[1], [0], [0], [1], [0, 0, 1, 1], [], []>} : vector<1x128xbf16>, vector<128x256xbf16>, vector<1x256xf32> -> vector<1x256xf32>
    %189 = arith.addf %183, %188 : vector<1x256xf32>
    %c3_140 = arith.constant 3 : index
    %c0_141 = arith.constant 0 : index
    %190 = vector.load %arg11[%c3_140, %c0_141] : memref<16x128xf32, #tpu.memory_space<vmem>>, vector<1x128xf32>
    %191 = arith.truncf %190 : vector<1x128xf32> to vector<1x128xbf16>
    %c3_142 = arith.constant 3 : index
    %c0_143 = arith.constant 0 : index
    %c0_144 = arith.constant 0 : index
    %192 = vector.load %arg7[%c3_142, %c0_143, %c0_144] : memref<16x128x256xbf16, #tpu.memory_space<vmem>>, vector<1x128x256xbf16>
    %193 = vector.shape_cast %192 : vector<1x128x256xbf16> to vector<128x256xbf16>
    %cst_145 = arith.constant dense<0.000000e+00> : vector<1x256xf32>
    %194 = tpu.matmul %191, %193, %cst_145 {dimension_numbers = #tpu.dot_dimension_numbers<[1], [0], [0], [1], [0, 0, 1, 1], [], []>} : vector<1x128xbf16>, vector<128x256xbf16>, vector<1x256xf32> -> vector<1x256xf32>
    %195 = arith.addf %189, %194 : vector<1x256xf32>
    %c4_146 = arith.constant 4 : index
    %c0_147 = arith.constant 0 : index
    %196 = vector.load %arg11[%c4_146, %c0_147] : memref<16x128xf32, #tpu.memory_space<vmem>>, vector<1x128xf32>
    %197 = arith.truncf %196 : vector<1x128xf32> to vector<1x128xbf16>
    %c4_148 = arith.constant 4 : index
    %c0_149 = arith.constant 0 : index
    %c0_150 = arith.constant 0 : index
    %198 = vector.load %arg7[%c4_148, %c0_149, %c0_150] : memref<16x128x256xbf16, #tpu.memory_space<vmem>>, vector<1x128x256xbf16>
    %199 = vector.shape_cast %198 : vector<1x128x256xbf16> to vector<128x256xbf16>
    %cst_151 = arith.constant dense<0.000000e+00> : vector<1x256xf32>
    %200 = tpu.matmul %197, %199, %cst_151 {dimension_numbers = #tpu.dot_dimension_numbers<[1], [0], [0], [1], [0, 0, 1, 1], [], []>} : vector<1x128xbf16>, vector<128x256xbf16>, vector<1x256xf32> -> vector<1x256xf32>
    %201 = arith.addf %195, %200 : vector<1x256xf32>
    %c5_152 = arith.constant 5 : index
    %c0_153 = arith.constant 0 : index
    %202 = vector.load %arg11[%c5_152, %c0_153] : memref<16x128xf32, #tpu.memory_space<vmem>>, vector<1x128xf32>
    %203 = arith.truncf %202 : vector<1x128xf32> to vector<1x128xbf16>
    %c5_154 = arith.constant 5 : index
    %c0_155 = arith.constant 0 : index
    %c0_156 = arith.constant 0 : index
    %204 = vector.load %arg7[%c5_154, %c0_155, %c0_156] : memref<16x128x256xbf16, #tpu.memory_space<vmem>>, vector<1x128x256xbf16>
    %205 = vector.shape_cast %204 : vector<1x128x256xbf16> to vector<128x256xbf16>
    %cst_157 = arith.constant dense<0.000000e+00> : vector<1x256xf32>
    %206 = tpu.matmul %203, %205, %cst_157 {dimension_numbers = #tpu.dot_dimension_numbers<[1], [0], [0], [1], [0, 0, 1, 1], [], []>} : vector<1x128xbf16>, vector<128x256xbf16>, vector<1x256xf32> -> vector<1x256xf32>
    %207 = arith.addf %201, %206 : vector<1x256xf32>
    %c6_158 = arith.constant 6 : index
    %c0_159 = arith.constant 0 : index
    %208 = vector.load %arg11[%c6_158, %c0_159] : memref<16x128xf32, #tpu.memory_space<vmem>>, vector<1x128xf32>
    %209 = arith.truncf %208 : vector<1x128xf32> to vector<1x128xbf16>
    %c6_160 = arith.constant 6 : index
    %c0_161 = arith.constant 0 : index
    %c0_162 = arith.constant 0 : index
    %210 = vector.load %arg7[%c6_160, %c0_161, %c0_162] : memref<16x128x256xbf16, #tpu.memory_space<vmem>>, vector<1x128x256xbf16>
    %211 = vector.shape_cast %210 : vector<1x128x256xbf16> to vector<128x256xbf16>
    %cst_163 = arith.constant dense<0.000000e+00> : vector<1x256xf32>
    %212 = tpu.matmul %209, %211, %cst_163 {dimension_numbers = #tpu.dot_dimension_numbers<[1], [0], [0], [1], [0, 0, 1, 1], [], []>} : vector<1x128xbf16>, vector<128x256xbf16>, vector<1x256xf32> -> vector<1x256xf32>
    %213 = arith.addf %207, %212 : vector<1x256xf32>
    %c7_164 = arith.constant 7 : index
    %c0_165 = arith.constant 0 : index
    %214 = vector.load %arg11[%c7_164, %c0_165] : memref<16x128xf32, #tpu.memory_space<vmem>>, vector<1x128xf32>
    %215 = arith.truncf %214 : vector<1x128xf32> to vector<1x128xbf16>
    %c7_166 = arith.constant 7 : index
    %c0_167 = arith.constant 0 : index
    %c0_168 = arith.constant 0 : index
    %216 = vector.load %arg7[%c7_166, %c0_167, %c0_168] : memref<16x128x256xbf16, #tpu.memory_space<vmem>>, vector<1x128x256xbf16>
    %217 = vector.shape_cast %216 : vector<1x128x256xbf16> to vector<128x256xbf16>
    %cst_169 = arith.constant dense<0.000000e+00> : vector<1x256xf32>
    %218 = tpu.matmul %215, %217, %cst_169 {dimension_numbers = #tpu.dot_dimension_numbers<[1], [0], [0], [1], [0, 0, 1, 1], [], []>} : vector<1x128xbf16>, vector<128x256xbf16>, vector<1x256xf32> -> vector<1x256xf32>
    %219 = arith.addf %213, %218 : vector<1x256xf32>
    %c8_170 = arith.constant 8 : index
    %c0_171 = arith.constant 0 : index
    %220 = vector.load %arg11[%c8_170, %c0_171] : memref<16x128xf32, #tpu.memory_space<vmem>>, vector<1x128xf32>
    %221 = arith.truncf %220 : vector<1x128xf32> to vector<1x128xbf16>
    %c8_172 = arith.constant 8 : index
    %c0_173 = arith.constant 0 : index
    %c0_174 = arith.constant 0 : index
    %222 = vector.load %arg7[%c8_172, %c0_173, %c0_174] : memref<16x128x256xbf16, #tpu.memory_space<vmem>>, vector<1x128x256xbf16>
    %223 = vector.shape_cast %222 : vector<1x128x256xbf16> to vector<128x256xbf16>
    %cst_175 = arith.constant dense<0.000000e+00> : vector<1x256xf32>
    %224 = tpu.matmul %221, %223, %cst_175 {dimension_numbers = #tpu.dot_dimension_numbers<[1], [0], [0], [1], [0, 0, 1, 1], [], []>} : vector<1x128xbf16>, vector<128x256xbf16>, vector<1x256xf32> -> vector<1x256xf32>
    %225 = arith.addf %219, %224 : vector<1x256xf32>
    %c9_176 = arith.constant 9 : index
    %c0_177 = arith.constant 0 : index
    %226 = vector.load %arg11[%c9_176, %c0_177] : memref<16x128xf32, #tpu.memory_space<vmem>>, vector<1x128xf32>
    %227 = arith.truncf %226 : vector<1x128xf32> to vector<1x128xbf16>
    %c9_178 = arith.constant 9 : index
    %c0_179 = arith.constant 0 : index
    %c0_180 = arith.constant 0 : index
    %228 = vector.load %arg7[%c9_178, %c0_179, %c0_180] : memref<16x128x256xbf16, #tpu.memory_space<vmem>>, vector<1x128x256xbf16>
    %229 = vector.shape_cast %228 : vector<1x128x256xbf16> to vector<128x256xbf16>
    %cst_181 = arith.constant dense<0.000000e+00> : vector<1x256xf32>
    %230 = tpu.matmul %227, %229, %cst_181 {dimension_numbers = #tpu.dot_dimension_numbers<[1], [0], [0], [1], [0, 0, 1, 1], [], []>} : vector<1x128xbf16>, vector<128x256xbf16>, vector<1x256xf32> -> vector<1x256xf32>
    %231 = arith.addf %225, %230 : vector<1x256xf32>
    %c10_182 = arith.constant 10 : index
    %c0_183 = arith.constant 0 : index
    %232 = vector.load %arg11[%c10_182, %c0_183] : memref<16x128xf32, #tpu.memory_space<vmem>>, vector<1x128xf32>
    %233 = arith.truncf %232 : vector<1x128xf32> to vector<1x128xbf16>
    %c10_184 = arith.constant 10 : index
    %c0_185 = arith.constant 0 : index
    %c0_186 = arith.constant 0 : index
    %234 = vector.load %arg7[%c10_184, %c0_185, %c0_186] : memref<16x128x256xbf16, #tpu.memory_space<vmem>>, vector<1x128x256xbf16>
    %235 = vector.shape_cast %234 : vector<1x128x256xbf16> to vector<128x256xbf16>
    %cst_187 = arith.constant dense<0.000000e+00> : vector<1x256xf32>
    %236 = tpu.matmul %233, %235, %cst_187 {dimension_numbers = #tpu.dot_dimension_numbers<[1], [0], [0], [1], [0, 0, 1, 1], [], []>} : vector<1x128xbf16>, vector<128x256xbf16>, vector<1x256xf32> -> vector<1x256xf32>
    %237 = arith.addf %231, %236 : vector<1x256xf32>
    %c11_188 = arith.constant 11 : index
    %c0_189 = arith.constant 0 : index
    %238 = vector.load %arg11[%c11_188, %c0_189] : memref<16x128xf32, #tpu.memory_space<vmem>>, vector<1x128xf32>
    %239 = arith.truncf %238 : vector<1x128xf32> to vector<1x128xbf16>
    %c11_190 = arith.constant 11 : index
    %c0_191 = arith.constant 0 : index
    %c0_192 = arith.constant 0 : index
    %240 = vector.load %arg7[%c11_190, %c0_191, %c0_192] : memref<16x128x256xbf16, #tpu.memory_space<vmem>>, vector<1x128x256xbf16>
    %241 = vector.shape_cast %240 : vector<1x128x256xbf16> to vector<128x256xbf16>
    %cst_193 = arith.constant dense<0.000000e+00> : vector<1x256xf32>
    %242 = tpu.matmul %239, %241, %cst_193 {dimension_numbers = #tpu.dot_dimension_numbers<[1], [0], [0], [1], [0, 0, 1, 1], [], []>} : vector<1x128xbf16>, vector<128x256xbf16>, vector<1x256xf32> -> vector<1x256xf32>
    %243 = arith.addf %237, %242 : vector<1x256xf32>
    %c12_194 = arith.constant 12 : index
    %c0_195 = arith.constant 0 : index
    %244 = vector.load %arg11[%c12_194, %c0_195] : memref<16x128xf32, #tpu.memory_space<vmem>>, vector<1x128xf32>
    %245 = arith.truncf %244 : vector<1x128xf32> to vector<1x128xbf16>
    %c12_196 = arith.constant 12 : index
    %c0_197 = arith.constant 0 : index
    %c0_198 = arith.constant 0 : index
    %246 = vector.load %arg7[%c12_196, %c0_197, %c0_198] : memref<16x128x256xbf16, #tpu.memory_space<vmem>>, vector<1x128x256xbf16>
    %247 = vector.shape_cast %246 : vector<1x128x256xbf16> to vector<128x256xbf16>
    %cst_199 = arith.constant dense<0.000000e+00> : vector<1x256xf32>
    %248 = tpu.matmul %245, %247, %cst_199 {dimension_numbers = #tpu.dot_dimension_numbers<[1], [0], [0], [1], [0, 0, 1, 1], [], []>} : vector<1x128xbf16>, vector<128x256xbf16>, vector<1x256xf32> -> vector<1x256xf32>
    %249 = arith.addf %243, %248 : vector<1x256xf32>
    %c13_200 = arith.constant 13 : index
    %c0_201 = arith.constant 0 : index
    %250 = vector.load %arg11[%c13_200, %c0_201] : memref<16x128xf32, #tpu.memory_space<vmem>>, vector<1x128xf32>
    %251 = arith.truncf %250 : vector<1x128xf32> to vector<1x128xbf16>
    %c13_202 = arith.constant 13 : index
    %c0_203 = arith.constant 0 : index
    %c0_204 = arith.constant 0 : index
    %252 = vector.load %arg7[%c13_202, %c0_203, %c0_204] : memref<16x128x256xbf16, #tpu.memory_space<vmem>>, vector<1x128x256xbf16>
    %253 = vector.shape_cast %252 : vector<1x128x256xbf16> to vector<128x256xbf16>
    %cst_205 = arith.constant dense<0.000000e+00> : vector<1x256xf32>
    %254 = tpu.matmul %251, %253, %cst_205 {dimension_numbers = #tpu.dot_dimension_numbers<[1], [0], [0], [1], [0, 0, 1, 1], [], []>} : vector<1x128xbf16>, vector<128x256xbf16>, vector<1x256xf32> -> vector<1x256xf32>
    %255 = arith.addf %249, %254 : vector<1x256xf32>
    %c14_206 = arith.constant 14 : index
    %c0_207 = arith.constant 0 : index
    %256 = vector.load %arg11[%c14_206, %c0_207] : memref<16x128xf32, #tpu.memory_space<vmem>>, vector<1x128xf32>
    %257 = arith.truncf %256 : vector<1x128xf32> to vector<1x128xbf16>
    %c14_208 = arith.constant 14 : index
    %c0_209 = arith.constant 0 : index
    %c0_210 = arith.constant 0 : index
    %258 = vector.load %arg7[%c14_208, %c0_209, %c0_210] : memref<16x128x256xbf16, #tpu.memory_space<vmem>>, vector<1x128x256xbf16>
    %259 = vector.shape_cast %258 : vector<1x128x256xbf16> to vector<128x256xbf16>
    %cst_211 = arith.constant dense<0.000000e+00> : vector<1x256xf32>
    %260 = tpu.matmul %257, %259, %cst_211 {dimension_numbers = #tpu.dot_dimension_numbers<[1], [0], [0], [1], [0, 0, 1, 1], [], []>} : vector<1x128xbf16>, vector<128x256xbf16>, vector<1x256xf32> -> vector<1x256xf32>
    %261 = arith.addf %255, %260 : vector<1x256xf32>
    %c15_212 = arith.constant 15 : index
    %c0_213 = arith.constant 0 : index
    %262 = vector.load %arg11[%c15_212, %c0_213] : memref<16x128xf32, #tpu.memory_space<vmem>>, vector<1x128xf32>
    %263 = arith.truncf %262 : vector<1x128xf32> to vector<1x128xbf16>
    %c15_214 = arith.constant 15 : index
    %c0_215 = arith.constant 0 : index
    %c0_216 = arith.constant 0 : index
    %264 = vector.load %arg7[%c15_214, %c0_215, %c0_216] : memref<16x128x256xbf16, #tpu.memory_space<vmem>>, vector<1x128x256xbf16>
    %265 = vector.shape_cast %264 : vector<1x128x256xbf16> to vector<128x256xbf16>
    %cst_217 = arith.constant dense<0.000000e+00> : vector<1x256xf32>
    %266 = tpu.matmul %263, %265, %cst_217 {dimension_numbers = #tpu.dot_dimension_numbers<[1], [0], [0], [1], [0, 0, 1, 1], [], []>} : vector<1x128xbf16>, vector<128x256xbf16>, vector<1x256xf32> -> vector<1x256xf32>
    %267 = arith.addf %261, %266 : vector<1x256xf32>
    %cst_218 = arith.constant 0.000000e+00 : f32
    %268 = vector.broadcast %cst_218 : f32 to vector<1x256xf32>
    %269 = arith.maximumf %267, %268 : vector<1x256xf32>
    %c0_219 = arith.constant 0 : index
    %c0_220 = arith.constant 0 : index
    %c0_221 = arith.constant 0 : index
    %270 = vector.load %arg9[%c0_219, %c0_220, %c0_221] : memref<1x1x256xf32, #tpu.memory_space<vmem>>, vector<1x1x256xf32>
    %271 = vector.shape_cast %270 : vector<1x1x256xf32> to vector<1x256xf32>
    %272 = vector.shape_cast %269 : vector<1x256xf32> to vector<1x1x256xf32>
    tpu.vector_store %arg9[%c0_219, %c0_220, %c0_221], %272 {strides = array<i32>} : memref<1x1x256xf32, #tpu.memory_space<vmem>>, vector<1x1x256xf32>,
    return
  }
  func.func @transform_0(%arg0: i32) -> (i32, i32, i32) {
    %c0_i32 = arith.constant 0 : i32
    %c0_i32_0 = arith.constant 0 : i32
    %c0_i32_1 = arith.constant 0 : i32
    return %arg0, %c0_i32, %c0_i32_0 : i32, i32, i32
  }
  func.func @transform_1(%arg0: i32) -> (i32, i32) {
    %c0_i32 = arith.constant 0 : i32
    %c0_i32_0 = arith.constant 0 : i32
    %c0_i32_1 = arith.constant 0 : i32
    return %c0_i32, %c0_i32_0 : i32, i32
  }
  func.func @transform_2(%arg0: i32) -> (i32, i32) {
    %c0_i32 = arith.constant 0 : i32
    %c0_i32_0 = arith.constant 0 : i32
    %c0_i32_1 = arith.constant 0 : i32
    return %c0_i32, %c0_i32_0 : i32, i32
  }
  func.func @transform_3(%arg0: i32) -> (i32, i32) {
    %c0_i32 = arith.constant 0 : i32
    %c0_i32_0 = arith.constant 0 : i32
    %c0_i32_1 = arith.constant 0 : i32
    return %c0_i32, %c0_i32_0 : i32, i32
  }
  func.func @transform_4(%arg0: i32) -> (i32, i32, i32) {
    %c0_i32 = arith.constant 0 : i32
    %c0_i32_0 = arith.constant 0 : i32
    %c0_i32_1 = arith.constant 0 : i32
    %c0_i32_2 = arith.constant 0 : i32
    return %c0_i32, %c0_i32_0, %c0_i32_1 : i32, i32, i32
  }
  func.func @transform_5(%arg0: i32) -> (i32, i32) {
    %c0_i32 = arith.constant 0 : i32
    %c0_i32_0 = arith.constant 0 : i32
    %c0_i32_1 = arith.constant 0 : i32
    return %c0_i32, %c0_i32_0 : i32, i32
  }
  func.func @transform_6(%arg0: i32) -> (i32, i32, i32) {
    %c0_i32 = arith.constant 0 : i32
    %c0_i32_0 = arith.constant 0 : i32
    %c0_i32_1 = arith.constant 0 : i32
    %c0_i32_2 = arith.constant 0 : i32
    return %c0_i32, %c0_i32_0, %c0_i32_1 : i32, i32, i32
  }
  func.func @transform_7(%arg0: i32) -> (i32, i32) {
    %c0_i32 = arith.constant 0 : i32
    %c0_i32_0 = arith.constant 0 : i32
    %c0_i32_1 = arith.constant 0 : i32
    return %c0_i32, %c0_i32_0 : i32, i32
  }
  func.func @transform_8(%arg0: i32) -> (i32, i32, i32) {
    %c0_i32 = arith.constant 0 : i32
    %c0_i32_0 = arith.constant 0 : i32
    %c0_i32_1 = arith.constant 0 : i32
    return %arg0, %c0_i32, %c0_i32_0 : i32, i32, i32
  }
}

</mosaic_0001>

<bundles_post_ra>
// kernel: cnn_encoder_forward.1
= control target key start
LH: loop header
LB: loop body
LE: loop exit
PB: predicated region body
PF: predicated region fallthrough
CT: control target
= control target key end

     0   :  { %s11548_s27 = smov 0   ;;  %s14421_s0 = inlined_call_operand.vmem [shape: f32[2,75,324], index: 0, kind: input, shape index: {}]   ;;  %s14422_s1 = inlined_call_operand.vmem [shape: bf16[16,75], index: 1, kind: input, shape index: {}]   ;;  %s14423_s2 = inlined_call_operand.vmem [shape: f32[16,1], index: 2, kind: input, shape index: {}]   ;;  %s14424_s3 = inlined_call_operand.vmem [shape: bf16[324,3200], index: 3, kind: input, shape index: {}]   ;;  %s14425_s4 = inlined_call_operand.vmem [shape: bf16[25,16,16], index: 4, kind: input, shape index: {}]   ;;  %s14426_s5 = inlined_call_operand.vmem [shape: f32[16,1], index: 5, kind: input, shape index: {}]   ;;  %s14427_s6 = inlined_call_operand.vmem [shape: bf16[16,128,256], index: 6, kind: input, shape index: {}]   ;;  %s14428_s7 = inlined_call_operand.vmem [shape: f32[1,256], index: 7, kind: input, shape index: {}]   ;;  %s14429_s8 = inlined_call_operand.vmem [shape: f32[2,1,256], index: 8, kind: output, shape index: {}]  }
   0x1 LB: > { %s8881_s28 = sadd.s32 4294967295, %s11496_s27   ;;  %p8885_p0 = scmp.ge.s32.totalorder %s11496_s27, 1  ;;  %s11496_s27 = sphi %s11548_s27, %s18_s27  }
   0x2   : > { %p262_p1 = scmp.lt.s32.totalorder %s11496_s27, 3 }
   0x4   : > { %p263_p2 = pnand %p8885_p0, %p262_p1 }
   0x5   : > { %p295_p3 = scmp.lt.s32.totalorder (!%p263_p2), %s8881_s28, 1 }
   0x6   : > { %266 = sbr.rel (%p263_p2) target bundleno = 1592 (0x638), region = 52 }
   0xb   : > { %v11498_v0 = vmov 0.0   ;;  %vm373_vm0 = vcmask 1044480   ;;  %s14431_s28 = smov (!%p295_p3, %s8881_s28), 1  ;;  %vm11499_vm1 = vmmov 0   ;;  %v11500_v1 = vmov 0   ;;  %v352_v2 = vld [vmem:[%s14423_s2] sm:$0xff] }
   0xc   : > { %10121 = vmatprep.subr.bf16.mxu1 %v11498_v0  ;;  %10131 = vmatprep.mubr.msk.bf16.mxu1 %vm11499_vm1, %v11498_v0  ;;  %s10299_s9 = smul.u32 240, %s14431_s28  ;;  %vm374_vm2 = vcmask 1045504   ;;  %v11501_v3 = vmov 65535   ;;  %v353_v5 = vld [vmem:[%s14423_s2 + $0x8] sm:$0xff]  ;;  %v10318_v55 = vld [vmem:[%s14424_s3 + $0x57c] ss:$100 sps:$4 sm:$0xff]  }
   0xd   : > { %418 = vmatprep.mubr.bf16.mxu0 %v11500_v1  ;;  %10313 = vset.pattern.permute.xlu0 %v11500_v1  ;;  %v375_v4 = vsel %vm373_vm0, 4294967295, %v11501_v3  ;;  %v999_v56 = vld [vmem:[%s14424_s3 + $0xfa0] sm:$0x33]  ;;  %vm3599_vm3 = vcmask 1041408   ;;  %vm369_vm4 = vcmask 613376   ;;  %vm3595_vm5 = vcmask 556032  }
   0xe   : > { %10314 = vset.pattern.permute.xlu1 %v11500_v1  ;;  %356 = vperm.xlu0 %10313, %v352_v2   ;;  %s11574_s14 = scalar_lea.vmem %s14421_s0, %s10299_s9  ;;  %v376_v8 = vsel %vm374_vm2, %v375_v4, 0  ;;  %v10315_v57 = vld [vmem:[%s14422_s1] sm:$0xff]   ;;  %v9392_v58 = vcombine.high %v999_v56, %v999_v56  ;;  %v9391_v59 = vcombine.low %v999_v56, %v999_v56  ;;  %v10316_v60 = vld [vmem:[%s14424_s3 + $0x578] ss:$100 sps:$4 sm:$0xff]   ;;  %v10319_v2 = vld [vmem:[%s14424_s3 + $0x4b0] ss:$100 sps:$4 sm:$0xff]  }
   0xf   : > { %v332_v6 = vld [vmem:[%s11574_s14 + $0xc8] sm:$0xff]  ;;  %v335_v7 = vld [vmem:[%s11574_s14 + $0xe0] sm:$0x7]  ;;  %v333_v9 = vld [vmem:[%s11574_s14 + $0xd0] sm:$0xff]  ;;  %vm4855_vm6 = vcmask 130048   ;;  %s8887_s11 = sshll.u32 %s14431_s28, 1 }
  0x10   : > { %v350_v10 = vpack.c.bf16 %v335_v7, %v332_v6  ;;  %v336_v11 = vld [vmem:[%s11574_s14 + $0xe8] sm:$0x7]  ;;  %v331_v12 = vld [vmem:[%s11574_s14 + $0xc0] sm:$0xff]  ;;  %v334_v13 = vld [vmem:[%s11574_s14 + $0xd8] sm:$0x7]  ;;  %v3601_v62 = vsel %vm3599_vm3, %v9391_v59, 0 }
  0x11   : > { %v351_v14 = vpack.c.bf16 %v336_v11, %v333_v9  ;;  %v349_v15 = vpack.c.bf16 %v334_v13, %v331_v12  ;;  %v326_v16 = vld [vmem:[%s11574_s14 + $0x98] sm:$0xff]  ;;  %v329_v17 = vld [vmem:[%s11574_s14 + $0xb0] sm:$0xff]  ;;  %v327_v18 = vld [vmem:[%s11574_s14 + $0xa0] sm:$0xff] }
  0x12   : > { %361 = vperm.xlu0 %10313, %v353_v5   ;;  %v381_v19 = vand.u32 %v376_v8, %v350_v10  ;;  %v347_v20 = vpack.c.bf16 %v329_v17, %v326_v16  ;;  %v330_v21 = vld [vmem:[%s11574_s14 + $0xb8] sm:$0xff]  ;;  %v325_v22 = vld [vmem:[%s11574_s14 + $0x90] sm:$0xff]  ;;  %v328_v23 = vld [vmem:[%s11574_s14 + $0xa8] sm:$0xff] }
  0x13   : > { %v384_v24 = vand.u32 %v376_v8, %v351_v14  ;;  %v378_v25 = vand.u32 %v376_v8, %v349_v15  ;;  %v320_v26 = vld [vmem:[%s11574_s14 + $0x68] sm:$0xff]  ;;  %v323_v27 = vld [vmem:[%s11574_s14 + $0x80] sm:$0xff]  ;;  %v348_v28 = vpack.c.bf16 %v330_v21, %v327_v18  ;;  %v346_v29 = vpack.c.bf16 %v328_v23, %v325_v22  ;;  %v321_v30 = vld [vmem:[%s11574_s14 + $0x70] sm:$0xff] }
  0x14   : > { %392 = vmatprep.subr.bf16.mxu0 %v381_v19  ;;  %v344_v31 = vpack.c.bf16 %v323_v27, %v320_v26  ;;  %v324_v32 = vld [vmem:[%s11574_s14 + $0x88] sm:$0xff]  ;;  %v319_v33 = vld [vmem:[%s11574_s14 + $0x60] sm:$0xff]  ;;  %v322_v34 = vld [vmem:[%s11574_s14 + $0x78] sm:$0xff] }
  0x15   : > { %10122 = vmatpush3.bf16.msra.mxu1 %v384_v24  ;;  %393 = vmatpush1.bf16.msra.mxu0 %v378_v25  ;;  %v314_v35 = vld [vmem:[%s11574_s14 + $0x38] sm:$0xff]  ;;  %v317_v36 = vld [vmem:[%s11574_s14 + $0x50] sm:$0xff]  ;;  %v315_v37 = vld [vmem:[%s11574_s14 + $0x40] sm:$0xff]  ;;  %v345_v39 = vpack.c.bf16 %v324_v32, %v321_v30  ;;  %v343_v40 = vpack.c.bf16 %v322_v34, %v319_v33 }
  0x16   : > { %10123 = vmatprep.subr.bf16.mxu1 %v11498_v0  ;;  %394 = vmatprep.subr.bf16.mxu0 %v347_v20  ;;  %v318_v38 = vld [vmem:[%s11574_s14 + $0x58] sm:$0xff]  ;;  %v313_v41 = vld [vmem:[%s11574_s14 + $0x30] sm:$0xff]  ;;  %v341_v42 = vpack.c.bf16 %v317_v36, %v314_v35  ;;  %v316_v43 = vld [vmem:[%s11574_s14 + $0x48] sm:$0xff] }
  0x17   : > { %v308_v44 = vld [vmem:[%s11574_s14 + $0x8] sm:$0xff]  ;;  %v311_v45 = vld [vmem:[%s11574_s14 + $0x20] sm:$0xff]  ;;  %v309_v46 = vld [vmem:[%s11574_s14 + $0x10] sm:$0xff]  ;;  %v342_v48 = vpack.c.bf16 %v318_v38, %v315_v37  ;;  %v340_v49 = vpack.c.bf16 %v316_v43, %v313_v41 }
  0x18   : > { %v312_v47 = vld [vmem:[%s11574_s14 + $0x28] sm:$0xff]  ;;  %v307_v50 = vld [vmem:[%s11574_s14] sm:$0xff]  ;;  %v338_v51 = vpack.c.bf16 %v311_v45, %v308_v44  ;;  %v310_v52 = vld [vmem:[%s11574_s14 + $0x18] sm:$0xff]  ;;  %s303_s14 = scalar_lea.vmem %s14429_s8, %s8887_s11 }
  0x19   : > { %10124 = vmatpush3.bf16.msra.mxu1 %v348_v28  ;;  %395 = vmatpush1.bf16.msra.mxu0 %v346_v29  ;;  %v339_v53 = vpack.c.bf16 %v312_v47, %v309_v46  ;;  %v337_v54 = vpack.c.bf16 %v310_v52, %v307_v50  ;;  %v10321_v61 = vld [vmem:[%s14424_s3 + $0x4b4] ss:$100 sps:$4 sm:$0xff]   ;;  %v10356_v63 = vld [vmem:[%s14424_s3 + $0xedc] ss:$100 sps:$4 sm:$0xff]   ;;  %v10324_v3 = vld [vmem:[%s14424_s3 + $0x3ec] ss:$100 sps:$4 sm:$0xff]  }
  0x1a   : > { %10125 = vmatprep.subr.bf16.mxu1 %v11498_v0  ;;  %396 = vmatprep.subr.bf16.mxu0 %v344_v31  ;;  %v10354_v4 = vld [vmem:[%s14424_s3 + $0xed8] ss:$100 sps:$4 sm:$0xff]   ;;  %v10322_v6 = vld [vmem:[%s14424_s3 + $0x3e8] ss:$100 sps:$4 sm:$0xff]   ;;  %v10360_v7 = vld [vmem:[%s14424_s3 + $0xe10] ss:$100 sps:$4 sm:$0xff]  }
  0x1b   : > { %v10362_v5 = vld [vmem:[%s14424_s3 + $0xe14] ss:$100 sps:$4 sm:$0xff]   ;;  %v10327_v8 = vld [vmem:[%s14424_s3 + $0x324] ss:$100 sps:$4 sm:$0xff]   ;;  %v10330_v10 = vld [vmem:[%s14424_s3 + $0x25c] ss:$100 sps:$4 sm:$0xff]  }
  0x1c   : > { %v10325_v9 = vld [vmem:[%s14424_s3 + $0x320] ss:$100 sps:$4 sm:$0xff]   ;;  %v10328_v11 = vld [vmem:[%s14424_s3 + $0x258] ss:$100 sps:$4 sm:$0xff]   ;;  %v10331_v13 = vld [vmem:[%s14424_s3 + $0x190] ss:$100 sps:$4 sm:$0xff]  }
  0x1d   : > { %10126 = vmatpush3.bf16.msra.mxu1 %v345_v39  ;;  %397 = vmatpush1.bf16.msra.mxu0 %v343_v40  ;;  %v10333_v12 = vld [vmem:[%s14424_s3 + $0x194] ss:$100 sps:$4 sm:$0xff]   ;;  %v10336_v14 = vld [vmem:[%s14424_s3 + $0xcc] ss:$100 sps:$4 sm:$0xff]   ;;  %v10339_v16 = vld [vmem:[%s14424_s3 + $0x4] ss:$100 sps:$4 sm:$0xff]  }
  0x1e   : > { %10127 = vmatprep.subr.bf16.mxu1 %v11498_v0  ;;  %398 = vmatprep.subr.bf16.mxu0 %v341_v42  ;;  %v10334_v15 = vld [vmem:[%s14424_s3 + $0xc8] ss:$100 sps:$4 sm:$0xff]   ;;  %v10337_v17 = vld [vmem:[%s14424_s3] ss:$100 sps:$4 sm:$0xff]   ;;  %v10340_v19 = vld [vmem:[%s14424_s3 + $0xbb8] ss:$100 sps:$4 sm:$0xff]  }
  0x1f   : > { %v10342_v18 = vld [vmem:[%s14424_s3 + $0xbbc] ss:$100 sps:$4 sm:$0xff]   ;;  %v10345_v20 = vld [vmem:[%s14424_s3 + $0xaf4] ss:$100 sps:$4 sm:$0xff]   ;;  %v10348_v22 = vld [vmem:[%s14424_s3 + $0xa2c] ss:$100 sps:$4 sm:$0xff]  }
  0x20   : > { %v10343_v21 = vld [vmem:[%s14424_s3 + $0xaf0] ss:$100 sps:$4 sm:$0xff]   ;;  %v10346_v23 = vld [vmem:[%s14424_s3 + $0xa28] ss:$100 sps:$4 sm:$0xff]   ;;  %v10351_v25 = vld [vmem:[%s14424_s3 + $0x960] ss:$100 sps:$4 sm:$0xff]  }
  0x21   : > { %10128 = vmatpush3.bf16.msra.mxu1 %v342_v48  ;;  %399 = vmatpush1.bf16.msra.mxu0 %v340_v49  ;;  %v10353_v24 = vld [vmem:[%s14424_s3 + $0x964] ss:$100 sps:$4 sm:$0xff]   ;;  %v10359_v26 = vld [vmem:[%s14424_s3 + $0x89c] ss:$100 sps:$4 sm:$0xff]   ;;  %v10365_v28 = vld [vmem:[%s14424_s3 + $0x7d4] ss:$100 sps:$4 sm:$0xff]  }
  0x22   : > { %10129 = vmatprep.subr.bf16.mxu1 %v11498_v0  ;;  %400 = vmatprep.subr.bf16.mxu0 %v338_v51  ;;  %v10357_v27 = vld [vmem:[%s14424_s3 + $0x898] ss:$100 sps:$4 sm:$0xff]   ;;  %v10368_v29 = vld [vmem:[%s14424_s3 + $0xd4c] ss:$100 sps:$4 sm:$0xff]   ;;  %v10374_v33 = vld [vmem:[%s14424_s3 + $0xc84] ss:$100 sps:$4 sm:$0xff]  }
  0x23   : > { %v10363_v30 = vld [vmem:[%s14424_s3 + $0x7d0] ss:$100 sps:$4 sm:$0xff]   ;;  %v10366_v31 = vld [vmem:[%s14424_s3 + $0xd48] ss:$100 sps:$4 sm:$0xff]   ;;  %v10372_v35 = vld [vmem:[%s14424_s3 + $0xc80] ss:$100 sps:$4 sm:$0xff]  }
  0x24   : > { %v10371_v32 = vld [vmem:[%s14424_s3 + $0x70c] ss:$100 sps:$4 sm:$0xff]   ;;  %v10377_v36 = vld [vmem:[%s14424_s3 + $0x644] ss:$100 sps:$4 sm:$0xff]  }
  0x25   : > { %10130 = vmatpush3.bf16.msra.mxu1 %v339_v53  ;;  %401 = vmatpush1.bf16.msra.mxu0 %v337_v54  ;;  %v10369_v34 = vld [vmem:[%s14424_s3 + $0x708] ss:$100 sps:$4 sm:$0xff]   ;;  %v10375_v38 = vld [vmem:[%s14424_s3 + $0x640] ss:$100 sps:$4 sm:$0xff]  }
  0x26   : > { %3675 = vmatprep.subr.bf16.mxu0 %v10318_v55  ;;  %9416 = vmatprep.subr.msk.bf16.mxu1 %vm3599_vm3, %v9392_v58  ;;  %v10380_v37 = vld [vmem:[%s14424_s3 + $0x584] ss:$100 sps:$4 sm:$0xff]  }
  0x27   : > { %v1000_v39 = vld [vmem:[%s14424_s3 + $0xfa8] sm:$0x33] }
  0x28   : > { %10132 = vmatmul.mubr.msk.bf16.vlgmr.msra.gmra.mxu1 %vm369_vm4, %v10315_v57  ;;  %8889 = vmatmul.mubr.msk.bf16.vlgmr.msra.gmra.mxu0 %vm369_vm4, %v10315_v57  ;;  %v9394_v40 = vcombine.high %v1000_v39, %v1000_v39 }
  0x29   : > { %3676 = vmatpush1.bf16.msra.mxu0 %v10316_v60  ;;  %3725 = vmatpush1.bf16.msra.mxu1 %v3601_v62  ;;  %v10378_v60 = vld [vmem:[%s14424_s3 + $0x580] ss:$100 sps:$4 sm:$0xff]  }
  0x2a   : > { %3677 = vmatprep.subr.bf16.mxu0 %v10321_v61  ;;  %3726 = vmatprep.subr.bf16.mxu1 %v10356_v63  ;;  %v9393_v61 = vcombine.low %v1000_v39, %v1000_v39  ;;  %v10431_v39 = vld [vmem:[%s14424_s3 + $0x330] ss:$100 sps:$4 sm:$0xff]  }
  0x2b   : > { %3750 = vmatprep.mubr.bf16.mxu1 %v11500_v1 }
  0x2d   : > { %3678 = vmatpush1.bf16.msra.mxu0 %v10319_v2  ;;  %3727 = vmatpush1.bf16.msra.mxu1 %v10354_v4  ;;  %v10383_v4 = vld [vmem:[%s14424_s3 + $0x4bc] ss:$100 sps:$4 sm:$0xff]  }
  0x2e   : > { %3679 = vmatprep.subr.bf16.mxu0 %v10324_v3  ;;  %3728 = vmatprep.subr.bf16.mxu1 %v10362_v5  ;;  %v10381_v5 = vld [vmem:[%s14424_s3 + $0x4b8] ss:$100 sps:$4 sm:$0xff]  }
  0x31   : > { %3680 = vmatpush1.bf16.msra.mxu0 %v10322_v6  ;;  %3729 = vmatpush1.bf16.msra.mxu1 %v10360_v7 }
  0x32   : > { %3681 = vmatprep.subr.bf16.mxu0 %v10327_v8  ;;  %3730 = vmatprep.subr.bf16.mxu1 %v10368_v29  ;;  %v3607_v8 = vsel %vm3599_vm3, %v9393_v61, 0  ;;  %v10418_v29 = vld [vmem:[%s14424_s3 + $0xc] ss:$100 sps:$4 sm:$0xff]  }
  0x33   : > { %v10466_v61 = vld [vmem:[%s14424_s3 + $0x64c] ss:$100 sps:$4 sm:$0xff]  }
  0x35   : > { %3682 = vmatpush1.bf16.msra.mxu0 %v10325_v9  ;;  %3731 = vmatpush1.bf16.msra.mxu1 %v10366_v31  ;;  %v10391_v9 = vld [vmem:[%s14424_s3 + $0xee4] ss:$100 sps:$4 sm:$0xff]  }
  0x36   : > { %3683 = vmatprep.subr.bf16.mxu0 %v10330_v10  ;;  %3732 = vmatprep.subr.bf16.mxu1 %v10374_v33  ;;  %v10388_v10 = vld [vmem:[%s14424_s3 + $0x3f4] ss:$100 sps:$4 sm:$0xff]   ;;  %v10419_v31 = vld [vmem:[%s14424_s3 + $0x4c0] ss:$100 sps:$4 sm:$0xff]  }
  0x37   : > { %v10424_v33 = vld [vmem:[%s14424_s3 + $0xbc4] ss:$100 sps:$4 sm:$0xff]  }
  0x39   : > { %3684 = vmatpush1.bf16.msra.mxu0 %v10328_v11  ;;  %3733 = vmatpush1.bf16.msra.mxu1 %v10372_v35  ;;  %v10389_v11 = vld [vmem:[%s14424_s3 + $0xee0] ss:$100 sps:$4 sm:$0xff]   ;;  %v10425_v35 = vld [vmem:[%s14424_s3 + $0x3f8] ss:$100 sps:$4 sm:$0xff]  }
  0x3a   : > { %3685 = vmatprep.subr.bf16.mxu0 %v10333_v12  ;;  %3761 = vmatprep.subr.bf16.mxu1 %v10380_v37  ;;  %v10386_v12 = vld [vmem:[%s14424_s3 + $0x3f0] ss:$100 sps:$4 sm:$0xff]   ;;  %v10430_v37 = vld [vmem:[%s14424_s3 + $0xafc] ss:$100 sps:$4 sm:$0xff]  }
  0x3d   : > { %3686 = vmatpush1.bf16.msra.mxu0 %v10331_v13  ;;  %v10397_v13 = vld [vmem:[%s14424_s3 + $0xe1c] ss:$100 sps:$4 sm:$0xff]  }
  0x3e   : > { %3687 = vmatprep.subr.bf16.mxu0 %v10336_v14  ;;  %v10394_v14 = vld [vmem:[%s14424_s3 + $0x32c] ss:$100 sps:$4 sm:$0xff]  }
  0x41   : > { %3688 = vmatpush1.bf16.msra.mxu0 %v10334_v15  ;;  %v10395_v15 = vld [vmem:[%s14424_s3 + $0xe18] ss:$100 sps:$4 sm:$0xff]  }
  0x42   : > { %3689 = vmatprep.subr.bf16.mxu0 %v10339_v16  ;;  %v10392_v16 = vld [vmem:[%s14424_s3 + $0x328] ss:$100 sps:$4 sm:$0xff]  }
  0x45   : > { %3690 = vmatpush1.bf16.msra.mxu0 %v10337_v17  ;;  %v10403_v17 = vld [vmem:[%s14424_s3 + $0xd54] ss:$100 sps:$4 sm:$0xff]  }
  0x46   : > { %3691 = vmatprep.subr.bf16.mxu0 %v10342_v18  ;;  %v10400_v18 = vld [vmem:[%s14424_s3 + $0x264] ss:$100 sps:$4 sm:$0xff]  }
  0x49   : > { %3692 = vmatpush2.bf16.msra.mxu0 %v10340_v19  ;;  %v10401_v19 = vld [vmem:[%s14424_s3 + $0xd50] ss:$100 sps:$4 sm:$0xff]  }
  0x4a   : > { %3693 = vmatprep.subr.bf16.mxu0 %v10345_v20  ;;  %v10398_v20 = vld [vmem:[%s14424_s3 + $0x260] ss:$100 sps:$4 sm:$0xff]  }
  0x4d   : > { %3694 = vmatpush2.bf16.msra.mxu0 %v10343_v21  ;;  %v10409_v21 = vld [vmem:[%s14424_s3 + $0xc8c] ss:$100 sps:$4 sm:$0xff]  }
  0x4e   : > { %3695 = vmatprep.subr.bf16.mxu0 %v10348_v22  ;;  %v10406_v22 = vld [vmem:[%s14424_s3 + $0x19c] ss:$100 sps:$4 sm:$0xff]  }
  0x51   : > { %3696 = vmatpush2.bf16.msra.mxu0 %v10346_v23  ;;  %v10407_v23 = vld [vmem:[%s14424_s3 + $0xc88] ss:$100 sps:$4 sm:$0xff]  }
  0x52   : > { %3697 = vmatprep.subr.bf16.mxu0 %v10353_v24  ;;  %v10404_v24 = vld [vmem:[%s14424_s3 + $0x198] ss:$100 sps:$4 sm:$0xff]  }
  0x55   : > { %3698 = vmatpush2.bf16.msra.mxu0 %v10351_v25  ;;  %v10415_v25 = vld [vmem:[%s14424_s3 + $0x58c] ss:$100 sps:$4 sm:$0xff]  }
  0x56   : > { %3699 = vmatprep.subr.bf16.mxu0 %v10359_v26  ;;  %v10412_v26 = vld [vmem:[%s14424_s3 + $0xd4] ss:$100 sps:$4 sm:$0xff]  }
  0x59   : > { %3700 = vmatpush2.bf16.msra.mxu0 %v10357_v27  ;;  %v10413_v27 = vld [vmem:[%s14424_s3 + $0x588] ss:$100 sps:$4 sm:$0xff]  }
  0x5a   : > { %3701 = vmatprep.subr.bf16.mxu0 %v10365_v28  ;;  %v10410_v28 = vld [vmem:[%s14424_s3 + $0xd0] ss:$100 sps:$4 sm:$0xff]  }
  0x5d   : > { %3702 = vmatpush2.bf16.msra.mxu0 %v10363_v30  ;;  %v10421_v30 = vld [vmem:[%s14424_s3 + $0x4c4] ss:$100 sps:$4 sm:$0xff]  }
  0x5e   : > { %3703 = vmatprep.subr.bf16.mxu0 %v10371_v32  ;;  %v10416_v32 = vld [vmem:[%s14424_s3 + $0x8] ss:$100 sps:$4 sm:$0xff]  }
  0x61   : > { %3704 = vmatpush2.bf16.msra.mxu0 %v10369_v34  ;;  %v10427_v34 = vld [vmem:[%s14424_s3 + $0x3fc] ss:$100 sps:$4 sm:$0xff]  }
  0x62   : > { %3705 = vmatprep.subr.bf16.mxu0 %v10377_v36  ;;  %v10422_v36 = vld [vmem:[%s14424_s3 + $0xbc0] ss:$100 sps:$4 sm:$0xff]  }
  0x65   : > { %3706 = vmatpush2.bf16.msra.mxu0 %v10375_v38  ;;  %v10433_v38 = vld [vmem:[%s14424_s3 + $0x334] ss:$100 sps:$4 sm:$0xff]  }
  0x66   : > { %9418 = vmatprep.subr.msk.bf16.mxu0 %vm3599_vm3, %v9394_v40  ;;  %v10428_v40 = vld [vmem:[%s14424_s3 + $0xaf8] ss:$100 sps:$4 sm:$0xff]  }
  0x89   : > { %v357_v41 = vpop.permute.xlu0 %356 }
  0x8d   : > { %v362_v46 = vpop.permute.xlu0 %361 }
  0xe8   : > { %v463_v42 = vpop.f32.mrf.mxu1  ;;  %v420_v43 = vpop.f32.mrf.mxu0 }
  0xe9   : > { %v464_v47 = vadd.f32 %v463_v42, %v357_v41  ;;  %v421_v50 = vadd.f32 %v420_v43, %v357_v41  ;;  %v10439_v42 = vld [vmem:[%s14424_s3 + $0x26c] ss:$100 sps:$4 sm:$0xff]  }
  0xea   : > { %v10133_v44 = vpop.f32.mrf.mxu1  ;;  %v422_v45 = vpop.f32.mrf.mxu0  ;;  %v10437_v43 = vld [vmem:[%s14424_s3 + $0x268] ss:$100 sps:$4 sm:$0xff]  }
  0xeb   : > { %v423_v51 = vadd.f32 %v422_v45, %v357_v41  ;;  %v472_v56 = vmax.f32 %v464_v47, 0.0  ;;  %v470_v62 = vmax.f32 %v421_v50, 0.0  ;;  %v10436_v41 = vld [vmem:[%s14424_s3 + $0xa34] ss:$100 sps:$4 sm:$0xff]   ;;  %v10445_v45 = vld [vmem:[%s14424_s3 + $0x1a4] ss:$100 sps:$4 sm:$0xff]  }
  0xec   : > { %v466_v48 = vpop.f32.mrf.mxu1  ;;  %v424_v49 = vpop.f32.mrf.mxu0  ;;  %v10434_v44 = vld [vmem:[%s14424_s3 + $0xa30] ss:$100 sps:$4 sm:$0xff]   ;;  %v10440_v47 = vld [vmem:[%s14424_s3 + $0x968] ss:$100 sps:$4 sm:$0xff]  }
  0xed   : > { %v467_v52 = vadd.f32 %v466_v48, %v362_v46  ;;  %v425_v53 = vadd.f32 %v424_v49, %v362_v46  ;;  %v471_v63 = vmax.f32 %v423_v51, 0.0  ;;  %v10443_v48 = vld [vmem:[%s14424_s3 + $0x1a0] ss:$100 sps:$4 sm:$0xff]   ;;  %v10449_v51 = vld [vmem:[%s14424_s3 + $0xd8] ss:$100 sps:$4 sm:$0xff]  }
  0xee   : > { %v10134_v54 = vpop.f32.mrf.mxu1  ;;  %v426_v55 = vpop.f32.mrf.mxu0  ;;  %v10451_v49 = vld [vmem:[%s14424_s3 + $0xdc] ss:$100 sps:$4 sm:$0xff]   ;;  %v10448_v50 = vld [vmem:[%s14424_s3 + $0x8a4] ss:$100 sps:$4 sm:$0xff]  }
  0xef   : > { %v475_v57 = vmax.f32 %v467_v52, 0.0  ;;  %v427_v58 = vadd.f32 %v426_v55, %v362_v46  ;;  %v473_v59 = vmax.f32 %v425_v53, 0.0  ;;  %v10442_v46 = vld [vmem:[%s14424_s3 + $0x96c] ss:$100 sps:$4 sm:$0xff]   ;;  %v10446_v52 = vld [vmem:[%s14424_s3 + $0x8a0] ss:$100 sps:$4 sm:$0xff]  }
  0xf0   : > { %v10457_v53 = vld [vmem:[%s14424_s3 + $0x14] ss:$100 sps:$4 sm:$0xff]   ;;  %v10454_v54 = vld [vmem:[%s14424_s3 + $0x7dc] ss:$100 sps:$4 sm:$0xff]  }
  0xf1   : > { %v11749_v2 = vpack.c.bf16 %v475_v57, %v472_v56  ;;  %v474_v3 = vmax.f32 %v427_v58, 0.0  ;;  %v11761_v7 = vpack.c.bf16 %v473_v59, %v470_v62  ;;  %v10455_v55 = vld [vmem:[%s14424_s3 + $0x10] ss:$100 sps:$4 sm:$0xff]   ;;  %v10452_v56 = vld [vmem:[%s14424_s3 + $0x7d8] ss:$100 sps:$4 sm:$0xff]  }
  0xf2   : > { %v10463_v57 = vld [vmem:[%s14424_s3 + $0xbcc] ss:$100 sps:$4 sm:$0xff]   ;;  %v10460_v58 = vld [vmem:[%s14424_s3 + $0x714] ss:$100 sps:$4 sm:$0xff]   ;;  %v10469_v62 = vld [vmem:[%s14424_s3 + $0xb04] ss:$100 sps:$4 sm:$0xff]  }
  0xf3   : > { %v11757_v6 = vpack.c.bf16 %v474_v3, %v471_v63  ;;  %9417 = vmatmul.mubr.msk.bf16.vlgmr.msra.gmra.mxu1 %vm3595_vm5, %v11749_v2  ;;  %v10461_v59 = vld [vmem:[%s14424_s3 + $0xbc8] ss:$100 sps:$4 sm:$0xff]   ;;  %v10467_v63 = vld [vmem:[%s14424_s3 + $0xb00] ss:$100 sps:$4 sm:$0xff]   ;;  %v1001_v3 = vld [vmem:[%s14424_s3 + $0xfb0] sm:$0x33] }
  0xf4   : > { %3762 = vmatpush1.bf16.msra.mxu1 %v10378_v60  ;;  %v10458_v60 = vld [vmem:[%s14424_s3 + $0x710] ss:$100 sps:$4 sm:$0xff]  }
  0xf5   : > { %3707 = vmatprep.mubr.bf16.mxu0 %v11757_v6  ;;  %3763 = vmatprep.subr.bf16.mxu1 %v10383_v4  ;;  %v10464_v4 = vld [vmem:[%s14424_s3 + $0x648] ss:$100 sps:$4 sm:$0xff]  }
  0xf6   : > { %3793 = vmatprep.mubr.bf16.mxu1 %v11757_v6  ;;  %3708 = vmatmul.mubr.bf16.vlgmr.msra.gmra.mxu0 %v11761_v7 }
  0xf7   : > { %3811 = vmatpush1.bf16.msra.mxu0 %v3607_v8  ;;  %3836 = vmatprep.mubr.bf16.mxu0 %v11500_v1  ;;  %v10470_v8 = vld [vmem:[%s14424_s3 + $0xa38] ss:$100 sps:$4 sm:$0xff]  }
  0xf8   : > { %3764 = vmatpush1.bf16.msra.mxu1 %v10381_v5  ;;  %3812 = vmatprep.subr.bf16.mxu0 %v10391_v9  ;;  %v10472_v5 = vld [vmem:[%s14424_s3 + $0xa3c] ss:$100 sps:$4 sm:$0xff]   ;;  %v9396_v9 = vcombine.high %v1001_v3, %v1001_v3 }
  0xf9   : > { %3765 = vmatprep.subr.bf16.mxu1 %v10388_v10  ;;  %v9395_v10 = vcombine.low %v1001_v3, %v1001_v3  ;;  %v10549_v3 = vld [vmem:[%s14424_s3 + $0x408] ss:$100 sps:$4 sm:$0xff]  }
  0xfb   : > { %3813 = vmatpush1.bf16.msra.mxu0 %v10389_v11  ;;  %v10477_v11 = vld [vmem:[%s14424_s3 + $0x974] ss:$100 sps:$4 sm:$0xff]  }
  0xfc   : > { %3766 = vmatpush1.bf16.msra.mxu1 %v10386_v12  ;;  %3814 = vmatprep.subr.bf16.mxu0 %v10397_v13  ;;  %v3613_v12 = vsel %vm3599_vm3, %v9395_v10, 0  ;;  %v10475_v13 = vld [vmem:[%s14424_s3 + $0x970] ss:$100 sps:$4 sm:$0xff]   ;;  %v10552_v10 = vld [vmem:[%s14424_s3 + $0xb08] ss:$100 sps:$4 sm:$0xff]  }
  0xfd   : > { %3767 = vmatprep.subr.bf16.mxu1 %v10394_v14  ;;  %v10480_v14 = vld [vmem:[%s14424_s3 + $0xeec] ss:$100 sps:$4 sm:$0xff]  }
  0xff   : > { %3815 = vmatpush1.bf16.msra.mxu0 %v10395_v15  ;;  %v10478_v15 = vld [vmem:[%s14424_s3 + $0xee8] ss:$100 sps:$4 sm:$0xff]  }
 0x100   : > { %3768 = vmatpush1.bf16.msra.mxu1 %v10392_v16  ;;  %3816 = vmatprep.subr.bf16.mxu0 %v10403_v17  ;;  %v10483_v16 = vld [vmem:[%s14424_s3 + $0x8ac] ss:$100 sps:$4 sm:$0xff]  }
 0x101   : > { %3769 = vmatprep.subr.bf16.mxu1 %v10400_v18  ;;  %v10481_v17 = vld [vmem:[%s14424_s3 + $0x8a8] ss:$100 sps:$4 sm:$0xff]  }
 0x102   : > { %v10486_v18 = vld [vmem:[%s14424_s3 + $0xe24] ss:$100 sps:$4 sm:$0xff]  }
 0x103   : > { %3817 = vmatpush1.bf16.msra.mxu0 %v10401_v19  ;;  %v10484_v19 = vld [vmem:[%s14424_s3 + $0xe20] ss:$100 sps:$4 sm:$0xff]  }
 0x104   : > { %3770 = vmatpush1.bf16.msra.mxu1 %v10398_v20  ;;  %3818 = vmatprep.subr.bf16.mxu0 %v10409_v21  ;;  %v10489_v20 = vld [vmem:[%s14424_s3 + $0x7e4] ss:$100 sps:$4 sm:$0xff]  }
 0x105   : > { %3771 = vmatprep.subr.bf16.mxu1 %v10406_v22  ;;  %v10487_v21 = vld [vmem:[%s14424_s3 + $0x7e0] ss:$100 sps:$4 sm:$0xff]  }
 0x106   : > { %v10492_v22 = vld [vmem:[%s14424_s3 + $0xd5c] ss:$100 sps:$4 sm:$0xff]  }
 0x107   : > { %3819 = vmatpush1.bf16.msra.mxu0 %v10407_v23  ;;  %v10490_v23 = vld [vmem:[%s14424_s3 + $0xd58] ss:$100 sps:$4 sm:$0xff]  }
 0x108   : > { %3772 = vmatpush1.bf16.msra.mxu1 %v10404_v24  ;;  %3847 = vmatprep.subr.bf16.mxu0 %v10415_v25  ;;  %v10495_v24 = vld [vmem:[%s14424_s3 + $0x71c] ss:$100 sps:$4 sm:$0xff]   ;;  %v10498_v25 = vld [vmem:[%s14424_s3 + $0xc94] ss:$100 sps:$4 sm:$0xff]  }
 0x109   : > { %3773 = vmatprep.subr.bf16.mxu1 %v10412_v26  ;;  %v10493_v26 = vld [vmem:[%s14424_s3 + $0x718] ss:$100 sps:$4 sm:$0xff]  }
 0x10a   : > { %9419 = vmatmul.mubr.msk.bf16.vlgmr.msra.gmra.mxu0 %vm3595_vm5, %v11749_v2 }
 0x10b   : > { %3848 = vmatpush1.bf16.msra.mxu0 %v10413_v27  ;;  %3879 = vmatprep.mubr.bf16.mxu0 %v11757_v6  ;;  %v10496_v27 = vld [vmem:[%s14424_s3 + $0xc90] ss:$100 sps:$4 sm:$0xff]  }
 0x10c   : > { %3774 = vmatpush1.bf16.msra.mxu1 %v10410_v28  ;;  %3849 = vmatprep.subr.bf16.mxu0 %v10421_v30  ;;  %v10501_v28 = vld [vmem:[%s14424_s3 + $0x654] ss:$100 sps:$4 sm:$0xff]  }
 0x10d   : > { %3775 = vmatprep.subr.bf16.mxu1 %v10418_v29  ;;  %v10499_v29 = vld [vmem:[%s14424_s3 + $0x650] ss:$100 sps:$4 sm:$0xff]  }
 0x10e   : > { %v10504_v30 = vld [vmem:[%s14424_s3 + $0x594] ss:$100 sps:$4 sm:$0xff]  }
 0x10f   : > { %3850 = vmatpush1.bf16.msra.mxu0 %v10419_v31  ;;  %v1002_v31 = vld [vmem:[%s14424_s3 + $0xfb8] sm:$0x33] }
 0x110   : > { %3776 = vmatpush1.bf16.msra.mxu1 %v10416_v32  ;;  %3851 = vmatprep.subr.bf16.mxu0 %v10427_v34  ;;  %v10502_v32 = vld [vmem:[%s14424_s3 + $0x590] ss:$100 sps:$4 sm:$0xff]  }
 0x111   : > { %3777 = vmatprep.subr.bf16.mxu1 %v10424_v33  ;;  %v9397_v33 = vcombine.low %v1002_v31, %v1002_v31  ;;  %v10507_v34 = vld [vmem:[%s14424_s3 + $0x4cc] ss:$100 sps:$4 sm:$0xff]  }
 0x113   : > { %3852 = vmatpush1.bf16.msra.mxu0 %v10425_v35  ;;  %v9398_v35 = vcombine.high %v1002_v31, %v1002_v31  ;;  %v10590_v31 = vld [vmem:[%s14424_s3 + $0x65c] ss:$100 sps:$4 sm:$0xff]  }
 0x114   : > { %3778 = vmatpush2.bf16.msra.mxu1 %v10422_v36  ;;  %3853 = vmatprep.subr.bf16.mxu0 %v10433_v38  ;;  %v10505_v36 = vld [vmem:[%s14424_s3 + $0x4c8] ss:$100 sps:$4 sm:$0xff]   ;;  %v3619_v38 = vsel %vm3599_vm3, %v9397_v33, 0  ;;  %v10591_v33 = vld [vmem:[%s14424_s3 + $0xb10] ss:$100 sps:$4 sm:$0xff]  }
 0x115   : > { %3779 = vmatprep.subr.bf16.mxu1 %v10430_v37  ;;  %v10515_v37 = vld [vmem:[%s14424_s3 + $0xef4] ss:$100 sps:$4 sm:$0xff]  }
 0x117   : > { %3854 = vmatpush1.bf16.msra.mxu0 %v10431_v39  ;;  %v10512_v39 = vld [vmem:[%s14424_s3 + $0x404] ss:$100 sps:$4 sm:$0xff]  }
 0x118   : > { %3780 = vmatpush2.bf16.msra.mxu1 %v10428_v40  ;;  %3855 = vmatprep.subr.bf16.mxu0 %v10439_v42  ;;  %v10510_v40 = vld [vmem:[%s14424_s3 + $0x400] ss:$100 sps:$4 sm:$0xff]   ;;  %v10521_v42 = vld [vmem:[%s14424_s3 + $0xe2c] ss:$100 sps:$4 sm:$0xff]  }
 0x119   : > { %3781 = vmatprep.subr.bf16.mxu1 %v10436_v41  ;;  %v10513_v41 = vld [vmem:[%s14424_s3 + $0xef0] ss:$100 sps:$4 sm:$0xff]  }
 0x11b   : > { %3856 = vmatpush1.bf16.msra.mxu0 %v10437_v43  ;;  %v10518_v43 = vld [vmem:[%s14424_s3 + $0x33c] ss:$100 sps:$4 sm:$0xff]  }
 0x11c   : > { %3782 = vmatpush2.bf16.msra.mxu1 %v10434_v44  ;;  %3857 = vmatprep.subr.bf16.mxu0 %v10445_v45  ;;  %v10519_v44 = vld [vmem:[%s14424_s3 + $0xe28] ss:$100 sps:$4 sm:$0xff]   ;;  %v10516_v45 = vld [vmem:[%s14424_s3 + $0x338] ss:$100 sps:$4 sm:$0xff]  }
 0x11d   : > { %3783 = vmatprep.subr.bf16.mxu1 %v10442_v46  ;;  %v10527_v46 = vld [vmem:[%s14424_s3 + $0xd64] ss:$100 sps:$4 sm:$0xff]  }
 0x11f   : > { %3858 = vmatpush1.bf16.msra.mxu0 %v10443_v48  ;;  %v10525_v48 = vld [vmem:[%s14424_s3 + $0xd60] ss:$100 sps:$4 sm:$0xff]  }
 0x120   : > { %3784 = vmatpush2.bf16.msra.mxu1 %v10440_v47  ;;  %3859 = vmatprep.subr.bf16.mxu0 %v10451_v49  ;;  %v10524_v47 = vld [vmem:[%s14424_s3 + $0x274] ss:$100 sps:$4 sm:$0xff]  }
 0x121   : > { %3785 = vmatprep.subr.bf16.mxu1 %v10448_v50  ;;  %v10522_v49 = vld [vmem:[%s14424_s3 + $0x270] ss:$100 sps:$4 sm:$0xff]   ;;  %v10533_v50 = vld [vmem:[%s14424_s3 + $0xc9c] ss:$100 sps:$4 sm:$0xff]  }
 0x123   : > { %3860 = vmatpush1.bf16.msra.mxu0 %v10449_v51  ;;  %v10530_v51 = vld [vmem:[%s14424_s3 + $0x1ac] ss:$100 sps:$4 sm:$0xff]  }
 0x124   : > { %3786 = vmatpush2.bf16.msra.mxu1 %v10446_v52  ;;  %3861 = vmatprep.subr.bf16.mxu0 %v10457_v53  ;;  %v10531_v52 = vld [vmem:[%s14424_s3 + $0xc98] ss:$100 sps:$4 sm:$0xff]   ;;  %v10528_v53 = vld [vmem:[%s14424_s3 + $0x1a8] ss:$100 sps:$4 sm:$0xff]  }
 0x125   : > { %3787 = vmatprep.subr.bf16.mxu1 %v10454_v54  ;;  %v10539_v54 = vld [vmem:[%s14424_s3 + $0x59c] ss:$100 sps:$4 sm:$0xff]  }
 0x127   : > { %3862 = vmatpush1.bf16.msra.mxu0 %v10455_v55  ;;  %v10536_v55 = vld [vmem:[%s14424_s3 + $0xe4] ss:$100 sps:$4 sm:$0xff]  }
 0x128   : > { %3788 = vmatpush2.bf16.msra.mxu1 %v10452_v56  ;;  %3863 = vmatprep.subr.bf16.mxu0 %v10463_v57  ;;  %v10537_v56 = vld [vmem:[%s14424_s3 + $0x598] ss:$100 sps:$4 sm:$0xff]   ;;  %v10534_v57 = vld [vmem:[%s14424_s3 + $0xe0] ss:$100 sps:$4 sm:$0xff]  }
 0x129   : > { %3789 = vmatprep.subr.bf16.mxu1 %v10460_v58  ;;  %v10542_v58 = vld [vmem:[%s14424_s3 + $0x1c] ss:$100 sps:$4 sm:$0xff]  }
 0x12b   : > { %3864 = vmatpush2.bf16.msra.mxu0 %v10461_v59  ;;  %v10545_v59 = vld [vmem:[%s14424_s3 + $0x4d4] ss:$100 sps:$4 sm:$0xff]  }
 0x12c   : > { %3790 = vmatpush2.bf16.msra.mxu1 %v10458_v60  ;;  %3865 = vmatprep.subr.bf16.mxu0 %v10469_v62  ;;  %v10543_v60 = vld [vmem:[%s14424_s3 + $0x4d0] ss:$100 sps:$4 sm:$0xff]  }
 0x12d   : > { %3791 = vmatprep.subr.bf16.mxu1 %v10466_v61  ;;  %v10540_v61 = vld [vmem:[%s14424_s3 + $0x18] ss:$100 sps:$4 sm:$0xff]  }
 0x12e   : > { %v10548_v62 = vld [vmem:[%s14424_s3 + $0xbd4] ss:$100 sps:$4 sm:$0xff]  }
 0x12f   : > { %3866 = vmatpush2.bf16.msra.mxu0 %v10467_v63  ;;  %v10551_v63 = vld [vmem:[%s14424_s3 + $0x40c] ss:$100 sps:$4 sm:$0xff]  }
 0x130   : > { %3792 = vmatpush2.bf16.msra.mxu1 %v10464_v4  ;;  %3867 = vmatprep.subr.bf16.mxu0 %v10472_v5  ;;  %v10546_v4 = vld [vmem:[%s14424_s3 + $0xbd0] ss:$100 sps:$4 sm:$0xff]  }
 0x131   : > { %9420 = vmatprep.subr.msk.bf16.mxu1 %vm3599_vm3, %v9396_v9  ;;  %v10554_v5 = vld [vmem:[%s14424_s3 + $0xb0c] ss:$100 sps:$4 sm:$0xff]   ;;  %v10555_v9 = vld [vmem:[%s14424_s3 + $0x340] ss:$100 sps:$4 sm:$0xff]  }
 0x133   : > { %3794 = vmatmul.mubr.bf16.vlgmr.msra.gmra.mxu1 %v11761_v7  ;;  %3868 = vmatpush2.bf16.msra.mxu0 %v10470_v8  ;;  %v10557_v8 = vld [vmem:[%s14424_s3 + $0x344] ss:$100 sps:$4 sm:$0xff]  }
 0x134   : > { %3897 = vmatpush1.bf16.msra.mxu1 %v3613_v12  ;;  %3869 = vmatprep.subr.bf16.mxu0 %v10477_v11  ;;  %v10560_v11 = vld [vmem:[%s14424_s3 + $0xa44] ss:$100 sps:$4 sm:$0xff]   ;;  %v10563_v12 = vld [vmem:[%s14424_s3 + $0x27c] ss:$100 sps:$4 sm:$0xff]  }
 0x135   : > { %3898 = vmatprep.subr.bf16.mxu1 %v10480_v14  ;;  %3922 = vmatprep.mubr.bf16.mxu1 %v11500_v1  ;;  %v10558_v14 = vld [vmem:[%s14424_s3 + $0xa40] ss:$100 sps:$4 sm:$0xff]  }
 0x137   : > { %3870 = vmatpush2.bf16.msra.mxu0 %v10475_v13  ;;  %v10561_v13 = vld [vmem:[%s14424_s3 + $0x278] ss:$100 sps:$4 sm:$0xff]  }
 0x138   : > { %3899 = vmatpush1.bf16.msra.mxu1 %v10478_v15  ;;  %3871 = vmatprep.subr.bf16.mxu0 %v10483_v16  ;;  %v10569_v15 = vld [vmem:[%s14424_s3 + $0x1b4] ss:$100 sps:$4 sm:$0xff]   ;;  %v10566_v16 = vld [vmem:[%s14424_s3 + $0x97c] ss:$100 sps:$4 sm:$0xff]  }
 0x139   : > { %3900 = vmatprep.subr.bf16.mxu1 %v10486_v18  ;;  %v10567_v18 = vld [vmem:[%s14424_s3 + $0x1b0] ss:$100 sps:$4 sm:$0xff]  }
 0x13b   : > { %3872 = vmatpush2.bf16.msra.mxu0 %v10481_v17  ;;  %v10564_v17 = vld [vmem:[%s14424_s3 + $0x978] ss:$100 sps:$4 sm:$0xff]  }
 0x13c   : > { %3901 = vmatpush1.bf16.msra.mxu1 %v10484_v19  ;;  %3873 = vmatprep.subr.bf16.mxu0 %v10489_v20  ;;  %v10572_v19 = vld [vmem:[%s14424_s3 + $0x8b4] ss:$100 sps:$4 sm:$0xff]   ;;  %v10575_v20 = vld [vmem:[%s14424_s3 + $0xec] ss:$100 sps:$4 sm:$0xff]  }
 0x13d   : > { %3902 = vmatprep.subr.bf16.mxu1 %v10492_v22  ;;  %v10570_v22 = vld [vmem:[%s14424_s3 + $0x8b0] ss:$100 sps:$4 sm:$0xff]  }
 0x13f   : > { %3874 = vmatpush2.bf16.msra.mxu0 %v10487_v21  ;;  %v10573_v21 = vld [vmem:[%s14424_s3 + $0xe8] ss:$100 sps:$4 sm:$0xff]  }
 0x140   : > { %3903 = vmatpush1.bf16.msra.mxu1 %v10490_v23  ;;  %3875 = vmatprep.subr.bf16.mxu0 %v10495_v24  ;;  %v10581_v23 = vld [vmem:[%s14424_s3 + $0x24] ss:$100 sps:$4 sm:$0xff]   ;;  %v10578_v24 = vld [vmem:[%s14424_s3 + $0x7ec] ss:$100 sps:$4 sm:$0xff]  }
 0x141   : > { %3904 = vmatprep.subr.bf16.mxu1 %v10498_v25  ;;  %v10576_v25 = vld [vmem:[%s14424_s3 + $0x7e8] ss:$100 sps:$4 sm:$0xff]  }
 0x143   : > { %3876 = vmatpush2.bf16.msra.mxu0 %v10493_v26  ;;  %v10579_v26 = vld [vmem:[%s14424_s3 + $0x20] ss:$100 sps:$4 sm:$0xff]  }
 0x144   : > { %3905 = vmatpush1.bf16.msra.mxu1 %v10496_v27  ;;  %3877 = vmatprep.subr.bf16.mxu0 %v10501_v28  ;;  %v10587_v27 = vld [vmem:[%s14424_s3 + $0xbdc] ss:$100 sps:$4 sm:$0xff]   ;;  %v10584_v28 = vld [vmem:[%s14424_s3 + $0x724] ss:$100 sps:$4 sm:$0xff]  }
 0x145   : > { %3933 = vmatprep.subr.bf16.mxu1 %v10504_v30  ;;  %v10585_v30 = vld [vmem:[%s14424_s3 + $0xbd8] ss:$100 sps:$4 sm:$0xff]  }
 0x147   : > { %9421 = vmatmul.mubr.msk.bf16.vlgmr.msra.gmra.mxu1 %vm3595_vm5, %v11749_v2  ;;  %3878 = vmatpush2.bf16.msra.mxu0 %v10499_v29  ;;  %v10582_v29 = vld [vmem:[%s14424_s3 + $0x720] ss:$100 sps:$4 sm:$0xff]  }
 0x148   : > { %3934 = vmatpush1.bf16.msra.mxu1 %v10502_v32  ;;  %3965 = vmatprep.mubr.bf16.mxu1 %v11757_v6  ;;  %v10593_v32 = vld [vmem:[%s14424_s3 + $0xb14] ss:$100 sps:$4 sm:$0xff]  }
 0x149   : > { %3935 = vmatprep.subr.bf16.mxu1 %v10507_v34  ;;  %9422 = vmatprep.subr.msk.bf16.mxu0 %vm3599_vm3, %v9398_v35  ;;  %v1003_v34 = vld [vmem:[%s14424_s3 + $0xfc0] sm:$0x33]  ;;  %v10588_v35 = vld [vmem:[%s14424_s3 + $0x658] ss:$100 sps:$4 sm:$0xff]  }
 0x14a   : > { %3880 = vmatmul.mubr.bf16.vlgmr.msra.gmra.mxu0 %v11761_v7 }
 0x14b   : > { %3983 = vmatpush1.bf16.msra.mxu0 %v3619_v38  ;;  %4008 = vmatprep.mubr.bf16.mxu0 %v11500_v1  ;;  %v9400_v38 = vcombine.high %v1003_v34, %v1003_v34 }
 0x14c   : > { %3936 = vmatpush1.bf16.msra.mxu1 %v10505_v36  ;;  %3984 = vmatprep.subr.bf16.mxu0 %v10515_v37  ;;  %v10596_v36 = vld [vmem:[%s14424_s3 + $0xa4c] ss:$100 sps:$4 sm:$0xff]  }
 0x14d   : > { %3937 = vmatprep.subr.bf16.mxu1 %v10512_v39  ;;  %v10594_v37 = vld [vmem:[%s14424_s3 + $0xa48] ss:$100 sps:$4 sm:$0xff]   ;;  %v9399_v39 = vcombine.low %v1003_v34, %v1003_v34  ;;  %v10673_v34 = vld [vmem:[%s14424_s3 + $0x418] ss:$100 sps:$4 sm:$0xff]  }
 0x14f   : > { %3985 = vmatpush1.bf16.msra.mxu0 %v10513_v41  ;;  %v3625_v41 = vsel %vm3599_vm3, %v9399_v39, 0  ;;  %v10676_v39 = vld [vmem:[%s14424_s3 + $0xb18] ss:$100 sps:$4 sm:$0xff]  }
 0x150   : > { %3938 = vmatpush1.bf16.msra.mxu1 %v10510_v40  ;;  %3986 = vmatprep.subr.bf16.mxu0 %v10521_v42  ;;  %v10601_v40 = vld [vmem:[%s14424_s3 + $0x984] ss:$100 sps:$4 sm:$0xff]  }
 0x151   : > { %3939 = vmatprep.subr.bf16.mxu1 %v10518_v43  ;;  %v10599_v42 = vld [vmem:[%s14424_s3 + $0x980] ss:$100 sps:$4 sm:$0xff]  }
 0x152   : > { %v10604_v43 = vld [vmem:[%s14424_s3 + $0xefc] ss:$100 sps:$4 sm:$0xff]  }
 0x153   : > { %3987 = vmatpush1.bf16.msra.mxu0 %v10519_v44  ;;  %v10602_v44 = vld [vmem:[%s14424_s3 + $0xef8] ss:$100 sps:$4 sm:$0xff]  }
 0x154   : > { %3940 = vmatpush1.bf16.msra.mxu1 %v10516_v45  ;;  %3988 = vmatprep.subr.bf16.mxu0 %v10527_v46  ;;  %v10607_v45 = vld [vmem:[%s14424_s3 + $0x8bc] ss:$100 sps:$4 sm:$0xff]  }
 0x155   : > { %3941 = vmatprep.subr.bf16.mxu1 %v10524_v47  ;;  %v10605_v46 = vld [vmem:[%s14424_s3 + $0x8b8] ss:$100 sps:$4 sm:$0xff]  }
 0x156   : > { %v10610_v47 = vld [vmem:[%s14424_s3 + $0xe34] ss:$100 sps:$4 sm:$0xff]  }
 0x157   : > { %3989 = vmatpush1.bf16.msra.mxu0 %v10525_v48  ;;  %v10608_v48 = vld [vmem:[%s14424_s3 + $0xe30] ss:$100 sps:$4 sm:$0xff]  }
 0x158   : > { %3942 = vmatpush1.bf16.msra.mxu1 %v10522_v49  ;;  %3990 = vmatprep.subr.bf16.mxu0 %v10533_v50  ;;  %v10613_v49 = vld [vmem:[%s14424_s3 + $0x7f4] ss:$100 sps:$4 sm:$0xff]  }
 0x159   : > { %3943 = vmatprep.subr.bf16.mxu1 %v10530_v51  ;;  %v10611_v50 = vld [vmem:[%s14424_s3 + $0x7f0] ss:$100 sps:$4 sm:$0xff]  }
 0x15a   : > { %v10616_v51 = vld [vmem:[%s14424_s3 + $0xd6c] ss:$100 sps:$4 sm:$0xff]  }
 0x15b   : > { %3991 = vmatpush1.bf16.msra.mxu0 %v10531_v52  ;;  %v10614_v52 = vld [vmem:[%s14424_s3 + $0xd68] ss:$100 sps:$4 sm:$0xff]  }
 0x15c   : > { %3944 = vmatpush1.bf16.msra.mxu1 %v10528_v53  ;;  %4019 = vmatprep.subr.bf16.mxu0 %v10539_v54  ;;  %v10619_v53 = vld [vmem:[%s14424_s3 + $0x72c] ss:$100 sps:$4 sm:$0xff]   ;;  %v10622_v54 = vld [vmem:[%s14424_s3 + $0xca4] ss:$100 sps:$4 sm:$0xff]  }
 0x15d   : > { %3945 = vmatprep.subr.bf16.mxu1 %v10536_v55  ;;  %v10617_v55 = vld [vmem:[%s14424_s3 + $0x728] ss:$100 sps:$4 sm:$0xff]  }
 0x15e   : > { %9423 = vmatmul.mubr.msk.bf16.vlgmr.msra.gmra.mxu0 %vm3595_vm5, %v11749_v2 }
 0x15f   : > { %4020 = vmatpush1.bf16.msra.mxu0 %v10537_v56  ;;  %4051 = vmatprep.mubr.bf16.mxu0 %v11757_v6  ;;  %v10620_v56 = vld [vmem:[%s14424_s3 + $0xca0] ss:$100 sps:$4 sm:$0xff]  }
 0x160   : > { %3946 = vmatpush1.bf16.msra.mxu1 %v10534_v57  ;;  %4021 = vmatprep.subr.bf16.mxu0 %v10545_v59  ;;  %v10625_v57 = vld [vmem:[%s14424_s3 + $0x664] ss:$100 sps:$4 sm:$0xff]  }
 0x161   : > { %3947 = vmatprep.subr.bf16.mxu1 %v10542_v58  ;;  %v10628_v58 = vld [vmem:[%s14424_s3 + $0x5a4] ss:$100 sps:$4 sm:$0xff]  }
 0x162   : > { %v1004_v59 = vld [vmem:[%s14424_s3 + $0xfc8] sm:$0x33] }
 0x163   : > { %4022 = vmatpush1.bf16.msra.mxu0 %v10543_v60  ;;  %v10623_v60 = vld [vmem:[%s14424_s3 + $0x660] ss:$100 sps:$4 sm:$0xff]  }
 0x164   : > { %3948 = vmatpush1.bf16.msra.mxu1 %v10540_v61  ;;  %4023 = vmatprep.subr.bf16.mxu0 %v10551_v63  ;;  %v10626_v61 = vld [vmem:[%s14424_s3 + $0x5a0] ss:$100 sps:$4 sm:$0xff]  }
 0x165   : > { %3949 = vmatprep.subr.bf16.mxu1 %v10548_v62  ;;  %v9401_v62 = vcombine.low %v1004_v59, %v1004_v59  ;;  %v10631_v63 = vld [vmem:[%s14424_s3 + $0x4dc] ss:$100 sps:$4 sm:$0xff]  }
 0x167   : > { %4024 = vmatpush1.bf16.msra.mxu0 %v10549_v3  ;;  %v9402_v3 = vcombine.high %v1004_v59, %v1004_v59  ;;  %v10706_v59 = vld [vmem:[%s14424_s3 + $0x730] ss:$100 sps:$4 sm:$0xff]  }
 0x168   : > { %3950 = vmatpush2.bf16.msra.mxu1 %v10546_v4  ;;  %4025 = vmatprep.subr.bf16.mxu0 %v10557_v8  ;;  %v10629_v4 = vld [vmem:[%s14424_s3 + $0x4d8] ss:$100 sps:$4 sm:$0xff]   ;;  %v10639_v8 = vld [vmem:[%s14424_s3 + $0xf04] ss:$100 sps:$4 sm:$0xff]  }
 0x169   : > { %3951 = vmatprep.subr.bf16.mxu1 %v10554_v5  ;;  %v3631_v5 = vsel %vm3599_vm3, %v9401_v62, 0  ;;  %v1005_v62 = vld [vmem:[%s14424_s3 + $0xfd0] sm:$0x33] }
 0x16b   : > { %4026 = vmatpush1.bf16.msra.mxu0 %v10555_v9  ;;  %v10636_v9 = vld [vmem:[%s14424_s3 + $0x414] ss:$100 sps:$4 sm:$0xff]  }
 0x16c   : > { %3952 = vmatpush2.bf16.msra.mxu1 %v10552_v10  ;;  %4027 = vmatprep.subr.bf16.mxu0 %v10563_v12  ;;  %v10637_v10 = vld [vmem:[%s14424_s3 + $0xf00] ss:$100 sps:$4 sm:$0xff]  }
 0x16d   : > { %3953 = vmatprep.subr.bf16.mxu1 %v10560_v11  ;;  %v10634_v11 = vld [vmem:[%s14424_s3 + $0x410] ss:$100 sps:$4 sm:$0xff]   ;;  %v10645_v12 = vld [vmem:[%s14424_s3 + $0xe3c] ss:$100 sps:$4 sm:$0xff]  }
 0x16f   : > { %4028 = vmatpush1.bf16.msra.mxu0 %v10561_v13  ;;  %v10642_v13 = vld [vmem:[%s14424_s3 + $0x34c] ss:$100 sps:$4 sm:$0xff]  }
 0x170   : > { %3954 = vmatpush2.bf16.msra.mxu1 %v10558_v14  ;;  %4029 = vmatprep.subr.bf16.mxu0 %v10569_v15  ;;  %v10643_v14 = vld [vmem:[%s14424_s3 + $0xe38] ss:$100 sps:$4 sm:$0xff]   ;;  %v10640_v15 = vld [vmem:[%s14424_s3 + $0x348] ss:$100 sps:$4 sm:$0xff]  }
 0x171   : > { %3955 = vmatprep.subr.bf16.mxu1 %v10566_v16  ;;  %v10651_v16 = vld [vmem:[%s14424_s3 + $0xd74] ss:$100 sps:$4 sm:$0xff]  }
 0x173   : > { %4030 = vmatpush1.bf16.msra.mxu0 %v10567_v18  ;;  %v10649_v18 = vld [vmem:[%s14424_s3 + $0xd70] ss:$100 sps:$4 sm:$0xff]  }
 0x174   : > { %3956 = vmatpush2.bf16.msra.mxu1 %v10564_v17  ;;  %4031 = vmatprep.subr.bf16.mxu0 %v10575_v20  ;;  %v10648_v17 = vld [vmem:[%s14424_s3 + $0x284] ss:$100 sps:$4 sm:$0xff]   ;;  %v10657_v20 = vld [vmem:[%s14424_s3 + $0xcac] ss:$100 sps:$4 sm:$0xff]  }
 0x175   : > { %3957 = vmatprep.subr.bf16.mxu1 %v10572_v19  ;;  %v10646_v19 = vld [vmem:[%s14424_s3 + $0x280] ss:$100 sps:$4 sm:$0xff]  }
 0x177   : > { %4032 = vmatpush1.bf16.msra.mxu0 %v10573_v21  ;;  %v10654_v21 = vld [vmem:[%s14424_s3 + $0x1bc] ss:$100 sps:$4 sm:$0xff]  }
 0x178   : > { %3958 = vmatpush2.bf16.msra.mxu1 %v10570_v22  ;;  %4033 = vmatprep.subr.bf16.mxu0 %v10581_v23  ;;  %v10655_v22 = vld [vmem:[%s14424_s3 + $0xca8] ss:$100 sps:$4 sm:$0xff]   ;;  %v10652_v23 = vld [vmem:[%s14424_s3 + $0x1b8] ss:$100 sps:$4 sm:$0xff]  }
 0x179   : > { %3959 = vmatprep.subr.bf16.mxu1 %v10578_v24  ;;  %v10663_v24 = vld [vmem:[%s14424_s3 + $0x5ac] ss:$100 sps:$4 sm:$0xff]  }
 0x17b   : > { %4034 = vmatpush1.bf16.msra.mxu0 %v10579_v26  ;;  %v10661_v26 = vld [vmem:[%s14424_s3 + $0x5a8] ss:$100 sps:$4 sm:$0xff]  }
 0x17c   : > { %3960 = vmatpush2.bf16.msra.mxu1 %v10576_v25  ;;  %4035 = vmatprep.subr.bf16.mxu0 %v10587_v27  ;;  %v10660_v25 = vld [vmem:[%s14424_s3 + $0xf4] ss:$100 sps:$4 sm:$0xff]  }
 0x17d   : > { %3961 = vmatprep.subr.bf16.mxu1 %v10584_v28  ;;  %v10658_v27 = vld [vmem:[%s14424_s3 + $0xf0] ss:$100 sps:$4 sm:$0xff]   ;;  %v10669_v28 = vld [vmem:[%s14424_s3 + $0x4e4] ss:$100 sps:$4 sm:$0xff]  }
 0x17f   : > { %4036 = vmatpush2.bf16.msra.mxu0 %v10585_v30  ;;  %v10667_v30 = vld [vmem:[%s14424_s3 + $0x4e0] ss:$100 sps:$4 sm:$0xff]  }
 0x180   : > { %3962 = vmatpush2.bf16.msra.mxu1 %v10582_v29  ;;  %4037 = vmatprep.subr.bf16.mxu0 %v10593_v32  ;;  %v10666_v29 = vld [vmem:[%s14424_s3 + $0x2c] ss:$100 sps:$4 sm:$0xff]   ;;  %v10675_v32 = vld [vmem:[%s14424_s3 + $0x41c] ss:$100 sps:$4 sm:$0xff]  }
 0x181   : > { %3963 = vmatprep.subr.bf16.mxu1 %v10590_v31  ;;  %v10664_v31 = vld [vmem:[%s14424_s3 + $0x28] ss:$100 sps:$4 sm:$0xff]  }
 0x183   : > { %4038 = vmatpush2.bf16.msra.mxu0 %v10591_v33  ;;  %v10672_v33 = vld [vmem:[%s14424_s3 + $0xbe4] ss:$100 sps:$4 sm:$0xff]  }
 0x184   : > { %3964 = vmatpush2.bf16.msra.mxu1 %v10588_v35  ;;  %4039 = vmatprep.subr.bf16.mxu0 %v10596_v36  ;;  %v10670_v35 = vld [vmem:[%s14424_s3 + $0xbe0] ss:$100 sps:$4 sm:$0xff]   ;;  %v10681_v36 = vld [vmem:[%s14424_s3 + $0x354] ss:$100 sps:$4 sm:$0xff]  }
 0x185   : > { %9424 = vmatprep.subr.msk.bf16.mxu1 %vm3599_vm3, %v9400_v38  ;;  %v10679_v38 = vld [vmem:[%s14424_s3 + $0x350] ss:$100 sps:$4 sm:$0xff]  }
 0x187   : > { %3966 = vmatmul.mubr.bf16.vlgmr.msra.gmra.mxu1 %v11761_v7  ;;  %4040 = vmatpush2.bf16.msra.mxu0 %v10594_v37  ;;  %v10678_v37 = vld [vmem:[%s14424_s3 + $0xb1c] ss:$100 sps:$4 sm:$0xff]  }
 0x188   : > { %4069 = vmatpush1.bf16.msra.mxu1 %v3625_v41  ;;  %4041 = vmatprep.subr.bf16.mxu0 %v10601_v40  ;;  %v10687_v40 = vld [vmem:[%s14424_s3 + $0x28c] ss:$100 sps:$4 sm:$0xff]   ;;  %v10684_v41 = vld [vmem:[%s14424_s3 + $0xa54] ss:$100 sps:$4 sm:$0xff]  }
 0x189   : > { %4070 = vmatprep.subr.bf16.mxu1 %v10604_v43  ;;  %4094 = vmatprep.mubr.bf16.mxu1 %v11500_v1  ;;  %v10682_v43 = vld [vmem:[%s14424_s3 + $0xa50] ss:$100 sps:$4 sm:$0xff]  }
 0x18b   : > { %4042 = vmatpush2.bf16.msra.mxu0 %v10599_v42  ;;  %v10685_v42 = vld [vmem:[%s14424_s3 + $0x288] ss:$100 sps:$4 sm:$0xff]  }
 0x18c   : > { %4071 = vmatpush1.bf16.msra.mxu1 %v10602_v44  ;;  %4043 = vmatprep.subr.bf16.mxu0 %v10607_v45  ;;  %v10693_v44 = vld [vmem:[%s14424_s3 + $0x1c4] ss:$100 sps:$4 sm:$0xff]   ;;  %v10690_v45 = vld [vmem:[%s14424_s3 + $0x98c] ss:$100 sps:$4 sm:$0xff]  }
 0x18d   : > { %4072 = vmatprep.subr.bf16.mxu1 %v10610_v47  ;;  %v10688_v47 = vld [vmem:[%s14424_s3 + $0x988] ss:$100 sps:$4 sm:$0xff]  }
 0x18f   : > { %4044 = vmatpush2.bf16.msra.mxu0 %v10605_v46  ;;  %v10691_v46 = vld [vmem:[%s14424_s3 + $0x1c0] ss:$100 sps:$4 sm:$0xff]  }
 0x190   : > { %4073 = vmatpush1.bf16.msra.mxu1 %v10608_v48  ;;  %4045 = vmatprep.subr.bf16.mxu0 %v10613_v49  ;;  %v10699_v48 = vld [vmem:[%s14424_s3 + $0xfc] ss:$100 sps:$4 sm:$0xff]   ;;  %v10696_v49 = vld [vmem:[%s14424_s3 + $0x8c4] ss:$100 sps:$4 sm:$0xff]  }
 0x191   : > { %4074 = vmatprep.subr.bf16.mxu1 %v10616_v51  ;;  %v10694_v51 = vld [vmem:[%s14424_s3 + $0x8c0] ss:$100 sps:$4 sm:$0xff]  }
 0x193   : > { %4046 = vmatpush2.bf16.msra.mxu0 %v10611_v50  ;;  %v10697_v50 = vld [vmem:[%s14424_s3 + $0xf8] ss:$100 sps:$4 sm:$0xff]  }
 0x194   : > { %4075 = vmatpush1.bf16.msra.mxu1 %v10614_v52  ;;  %4047 = vmatprep.subr.bf16.mxu0 %v10619_v53  ;;  %v10705_v52 = vld [vmem:[%s14424_s3 + $0x34] ss:$100 sps:$4 sm:$0xff]   ;;  %v10702_v53 = vld [vmem:[%s14424_s3 + $0x7fc] ss:$100 sps:$4 sm:$0xff]  }
 0x195   : > { %4076 = vmatprep.subr.bf16.mxu1 %v10622_v54  ;;  %v10703_v54 = vld [vmem:[%s14424_s3 + $0x30] ss:$100 sps:$4 sm:$0xff]  }
 0x197   : > { %4048 = vmatpush2.bf16.msra.mxu0 %v10617_v55  ;;  %v10700_v55 = vld [vmem:[%s14424_s3 + $0x7f8] ss:$100 sps:$4 sm:$0xff]  }
 0x198   : > { %4077 = vmatpush1.bf16.msra.mxu1 %v10620_v56  ;;  %4049 = vmatprep.subr.bf16.mxu0 %v10625_v57  ;;  %v10711_v56 = vld [vmem:[%s14424_s3 + $0xbec] ss:$100 sps:$4 sm:$0xff]   ;;  %v10708_v57 = vld [vmem:[%s14424_s3 + $0x734] ss:$100 sps:$4 sm:$0xff]  }
 0x199   : > { %4105 = vmatprep.subr.bf16.mxu1 %v10628_v58  ;;  %v10709_v58 = vld [vmem:[%s14424_s3 + $0xbe8] ss:$100 sps:$4 sm:$0xff]  }
 0x19b   : > { %9425 = vmatmul.mubr.msk.bf16.vlgmr.msra.gmra.mxu1 %vm3595_vm5, %v11749_v2  ;;  %4050 = vmatpush2.bf16.msra.mxu0 %v10623_v60  ;;  %v10717_v60 = vld [vmem:[%s14424_s3 + $0xb24] ss:$100 sps:$4 sm:$0xff]  }
 0x19c   : > { %4106 = vmatpush1.bf16.msra.mxu1 %v10626_v61  ;;  %4137 = vmatprep.mubr.bf16.mxu1 %v11757_v6  ;;  %v10714_v61 = vld [vmem:[%s14424_s3 + $0x66c] ss:$100 sps:$4 sm:$0xff]  }
 0x19d   : > { %4107 = vmatprep.subr.bf16.mxu1 %v10631_v63  ;;  %9426 = vmatprep.subr.msk.bf16.mxu0 %vm3599_vm3, %v9402_v3  ;;  %v10715_v63 = vld [vmem:[%s14424_s3 + $0xb20] ss:$100 sps:$4 sm:$0xff]   ;;  %v10712_v3 = vld [vmem:[%s14424_s3 + $0x668] ss:$100 sps:$4 sm:$0xff]  }
 0x19e   : > { %4052 = vmatmul.mubr.bf16.vlgmr.msra.gmra.mxu0 %v11761_v7 }
 0x19f   : > { %4155 = vmatpush1.bf16.msra.mxu0 %v3631_v5  ;;  %4180 = vmatprep.mubr.bf16.mxu0 %v11500_v1  ;;  %v9404_v5 = vcombine.high %v1005_v62, %v1005_v62 }
 0x1a0   : > { %4108 = vmatpush1.bf16.msra.mxu1 %v10629_v4  ;;  %4156 = vmatprep.subr.bf16.mxu0 %v10639_v8  ;;  %v10720_v4 = vld [vmem:[%s14424_s3 + $0xa5c] ss:$100 sps:$4 sm:$0xff]   ;;  %v9403_v8 = vcombine.low %v1005_v62, %v1005_v62  ;;  %v10796_v62 = vld [vmem:[%s14424_s3 + $0xbf4] ss:$100 sps:$4 sm:$0xff]  }
 0x1a1   : > { %4109 = vmatprep.subr.bf16.mxu1 %v10636_v9  ;;  %v10718_v9 = vld [vmem:[%s14424_s3 + $0xa58] ss:$100 sps:$4 sm:$0xff]  }
 0x1a3   : > { %4157 = vmatpush1.bf16.msra.mxu0 %v10637_v10  ;;  %v10725_v10 = vld [vmem:[%s14424_s3 + $0x994] ss:$100 sps:$4 sm:$0xff]  }
 0x1a4   : > { %4110 = vmatpush1.bf16.msra.mxu1 %v10634_v11  ;;  %4158 = vmatprep.subr.bf16.mxu0 %v10645_v12  ;;  %v3637_v11 = vsel %vm3599_vm3, %v9403_v8, 0  ;;  %v10728_v12 = vld [vmem:[%s14424_s3 + $0xf0c] ss:$100 sps:$4 sm:$0xff]   ;;  %v10803_v8 = vld [vmem:[%s14424_s3 + $0x360] ss:$100 sps:$4 sm:$0xff]  }
 0x1a5   : > { %4111 = vmatprep.subr.bf16.mxu1 %v10642_v13  ;;  %v10723_v13 = vld [vmem:[%s14424_s3 + $0x990] ss:$100 sps:$4 sm:$0xff]  }
 0x1a7   : > { %4159 = vmatpush1.bf16.msra.mxu0 %v10643_v14  ;;  %v10726_v14 = vld [vmem:[%s14424_s3 + $0xf08] ss:$100 sps:$4 sm:$0xff]  }
 0x1a8   : > { %4112 = vmatpush1.bf16.msra.mxu1 %v10640_v15  ;;  %4160 = vmatprep.subr.bf16.mxu0 %v10651_v16  ;;  %v10731_v15 = vld [vmem:[%s14424_s3 + $0x8cc] ss:$100 sps:$4 sm:$0xff]   ;;  %v10734_v16 = vld [vmem:[%s14424_s3 + $0xe44] ss:$100 sps:$4 sm:$0xff]  }
 0x1a9   : > { %4113 = vmatprep.subr.bf16.mxu1 %v10648_v17  ;;  %v10729_v17 = vld [vmem:[%s14424_s3 + $0x8c8] ss:$100 sps:$4 sm:$0xff]  }
 0x1ab   : > { %4161 = vmatpush1.bf16.msra.mxu0 %v10649_v18  ;;  %v10732_v18 = vld [vmem:[%s14424_s3 + $0xe40] ss:$100 sps:$4 sm:$0xff]  }
 0x1ac   : > { %4114 = vmatpush1.bf16.msra.mxu1 %v10646_v19  ;;  %4162 = vmatprep.subr.bf16.mxu0 %v10657_v20  ;;  %v10737_v19 = vld [vmem:[%s14424_s3 + $0x804] ss:$100 sps:$4 sm:$0xff]   ;;  %v10740_v20 = vld [vmem:[%s14424_s3 + $0xd7c] ss:$100 sps:$4 sm:$0xff]  }
 0x1ad   : > { %4115 = vmatprep.subr.bf16.mxu1 %v10654_v21  ;;  %v10735_v21 = vld [vmem:[%s14424_s3 + $0x800] ss:$100 sps:$4 sm:$0xff]  }
 0x1af   : > { %4163 = vmatpush1.bf16.msra.mxu0 %v10655_v22  ;;  %v10738_v22 = vld [vmem:[%s14424_s3 + $0xd78] ss:$100 sps:$4 sm:$0xff]  }
 0x1b0   : > { %4116 = vmatpush1.bf16.msra.mxu1 %v10652_v23  ;;  %4191 = vmatprep.subr.bf16.mxu0 %v10663_v24  ;;  %v10743_v23 = vld [vmem:[%s14424_s3 + $0x73c] ss:$100 sps:$4 sm:$0xff]   ;;  %v10746_v24 = vld [vmem:[%s14424_s3 + $0xcb4] ss:$100 sps:$4 sm:$0xff]  }
 0x1b1   : > { %4117 = vmatprep.subr.bf16.mxu1 %v10660_v25  ;;  %v10741_v25 = vld [vmem:[%s14424_s3 + $0x738] ss:$100 sps:$4 sm:$0xff]  }
 0x1b2   : > { %9427 = vmatmul.mubr.msk.bf16.vlgmr.msra.gmra.mxu0 %vm3595_vm5, %v11749_v2 }
 0x1b3   : > { %4192 = vmatpush1.bf16.msra.mxu0 %v10661_v26  ;;  %4223 = vmatprep.mubr.bf16.mxu0 %v11757_v6  ;;  %v10744_v26 = vld [vmem:[%s14424_s3 + $0xcb0] ss:$100 sps:$4 sm:$0xff]  }
 0x1b4   : > { %4118 = vmatpush1.bf16.msra.mxu1 %v10658_v27  ;;  %4193 = vmatprep.subr.bf16.mxu0 %v10669_v28  ;;  %v10749_v27 = vld [vmem:[%s14424_s3 + $0x674] ss:$100 sps:$4 sm:$0xff]  }
 0x1b5   : > { %4119 = vmatprep.subr.bf16.mxu1 %v10666_v29  ;;  %v10752_v28 = vld [vmem:[%s14424_s3 + $0x5b4] ss:$100 sps:$4 sm:$0xff]  }
 0x1b6   : > { %v1006_v29 = vld [vmem:[%s14424_s3 + $0xfd8] sm:$0x33] }
 0x1b7   : > { %4194 = vmatpush1.bf16.msra.mxu0 %v10667_v30  ;;  %v10747_v30 = vld [vmem:[%s14424_s3 + $0x670] ss:$100 sps:$4 sm:$0xff]  }
 0x1b8   : > { %4120 = vmatpush1.bf16.msra.mxu1 %v10664_v31  ;;  %4195 = vmatprep.subr.bf16.mxu0 %v10675_v32  ;;  %v10750_v31 = vld [vmem:[%s14424_s3 + $0x5b0] ss:$100 sps:$4 sm:$0xff]   ;;  %v9405_v32 = vcombine.low %v1006_v29, %v1006_v29 }
 0x1b9   : > { %4121 = vmatprep.subr.bf16.mxu1 %v10672_v33  ;;  %v10755_v33 = vld [vmem:[%s14424_s3 + $0x4ec] ss:$100 sps:$4 sm:$0xff]  }
 0x1bb   : > { %4196 = vmatpush1.bf16.msra.mxu0 %v10673_v34  ;;  %v9406_v34 = vcombine.high %v1006_v29, %v1006_v29  ;;  %v10830_v29 = vld [vmem:[%s14424_s3 + $0x740] ss:$100 sps:$4 sm:$0xff]  }
 0x1bc   : > { %4122 = vmatpush2.bf16.msra.mxu1 %v10670_v35  ;;  %4197 = vmatprep.subr.bf16.mxu0 %v10681_v36  ;;  %v10753_v35 = vld [vmem:[%s14424_s3 + $0x4e8] ss:$100 sps:$4 sm:$0xff]   ;;  %v3643_v36 = vsel %vm3599_vm3, %v9405_v32, 0  ;;  %v1007_v32 = vld [vmem:[%s14424_s3 + $0xfe0] sm:$0x33] }
 0x1bd   : > { %4123 = vmatprep.subr.bf16.mxu1 %v10678_v37  ;;  %v10763_v37 = vld [vmem:[%s14424_s3 + $0xf14] ss:$100 sps:$4 sm:$0xff]  }
 0x1bf   : > { %4198 = vmatpush1.bf16.msra.mxu0 %v10679_v38  ;;  %v10760_v38 = vld [vmem:[%s14424_s3 + $0x424] ss:$100 sps:$4 sm:$0xff]  }
 0x1c0   : > { %4124 = vmatpush2.bf16.msra.mxu1 %v10676_v39  ;;  %4199 = vmatprep.subr.bf16.mxu0 %v10687_v40  ;;  %v10761_v39 = vld [vmem:[%s14424_s3 + $0xf10] ss:$100 sps:$4 sm:$0xff]   ;;  %v10758_v40 = vld [vmem:[%s14424_s3 + $0x420] ss:$100 sps:$4 sm:$0xff]  }
 0x1c1   : > { %4125 = vmatprep.subr.bf16.mxu1 %v10684_v41  ;;  %v10769_v41 = vld [vmem:[%s14424_s3 + $0xe4c] ss:$100 sps:$4 sm:$0xff]  }
 0x1c3   : > { %4200 = vmatpush1.bf16.msra.mxu0 %v10685_v42  ;;  %v10766_v42 = vld [vmem:[%s14424_s3 + $0x35c] ss:$100 sps:$4 sm:$0xff]  }
 0x1c4   : > { %4126 = vmatpush2.bf16.msra.mxu1 %v10682_v43  ;;  %4201 = vmatprep.subr.bf16.mxu0 %v10693_v44  ;;  %v10767_v43 = vld [vmem:[%s14424_s3 + $0xe48] ss:$100 sps:$4 sm:$0xff]   ;;  %v10764_v44 = vld [vmem:[%s14424_s3 + $0x358] ss:$100 sps:$4 sm:$0xff]  }
 0x1c5   : > { %4127 = vmatprep.subr.bf16.mxu1 %v10690_v45  ;;  %v10775_v45 = vld [vmem:[%s14424_s3 + $0xd84] ss:$100 sps:$4 sm:$0xff]  }
 0x1c7   : > { %4202 = vmatpush1.bf16.msra.mxu0 %v10691_v46  ;;  %v10772_v46 = vld [vmem:[%s14424_s3 + $0x294] ss:$100 sps:$4 sm:$0xff]  }
 0x1c8   : > { %4128 = vmatpush2.bf16.msra.mxu1 %v10688_v47  ;;  %4203 = vmatprep.subr.bf16.mxu0 %v10699_v48  ;;  %v10773_v47 = vld [vmem:[%s14424_s3 + $0xd80] ss:$100 sps:$4 sm:$0xff]   ;;  %v10770_v48 = vld [vmem:[%s14424_s3 + $0x290] ss:$100 sps:$4 sm:$0xff]  }
 0x1c9   : > { %4129 = vmatprep.subr.bf16.mxu1 %v10696_v49  ;;  %v10781_v49 = vld [vmem:[%s14424_s3 + $0xcbc] ss:$100 sps:$4 sm:$0xff]  }
 0x1cb   : > { %4204 = vmatpush1.bf16.msra.mxu0 %v10697_v50  ;;  %v10778_v50 = vld [vmem:[%s14424_s3 + $0x1cc] ss:$100 sps:$4 sm:$0xff]  }
 0x1cc   : > { %4130 = vmatpush2.bf16.msra.mxu1 %v10694_v51  ;;  %4205 = vmatprep.subr.bf16.mxu0 %v10705_v52  ;;  %v10779_v51 = vld [vmem:[%s14424_s3 + $0xcb8] ss:$100 sps:$4 sm:$0xff]   ;;  %v10776_v52 = vld [vmem:[%s14424_s3 + $0x1c8] ss:$100 sps:$4 sm:$0xff]  }
 0x1cd   : > { %4131 = vmatprep.subr.bf16.mxu1 %v10702_v53  ;;  %v10787_v53 = vld [vmem:[%s14424_s3 + $0x5bc] ss:$100 sps:$4 sm:$0xff]  }
 0x1cf   : > { %4206 = vmatpush1.bf16.msra.mxu0 %v10703_v54  ;;  %v10784_v54 = vld [vmem:[%s14424_s3 + $0x104] ss:$100 sps:$4 sm:$0xff]  }
 0x1d0   : > { %4132 = vmatpush2.bf16.msra.mxu1 %v10700_v55  ;;  %4207 = vmatprep.subr.bf16.mxu0 %v10711_v56  ;;  %v10785_v55 = vld [vmem:[%s14424_s3 + $0x5b8] ss:$100 sps:$4 sm:$0xff]   ;;  %v10782_v56 = vld [vmem:[%s14424_s3 + $0x100] ss:$100 sps:$4 sm:$0xff]  }
 0x1d1   : > { %4133 = vmatprep.subr.bf16.mxu1 %v10708_v57  ;;  %v10793_v57 = vld [vmem:[%s14424_s3 + $0x4f4] ss:$100 sps:$4 sm:$0xff]  }
 0x1d3   : > { %4208 = vmatpush2.bf16.msra.mxu0 %v10709_v58  ;;  %v10790_v58 = vld [vmem:[%s14424_s3 + $0x3c] ss:$100 sps:$4 sm:$0xff]  }
 0x1d4   : > { %4134 = vmatpush2.bf16.msra.mxu1 %v10706_v59  ;;  %4209 = vmatprep.subr.bf16.mxu0 %v10717_v60  ;;  %v10791_v59 = vld [vmem:[%s14424_s3 + $0x4f0] ss:$100 sps:$4 sm:$0xff]   ;;  %v10788_v60 = vld [vmem:[%s14424_s3 + $0x38] ss:$100 sps:$4 sm:$0xff]  }
 0x1d5   : > { %4135 = vmatprep.subr.bf16.mxu1 %v10714_v61  ;;  %v10799_v61 = vld [vmem:[%s14424_s3 + $0x42c] ss:$100 sps:$4 sm:$0xff]  }
 0x1d7   : > { %4210 = vmatpush2.bf16.msra.mxu0 %v10715_v63  ;;  %v10797_v63 = vld [vmem:[%s14424_s3 + $0x428] ss:$100 sps:$4 sm:$0xff]  }
 0x1d8   : > { %4136 = vmatpush2.bf16.msra.mxu1 %v10712_v3  ;;  %4211 = vmatprep.subr.bf16.mxu0 %v10720_v4  ;;  %v10794_v3 = vld [vmem:[%s14424_s3 + $0xbf0] ss:$100 sps:$4 sm:$0xff]   ;;  %v10805_v4 = vld [vmem:[%s14424_s3 + $0x364] ss:$100 sps:$4 sm:$0xff]  }
 0x1d9   : > { %9428 = vmatprep.subr.msk.bf16.mxu1 %vm3599_vm3, %v9404_v5  ;;  %v10802_v5 = vld [vmem:[%s14424_s3 + $0xb2c] ss:$100 sps:$4 sm:$0xff]  }
 0x1db   : > { %4138 = vmatmul.mubr.bf16.vlgmr.msra.gmra.mxu1 %v11761_v7  ;;  %4212 = vmatpush2.bf16.msra.mxu0 %v10718_v9  ;;  %v10800_v9 = vld [vmem:[%s14424_s3 + $0xb28] ss:$100 sps:$4 sm:$0xff]  }
 0x1dc   : > { %4241 = vmatpush1.bf16.msra.mxu1 %v3637_v11  ;;  %4213 = vmatprep.subr.bf16.mxu0 %v10725_v10  ;;  %v10811_v10 = vld [vmem:[%s14424_s3 + $0x29c] ss:$100 sps:$4 sm:$0xff]   ;;  %v10808_v11 = vld [vmem:[%s14424_s3 + $0xa64] ss:$100 sps:$4 sm:$0xff]  }
 0x1dd   : > { %4242 = vmatprep.subr.bf16.mxu1 %v10728_v12  ;;  %4266 = vmatprep.mubr.bf16.mxu1 %v11500_v1  ;;  %v10809_v12 = vld [vmem:[%s14424_s3 + $0x298] ss:$100 sps:$4 sm:$0xff]  }
 0x1df   : > { %4214 = vmatpush2.bf16.msra.mxu0 %v10723_v13  ;;  %v10806_v13 = vld [vmem:[%s14424_s3 + $0xa60] ss:$100 sps:$4 sm:$0xff]  }
 0x1e0   : > { %4243 = vmatpush1.bf16.msra.mxu1 %v10726_v14  ;;  %4215 = vmatprep.subr.bf16.mxu0 %v10731_v15  ;;  %v10817_v14 = vld [vmem:[%s14424_s3 + $0x1d4] ss:$100 sps:$4 sm:$0xff]   ;;  %v10814_v15 = vld [vmem:[%s14424_s3 + $0x99c] ss:$100 sps:$4 sm:$0xff]  }
 0x1e1   : > { %4244 = vmatprep.subr.bf16.mxu1 %v10734_v16  ;;  %v10815_v16 = vld [vmem:[%s14424_s3 + $0x1d0] ss:$100 sps:$4 sm:$0xff]  }
 0x1e3   : > { %4216 = vmatpush2.bf16.msra.mxu0 %v10729_v17  ;;  %v10812_v17 = vld [vmem:[%s14424_s3 + $0x998] ss:$100 sps:$4 sm:$0xff]  }
 0x1e4   : > { %4245 = vmatpush1.bf16.msra.mxu1 %v10732_v18  ;;  %4217 = vmatprep.subr.bf16.mxu0 %v10737_v19  ;;  %v10823_v18 = vld [vmem:[%s14424_s3 + $0x10c] ss:$100 sps:$4 sm:$0xff]   ;;  %v10820_v19 = vld [vmem:[%s14424_s3 + $0x8d4] ss:$100 sps:$4 sm:$0xff]  }
 0x1e5   : > { %4246 = vmatprep.subr.bf16.mxu1 %v10740_v20  ;;  %v10821_v20 = vld [vmem:[%s14424_s3 + $0x108] ss:$100 sps:$4 sm:$0xff]  }
 0x1e7   : > { %4218 = vmatpush2.bf16.msra.mxu0 %v10735_v21  ;;  %v10818_v21 = vld [vmem:[%s14424_s3 + $0x8d0] ss:$100 sps:$4 sm:$0xff]  }
 0x1e8   : > { %4247 = vmatpush1.bf16.msra.mxu1 %v10738_v22  ;;  %4219 = vmatprep.subr.bf16.mxu0 %v10743_v23  ;;  %v10829_v22 = vld [vmem:[%s14424_s3 + $0x44] ss:$100 sps:$4 sm:$0xff]   ;;  %v10826_v23 = vld [vmem:[%s14424_s3 + $0x80c] ss:$100 sps:$4 sm:$0xff]  }
 0x1e9   : > { %4248 = vmatprep.subr.bf16.mxu1 %v10746_v24  ;;  %v10827_v24 = vld [vmem:[%s14424_s3 + $0x40] ss:$100 sps:$4 sm:$0xff]  }
 0x1eb   : > { %4220 = vmatpush2.bf16.msra.mxu0 %v10741_v25  ;;  %v10824_v25 = vld [vmem:[%s14424_s3 + $0x808] ss:$100 sps:$4 sm:$0xff]  }
 0x1ec   : > { %4249 = vmatpush1.bf16.msra.mxu1 %v10744_v26  ;;  %4221 = vmatprep.subr.bf16.mxu0 %v10749_v27  ;;  %v10835_v26 = vld [vmem:[%s14424_s3 + $0xbfc] ss:$100 sps:$4 sm:$0xff]   ;;  %v10832_v27 = vld [vmem:[%s14424_s3 + $0x744] ss:$100 sps:$4 sm:$0xff]  }
 0x1ed   : > { %4277 = vmatprep.subr.bf16.mxu1 %v10752_v28  ;;  %v10833_v28 = vld [vmem:[%s14424_s3 + $0xbf8] ss:$100 sps:$4 sm:$0xff]  }
 0x1ef   : > { %9429 = vmatmul.mubr.msk.bf16.vlgmr.msra.gmra.mxu1 %vm3595_vm5, %v11749_v2  ;;  %4222 = vmatpush2.bf16.msra.mxu0 %v10747_v30  ;;  %v10841_v30 = vld [vmem:[%s14424_s3 + $0xb34] ss:$100 sps:$4 sm:$0xff]  }
 0x1f0   : > { %4278 = vmatpush1.bf16.msra.mxu1 %v10750_v31  ;;  %4309 = vmatprep.mubr.bf16.mxu1 %v11757_v6  ;;  %v10838_v31 = vld [vmem:[%s14424_s3 + $0x67c] ss:$100 sps:$4 sm:$0xff]  }
 0x1f1   : > { %4279 = vmatprep.subr.bf16.mxu1 %v10755_v33  ;;  %9430 = vmatprep.subr.msk.bf16.mxu0 %vm3599_vm3, %v9406_v34  ;;  %v10839_v33 = vld [vmem:[%s14424_s3 + $0xb30] ss:$100 sps:$4 sm:$0xff]   ;;  %v10836_v34 = vld [vmem:[%s14424_s3 + $0x678] ss:$100 sps:$4 sm:$0xff]  }
 0x1f2   : > { %4224 = vmatmul.mubr.bf16.vlgmr.msra.gmra.mxu0 %v11761_v7 }
 0x1f3   : > { %4327 = vmatpush1.bf16.msra.mxu0 %v3643_v36  ;;  %4352 = vmatprep.mubr.bf16.mxu0 %v11500_v1  ;;  %v9408_v36 = vcombine.high %v1007_v32, %v1007_v32 }
 0x1f4   : > { %4280 = vmatpush1.bf16.msra.mxu1 %v10753_v35  ;;  %4328 = vmatprep.subr.bf16.mxu0 %v10763_v37  ;;  %v10844_v35 = vld [vmem:[%s14424_s3 + $0xa6c] ss:$100 sps:$4 sm:$0xff]   ;;  %v9407_v37 = vcombine.low %v1007_v32, %v1007_v32  ;;  %v10920_v32 = vld [vmem:[%s14424_s3 + $0xc04] ss:$100 sps:$4 sm:$0xff]  }
 0x1f5   : > { %4281 = vmatprep.subr.bf16.mxu1 %v10760_v38  ;;  %v10842_v38 = vld [vmem:[%s14424_s3 + $0xa68] ss:$100 sps:$4 sm:$0xff]  }
 0x1f7   : > { %4329 = vmatpush1.bf16.msra.mxu0 %v10761_v39  ;;  %v10849_v39 = vld [vmem:[%s14424_s3 + $0x9a4] ss:$100 sps:$4 sm:$0xff]  }
 0x1f8   : > { %4282 = vmatpush1.bf16.msra.mxu1 %v10758_v40  ;;  %4330 = vmatprep.subr.bf16.mxu0 %v10769_v41  ;;  %v3649_v40 = vsel %vm3599_vm3, %v9407_v37, 0  ;;  %v10852_v41 = vld [vmem:[%s14424_s3 + $0xf1c] ss:$100 sps:$4 sm:$0xff]   ;;  %v10927_v37 = vld [vmem:[%s14424_s3 + $0x370] ss:$100 sps:$4 sm:$0xff]  }
 0x1f9   : > { %4283 = vmatprep.subr.bf16.mxu1 %v10766_v42  ;;  %v10847_v42 = vld [vmem:[%s14424_s3 + $0x9a0] ss:$100 sps:$4 sm:$0xff]  }
 0x1fb   : > { %4331 = vmatpush1.bf16.msra.mxu0 %v10767_v43  ;;  %v10850_v43 = vld [vmem:[%s14424_s3 + $0xf18] ss:$100 sps:$4 sm:$0xff]  }
 0x1fc   : > { %4284 = vmatpush1.bf16.msra.mxu1 %v10764_v44  ;;  %4332 = vmatprep.subr.bf16.mxu0 %v10775_v45  ;;  %v10855_v44 = vld [vmem:[%s14424_s3 + $0x8dc] ss:$100 sps:$4 sm:$0xff]   ;;  %v10858_v45 = vld [vmem:[%s14424_s3 + $0xe54] ss:$100 sps:$4 sm:$0xff]  }
 0x1fd   : > { %4285 = vmatprep.subr.bf16.mxu1 %v10772_v46  ;;  %v10853_v46 = vld [vmem:[%s14424_s3 + $0x8d8] ss:$100 sps:$4 sm:$0xff]  }
 0x1ff   : > { %4333 = vmatpush1.bf16.msra.mxu0 %v10773_v47  ;;  %v10856_v47 = vld [vmem:[%s14424_s3 + $0xe50] ss:$100 sps:$4 sm:$0xff]  }
 0x200   : > { %4286 = vmatpush1.bf16.msra.mxu1 %v10770_v48  ;;  %4334 = vmatprep.subr.bf16.mxu0 %v10781_v49  ;;  %v10861_v48 = vld [vmem:[%s14424_s3 + $0x814] ss:$100 sps:$4 sm:$0xff]   ;;  %v10864_v49 = vld [vmem:[%s14424_s3 + $0xd8c] ss:$100 sps:$4 sm:$0xff]  }
 0x201   : > { %4287 = vmatprep.subr.bf16.mxu1 %v10778_v50  ;;  %v10859_v50 = vld [vmem:[%s14424_s3 + $0x810] ss:$100 sps:$4 sm:$0xff]  }
 0x203   : > { %4335 = vmatpush1.bf16.msra.mxu0 %v10779_v51  ;;  %v10862_v51 = vld [vmem:[%s14424_s3 + $0xd88] ss:$100 sps:$4 sm:$0xff]  }
 0x204   : > { %4288 = vmatpush1.bf16.msra.mxu1 %v10776_v52  ;;  %4363 = vmatprep.subr.bf16.mxu0 %v10787_v53  ;;  %v10867_v52 = vld [vmem:[%s14424_s3 + $0x74c] ss:$100 sps:$4 sm:$0xff]   ;;  %v10870_v53 = vld [vmem:[%s14424_s3 + $0xcc4] ss:$100 sps:$4 sm:$0xff]  }
 0x205   : > { %4289 = vmatprep.subr.bf16.mxu1 %v10784_v54  ;;  %v10865_v54 = vld [vmem:[%s14424_s3 + $0x748] ss:$100 sps:$4 sm:$0xff]  }
 0x206   : > { %9431 = vmatmul.mubr.msk.bf16.vlgmr.msra.gmra.mxu0 %vm3595_vm5, %v11749_v2 }
 0x207   : > { %4364 = vmatpush1.bf16.msra.mxu0 %v10785_v55  ;;  %4395 = vmatprep.mubr.bf16.mxu0 %v11757_v6  ;;  %v10868_v55 = vld [vmem:[%s14424_s3 + $0xcc0] ss:$100 sps:$4 sm:$0xff]  }
 0x208   : > { %4290 = vmatpush1.bf16.msra.mxu1 %v10782_v56  ;;  %4365 = vmatprep.subr.bf16.mxu0 %v10793_v57  ;;  %v10873_v56 = vld [vmem:[%s14424_s3 + $0x684] ss:$100 sps:$4 sm:$0xff]  }
 0x209   : > { %4291 = vmatprep.subr.bf16.mxu1 %v10790_v58  ;;  %v10876_v57 = vld [vmem:[%s14424_s3 + $0x5c4] ss:$100 sps:$4 sm:$0xff]  }
 0x20a   : > { %v1008_v58 = vld [vmem:[%s14424_s3 + $0xfe8] sm:$0x33] }
 0x20b   : > { %4366 = vmatpush1.bf16.msra.mxu0 %v10791_v59  ;;  %v10871_v59 = vld [vmem:[%s14424_s3 + $0x680] ss:$100 sps:$4 sm:$0xff]  }
 0x20c   : > { %4292 = vmatpush1.bf16.msra.mxu1 %v10788_v60  ;;  %4367 = vmatprep.subr.bf16.mxu0 %v10799_v61  ;;  %v10874_v60 = vld [vmem:[%s14424_s3 + $0x5c0] ss:$100 sps:$4 sm:$0xff]   ;;  %v9409_v61 = vcombine.low %v1008_v58, %v1008_v58 }
 0x20d   : > { %4293 = vmatprep.subr.bf16.mxu1 %v10796_v62  ;;  %v10879_v62 = vld [vmem:[%s14424_s3 + $0x4fc] ss:$100 sps:$4 sm:$0xff]  }
 0x20f   : > { %4368 = vmatpush1.bf16.msra.mxu0 %v10797_v63  ;;  %v9410_v63 = vcombine.high %v1008_v58, %v1008_v58  ;;  %v10954_v58 = vld [vmem:[%s14424_s3 + $0x750] ss:$100 sps:$4 sm:$0xff]  }
 0x210   : > { %4294 = vmatpush2.bf16.msra.mxu1 %v10794_v3  ;;  %4369 = vmatprep.subr.bf16.mxu0 %v10805_v4  ;;  %v10877_v3 = vld [vmem:[%s14424_s3 + $0x4f8] ss:$100 sps:$4 sm:$0xff]   ;;  %v3655_v4 = vsel %vm3599_vm3, %v9409_v61, 0  ;;  %v1009_v61 = vld [vmem:[%s14424_s3 + $0xff0] sm:$0x33] }
 0x211   : > { %4295 = vmatprep.subr.bf16.mxu1 %v10802_v5  ;;  %v10887_v5 = vld [vmem:[%s14424_s3 + $0xf24] ss:$100 sps:$4 sm:$0xff]  }
 0x213   : > { %4370 = vmatpush1.bf16.msra.mxu0 %v10803_v8  ;;  %v10884_v8 = vld [vmem:[%s14424_s3 + $0x434] ss:$100 sps:$4 sm:$0xff]  }
 0x214   : > { %4296 = vmatpush2.bf16.msra.mxu1 %v10800_v9  ;;  %4371 = vmatprep.subr.bf16.mxu0 %v10811_v10  ;;  %v10885_v9 = vld [vmem:[%s14424_s3 + $0xf20] ss:$100 sps:$4 sm:$0xff]   ;;  %v10882_v10 = vld [vmem:[%s14424_s3 + $0x430] ss:$100 sps:$4 sm:$0xff]  }
 0x215   : > { %4297 = vmatprep.subr.bf16.mxu1 %v10808_v11  ;;  %v10893_v11 = vld [vmem:[%s14424_s3 + $0xe5c] ss:$100 sps:$4 sm:$0xff]  }
 0x217   : > { %4372 = vmatpush1.bf16.msra.mxu0 %v10809_v12  ;;  %v10890_v12 = vld [vmem:[%s14424_s3 + $0x36c] ss:$100 sps:$4 sm:$0xff]  }
 0x218   : > { %4298 = vmatpush2.bf16.msra.mxu1 %v10806_v13  ;;  %4373 = vmatprep.subr.bf16.mxu0 %v10817_v14  ;;  %v10891_v13 = vld [vmem:[%s14424_s3 + $0xe58] ss:$100 sps:$4 sm:$0xff]   ;;  %v10888_v14 = vld [vmem:[%s14424_s3 + $0x368] ss:$100 sps:$4 sm:$0xff]  }
 0x219   : > { %4299 = vmatprep.subr.bf16.mxu1 %v10814_v15  ;;  %v10899_v15 = vld [vmem:[%s14424_s3 + $0xd94] ss:$100 sps:$4 sm:$0xff]  }
 0x21b   : > { %4374 = vmatpush1.bf16.msra.mxu0 %v10815_v16  ;;  %v10896_v16 = vld [vmem:[%s14424_s3 + $0x2a4] ss:$100 sps:$4 sm:$0xff]  }
 0x21c   : > { %4300 = vmatpush2.bf16.msra.mxu1 %v10812_v17  ;;  %4375 = vmatprep.subr.bf16.mxu0 %v10823_v18  ;;  %v10897_v17 = vld [vmem:[%s14424_s3 + $0xd90] ss:$100 sps:$4 sm:$0xff]   ;;  %v10894_v18 = vld [vmem:[%s14424_s3 + $0x2a0] ss:$100 sps:$4 sm:$0xff]  }
 0x21d   : > { %4301 = vmatprep.subr.bf16.mxu1 %v10820_v19  ;;  %v10905_v19 = vld [vmem:[%s14424_s3 + $0xccc] ss:$100 sps:$4 sm:$0xff]  }
 0x21f   : > { %4376 = vmatpush1.bf16.msra.mxu0 %v10821_v20  ;;  %v10902_v20 = vld [vmem:[%s14424_s3 + $0x1dc] ss:$100 sps:$4 sm:$0xff]  }
 0x220   : > { %4302 = vmatpush2.bf16.msra.mxu1 %v10818_v21  ;;  %4377 = vmatprep.subr.bf16.mxu0 %v10829_v22  ;;  %v10903_v21 = vld [vmem:[%s14424_s3 + $0xcc8] ss:$100 sps:$4 sm:$0xff]   ;;  %v10900_v22 = vld [vmem:[%s14424_s3 + $0x1d8] ss:$100 sps:$4 sm:$0xff]  }
 0x221   : > { %4303 = vmatprep.subr.bf16.mxu1 %v10826_v23  ;;  %v10911_v23 = vld [vmem:[%s14424_s3 + $0x5cc] ss:$100 sps:$4 sm:$0xff]  }
 0x223   : > { %4378 = vmatpush1.bf16.msra.mxu0 %v10827_v24  ;;  %v10908_v24 = vld [vmem:[%s14424_s3 + $0x114] ss:$100 sps:$4 sm:$0xff]  }
 0x224   : > { %4304 = vmatpush2.bf16.msra.mxu1 %v10824_v25  ;;  %4379 = vmatprep.subr.bf16.mxu0 %v10835_v26  ;;  %v10909_v25 = vld [vmem:[%s14424_s3 + $0x5c8] ss:$100 sps:$4 sm:$0xff]   ;;  %v10906_v26 = vld [vmem:[%s14424_s3 + $0x110] ss:$100 sps:$4 sm:$0xff]  }
 0x225   : > { %4305 = vmatprep.subr.bf16.mxu1 %v10832_v27  ;;  %v10917_v27 = vld [vmem:[%s14424_s3 + $0x504] ss:$100 sps:$4 sm:$0xff]  }
 0x227   : > { %4380 = vmatpush2.bf16.msra.mxu0 %v10833_v28  ;;  %v10914_v28 = vld [vmem:[%s14424_s3 + $0x4c] ss:$100 sps:$4 sm:$0xff]  }
 0x228   : > { %4306 = vmatpush2.bf16.msra.mxu1 %v10830_v29  ;;  %4381 = vmatprep.subr.bf16.mxu0 %v10841_v30  ;;  %v10915_v29 = vld [vmem:[%s14424_s3 + $0x500] ss:$100 sps:$4 sm:$0xff]   ;;  %v10912_v30 = vld [vmem:[%s14424_s3 + $0x48] ss:$100 sps:$4 sm:$0xff]  }
 0x229   : > { %4307 = vmatprep.subr.bf16.mxu1 %v10838_v31  ;;  %v10923_v31 = vld [vmem:[%s14424_s3 + $0x43c] ss:$100 sps:$4 sm:$0xff]  }
 0x22b   : > { %4382 = vmatpush2.bf16.msra.mxu0 %v10839_v33  ;;  %v10921_v33 = vld [vmem:[%s14424_s3 + $0x438] ss:$100 sps:$4 sm:$0xff]  }
 0x22c   : > { %4308 = vmatpush2.bf16.msra.mxu1 %v10836_v34  ;;  %4383 = vmatprep.subr.bf16.mxu0 %v10844_v35  ;;  %v10918_v34 = vld [vmem:[%s14424_s3 + $0xc00] ss:$100 sps:$4 sm:$0xff]   ;;  %v10929_v35 = vld [vmem:[%s14424_s3 + $0x374] ss:$100 sps:$4 sm:$0xff]  }
 0x22d   : > { %9432 = vmatprep.subr.msk.bf16.mxu1 %vm3599_vm3, %v9408_v36  ;;  %v10926_v36 = vld [vmem:[%s14424_s3 + $0xb3c] ss:$100 sps:$4 sm:$0xff]  }
 0x22f   : > { %4310 = vmatmul.mubr.bf16.vlgmr.msra.gmra.mxu1 %v11761_v7  ;;  %4384 = vmatpush2.bf16.msra.mxu0 %v10842_v38  ;;  %v10924_v38 = vld [vmem:[%s14424_s3 + $0xb38] ss:$100 sps:$4 sm:$0xff]  }
 0x230   : > { %4413 = vmatpush1.bf16.msra.mxu1 %v3649_v40  ;;  %4385 = vmatprep.subr.bf16.mxu0 %v10849_v39  ;;  %v10935_v39 = vld [vmem:[%s14424_s3 + $0x2ac] ss:$100 sps:$4 sm:$0xff]   ;;  %v10932_v40 = vld [vmem:[%s14424_s3 + $0xa74] ss:$100 sps:$4 sm:$0xff]  }
 0x231   : > { %4414 = vmatprep.subr.bf16.mxu1 %v10852_v41  ;;  %4438 = vmatprep.mubr.bf16.mxu1 %v11500_v1  ;;  %v10933_v41 = vld [vmem:[%s14424_s3 + $0x2a8] ss:$100 sps:$4 sm:$0xff]  }
 0x233   : > { %4386 = vmatpush2.bf16.msra.mxu0 %v10847_v42  ;;  %v10930_v42 = vld [vmem:[%s14424_s3 + $0xa70] ss:$100 sps:$4 sm:$0xff]  }
 0x234   : > { %4415 = vmatpush1.bf16.msra.mxu1 %v10850_v43  ;;  %4387 = vmatprep.subr.bf16.mxu0 %v10855_v44  ;;  %v10941_v43 = vld [vmem:[%s14424_s3 + $0x1e4] ss:$100 sps:$4 sm:$0xff]   ;;  %v10938_v44 = vld [vmem:[%s14424_s3 + $0x9ac] ss:$100 sps:$4 sm:$0xff]  }
 0x235   : > { %4416 = vmatprep.subr.bf16.mxu1 %v10858_v45  ;;  %v10939_v45 = vld [vmem:[%s14424_s3 + $0x1e0] ss:$100 sps:$4 sm:$0xff]  }
 0x237   : > { %4388 = vmatpush2.bf16.msra.mxu0 %v10853_v46  ;;  %v10936_v46 = vld [vmem:[%s14424_s3 + $0x9a8] ss:$100 sps:$4 sm:$0xff]  }
 0x238   : > { %4417 = vmatpush1.bf16.msra.mxu1 %v10856_v47  ;;  %4389 = vmatprep.subr.bf16.mxu0 %v10861_v48  ;;  %v10947_v47 = vld [vmem:[%s14424_s3 + $0x11c] ss:$100 sps:$4 sm:$0xff]   ;;  %v10944_v48 = vld [vmem:[%s14424_s3 + $0x8e4] ss:$100 sps:$4 sm:$0xff]  }
 0x239   : > { %4418 = vmatprep.subr.bf16.mxu1 %v10864_v49  ;;  %v10945_v49 = vld [vmem:[%s14424_s3 + $0x118] ss:$100 sps:$4 sm:$0xff]  }
 0x23b   : > { %4390 = vmatpush2.bf16.msra.mxu0 %v10859_v50  ;;  %v10942_v50 = vld [vmem:[%s14424_s3 + $0x8e0] ss:$100 sps:$4 sm:$0xff]  }
 0x23c   : > { %4419 = vmatpush1.bf16.msra.mxu1 %v10862_v51  ;;  %4391 = vmatprep.subr.bf16.mxu0 %v10867_v52  ;;  %v10953_v51 = vld [vmem:[%s14424_s3 + $0x54] ss:$100 sps:$4 sm:$0xff]   ;;  %v10950_v52 = vld [vmem:[%s14424_s3 + $0x81c] ss:$100 sps:$4 sm:$0xff]  }
 0x23d   : > { %4420 = vmatprep.subr.bf16.mxu1 %v10870_v53  ;;  %v10951_v53 = vld [vmem:[%s14424_s3 + $0x50] ss:$100 sps:$4 sm:$0xff]  }
 0x23f   : > { %4392 = vmatpush2.bf16.msra.mxu0 %v10865_v54  ;;  %v10948_v54 = vld [vmem:[%s14424_s3 + $0x818] ss:$100 sps:$4 sm:$0xff]  }
 0x240   : > { %4421 = vmatpush1.bf16.msra.mxu1 %v10868_v55  ;;  %4393 = vmatprep.subr.bf16.mxu0 %v10873_v56  ;;  %v10959_v55 = vld [vmem:[%s14424_s3 + $0xc0c] ss:$100 sps:$4 sm:$0xff]   ;;  %v10956_v56 = vld [vmem:[%s14424_s3 + $0x754] ss:$100 sps:$4 sm:$0xff]  }
 0x241   : > { %4449 = vmatprep.subr.bf16.mxu1 %v10876_v57  ;;  %v10957_v57 = vld [vmem:[%s14424_s3 + $0xc08] ss:$100 sps:$4 sm:$0xff]  }
 0x243   : > { %9433 = vmatmul.mubr.msk.bf16.vlgmr.msra.gmra.mxu1 %vm3595_vm5, %v11749_v2  ;;  %4394 = vmatpush2.bf16.msra.mxu0 %v10871_v59  ;;  %v10965_v59 = vld [vmem:[%s14424_s3 + $0xb44] ss:$100 sps:$4 sm:$0xff]  }
 0x244   : > { %4450 = vmatpush1.bf16.msra.mxu1 %v10874_v60  ;;  %4481 = vmatprep.mubr.bf16.mxu1 %v11757_v6  ;;  %v10962_v60 = vld [vmem:[%s14424_s3 + $0x68c] ss:$100 sps:$4 sm:$0xff]  }
 0x245   : > { %4451 = vmatprep.subr.bf16.mxu1 %v10879_v62  ;;  %9434 = vmatprep.subr.msk.bf16.mxu0 %vm3599_vm3, %v9410_v63  ;;  %v10963_v62 = vld [vmem:[%s14424_s3 + $0xb40] ss:$100 sps:$4 sm:$0xff]   ;;  %v10960_v63 = vld [vmem:[%s14424_s3 + $0x688] ss:$100 sps:$4 sm:$0xff]  }
 0x246   : > { %4396 = vmatmul.mubr.bf16.vlgmr.msra.gmra.mxu0 %v11761_v7 }
 0x247   : > { %4499 = vmatpush1.bf16.msra.mxu0 %v3655_v4  ;;  %4524 = vmatprep.mubr.bf16.mxu0 %v11500_v1  ;;  %v9412_v4 = vcombine.high %v1009_v61, %v1009_v61 }
 0x248   : > { %4452 = vmatpush1.bf16.msra.mxu1 %v10877_v3  ;;  %4500 = vmatprep.subr.bf16.mxu0 %v10887_v5  ;;  %v10968_v3 = vld [vmem:[%s14424_s3 + $0xa7c] ss:$100 sps:$4 sm:$0xff]   ;;  %v9411_v5 = vcombine.low %v1009_v61, %v1009_v61  ;;  %v11018_v61 = vld [vmem:[%s14424_s3 + $0x2b0] ss:$100 sps:$4 sm:$0xff]  }
 0x249   : > { %4453 = vmatprep.subr.bf16.mxu1 %v10884_v8  ;;  %v10966_v8 = vld [vmem:[%s14424_s3 + $0xa78] ss:$100 sps:$4 sm:$0xff]  }
 0x24b   : > { %4501 = vmatpush1.bf16.msra.mxu0 %v10885_v9  ;;  %v10973_v9 = vld [vmem:[%s14424_s3 + $0x9b4] ss:$100 sps:$4 sm:$0xff]  }
 0x24c   : > { %4454 = vmatpush1.bf16.msra.mxu1 %v10882_v10  ;;  %4502 = vmatprep.subr.bf16.mxu0 %v10893_v11  ;;  %v3661_v10 = vsel %vm3599_vm3, %v9411_v5, 0  ;;  %v10976_v11 = vld [vmem:[%s14424_s3 + $0xf2c] ss:$100 sps:$4 sm:$0xff]  }
 0x24d   : > { %4455 = vmatprep.subr.bf16.mxu1 %v10890_v12  ;;  %v10971_v12 = vld [vmem:[%s14424_s3 + $0x9b0] ss:$100 sps:$4 sm:$0xff]  }
 0x24f   : > { %4503 = vmatpush1.bf16.msra.mxu0 %v10891_v13  ;;  %v10974_v13 = vld [vmem:[%s14424_s3 + $0xf28] ss:$100 sps:$4 sm:$0xff]  }
 0x250   : > { %4456 = vmatpush1.bf16.msra.mxu1 %v10888_v14  ;;  %4504 = vmatprep.subr.bf16.mxu0 %v10899_v15  ;;  %v10979_v14 = vld [vmem:[%s14424_s3 + $0x8ec] ss:$100 sps:$4 sm:$0xff]   ;;  %v10982_v15 = vld [vmem:[%s14424_s3 + $0xe64] ss:$100 sps:$4 sm:$0xff]  }
 0x251   : > { %4457 = vmatprep.subr.bf16.mxu1 %v10896_v16  ;;  %v10977_v16 = vld [vmem:[%s14424_s3 + $0x8e8] ss:$100 sps:$4 sm:$0xff]  }
 0x253   : > { %4505 = vmatpush1.bf16.msra.mxu0 %v10897_v17  ;;  %v10980_v17 = vld [vmem:[%s14424_s3 + $0xe60] ss:$100 sps:$4 sm:$0xff]  }
 0x254   : > { %4458 = vmatpush1.bf16.msra.mxu1 %v10894_v18  ;;  %4506 = vmatprep.subr.bf16.mxu0 %v10905_v19  ;;  %v10985_v18 = vld [vmem:[%s14424_s3 + $0x824] ss:$100 sps:$4 sm:$0xff]   ;;  %v10988_v19 = vld [vmem:[%s14424_s3 + $0xd9c] ss:$100 sps:$4 sm:$0xff]  }
 0x255   : > { %4459 = vmatprep.subr.bf16.mxu1 %v10902_v20  ;;  %v10983_v20 = vld [vmem:[%s14424_s3 + $0x820] ss:$100 sps:$4 sm:$0xff]  }
 0x257   : > { %4507 = vmatpush1.bf16.msra.mxu0 %v10903_v21  ;;  %v10986_v21 = vld [vmem:[%s14424_s3 + $0xd98] ss:$100 sps:$4 sm:$0xff]  }
 0x258   : > { %4460 = vmatpush1.bf16.msra.mxu1 %v10900_v22  ;;  %4535 = vmatprep.subr.bf16.mxu0 %v10911_v23  ;;  %v10991_v22 = vld [vmem:[%s14424_s3 + $0x75c] ss:$100 sps:$4 sm:$0xff]   ;;  %v13031_v23 = vpop.f32.mrf.mxu1 }
 0x259   : > { %4461 = vmatprep.subr.bf16.mxu1 %v10908_v24  ;;  %v10994_v24 = vld [vmem:[%s14424_s3 + $0xcd4] ss:$100 sps:$4 sm:$0xff]  }
 0x25a   : > { %9435 = vmatmul.mubr.msk.bf16.vlgmr.msra.gmra.mxu0 %vm3595_vm5, %v11749_v2 }
 0x25b   : > { %4536 = vmatpush1.bf16.msra.mxu0 %v10909_v25  ;;  %4567 = vmatprep.mubr.bf16.mxu0 %v11757_v6  ;;  %v13036_v25 = vpop.f32.mrf.mxu0 }
 0x25c   : > { %4462 = vmatpush1.bf16.msra.mxu1 %v10906_v26  ;;  %4537 = vmatprep.subr.bf16.mxu0 %v10917_v27  ;;  %v10989_v26 = vld [vmem:[%s14424_s3 + $0x758] ss:$100 sps:$4 sm:$0xff]   ;;  %v10992_v27 = vld [vmem:[%s14424_s3 + $0xcd0] ss:$100 sps:$4 sm:$0xff]  }
 0x25d   : > { %4463 = vmatprep.subr.bf16.mxu1 %v10914_v28  ;;  %v10997_v28 = vld [vmem:[%s14424_s3 + $0x694] ss:$100 sps:$4 sm:$0xff]  }
 0x25f   : > { %4538 = vmatpush1.bf16.msra.mxu0 %v10915_v29  ;;  %v13047_v29 = vpop.f32.mrf.mxu1 }
 0x260   : > { %4464 = vmatpush1.bf16.msra.mxu1 %v10912_v30  ;;  %4539 = vmatprep.subr.bf16.mxu0 %v10923_v31  ;;  %v11000_v30 = vld [vmem:[%s14424_s3 + $0x5d4] ss:$100 sps:$4 sm:$0xff]  }
 0x261   : > { %4465 = vmatprep.subr.bf16.mxu1 %v10920_v32  ;;  %v1010_v31 = vld [vmem:[%s14424_s3 + $0xff8] sm:$0x33]  ;;  %v13055_v32 = vpop.f32.mrf.mxu0 }
 0x263   : > { %4540 = vmatpush1.bf16.msra.mxu0 %v10921_v33  ;;  %v10995_v33 = vld [vmem:[%s14424_s3 + $0x690] ss:$100 sps:$4 sm:$0xff]  }
 0x264   : > { %4466 = vmatpush2.bf16.msra.mxu1 %v10918_v34  ;;  %4541 = vmatprep.subr.bf16.mxu0 %v10929_v35  ;;  %v10998_v34 = vld [vmem:[%s14424_s3 + $0x5d0] ss:$100 sps:$4 sm:$0xff]   ;;  %v9413_v35 = vcombine.low %v1010_v31, %v1010_v31 }
 0x265   : > { %4467 = vmatprep.subr.bf16.mxu1 %v10926_v36  ;;  %v13063_v36 = vpop.f32.mrf.mxu1 }
 0x267   : > { %4542 = vmatpush1.bf16.msra.mxu0 %v10927_v37  ;;  %v11003_v37 = vld [vmem:[%s14424_s3 + $0x50c] ss:$100 sps:$4 sm:$0xff]  }
 0x268   : > { %4468 = vmatpush2.bf16.msra.mxu1 %v10924_v38  ;;  %4543 = vmatprep.subr.bf16.mxu0 %v10935_v39  ;;  %v9414_v38 = vcombine.high %v1010_v31, %v1010_v31  ;;  %v13068_v39 = vpop.f32.mrf.mxu0  ;;  %v11047_v31 = vld [vmem:[%s14424_s3 + $0xb4c] ss:$100 sps:$4 sm:$0xff]  }
 0x269   : > { %4469 = vmatprep.subr.bf16.mxu1 %v10932_v40  ;;  %v11001_v40 = vld [vmem:[%s14424_s3 + $0x508] ss:$100 sps:$4 sm:$0xff]  }
 0x26b   : > { %4544 = vmatpush1.bf16.msra.mxu0 %v10933_v41  ;;  %v3667_v41 = vsel %vm3599_vm3, %v9413_v35, 0  ;;  %v11049_v35 = vld [vmem:[%s14424_s3 + $0x380] ss:$100 sps:$4 sm:$0xff]  }
 0x26c   : > { %4470 = vmatpush2.bf16.msra.mxu1 %v10930_v42  ;;  %4545 = vmatprep.subr.bf16.mxu0 %v10941_v43  ;;  %v11011_v42 = vld [vmem:[%s14424_s3 + $0xf34] ss:$100 sps:$4 sm:$0xff]   ;;  %v13080_v43 = vpop.f32.mrf.mxu1 }
 0x26d   : > { %4471 = vmatprep.subr.bf16.mxu1 %v10938_v44  ;;  %v11008_v44 = vld [vmem:[%s14424_s3 + $0x444] ss:$100 sps:$4 sm:$0xff]  }
 0x26f   : > { %4546 = vmatpush1.bf16.msra.mxu0 %v10939_v45  ;;  %v13086_v45 = vpop.f32.mrf.mxu0 }
 0x270   : > { %4472 = vmatpush2.bf16.msra.mxu1 %v10936_v46  ;;  %4547 = vmatprep.subr.bf16.mxu0 %v10947_v47  ;;  %v13089_v46 = vpop.f32.mrf.mxu1  ;;  %v11009_v47 = vld [vmem:[%s14424_s3 + $0xf30] ss:$100 sps:$4 sm:$0xff]  }
 0x271   : > { %4473 = vmatprep.subr.bf16.mxu1 %v10944_v48  ;;  %v13095_v48 = vpop.f32.mrf.mxu0 }
 0x273   : > { %4548 = vmatpush1.bf16.msra.mxu0 %v10945_v49  ;;  %v11006_v49 = vld [vmem:[%s14424_s3 + $0x440] ss:$100 sps:$4 sm:$0xff]  }
 0x274   : > { %4474 = vmatpush2.bf16.msra.mxu1 %v10942_v50  ;;  %4549 = vmatprep.subr.bf16.mxu0 %v10953_v51  ;;  %v11017_v50 = vld [vmem:[%s14424_s3 + $0xe6c] ss:$100 sps:$4 sm:$0xff]   ;;  %v11014_v51 = vld [vmem:[%s14424_s3 + $0x37c] ss:$100 sps:$4 sm:$0xff]  }
 0x275   : > { %4475 = vmatprep.subr.bf16.mxu1 %v10950_v52  ;;  %v13106_v52 = vpop.f32.mrf.mxu1 }
 0x277   : > { %4550 = vmatpush1.bf16.msra.mxu0 %v10951_v53  ;;  %v11015_v53 = vld [vmem:[%s14424_s3 + $0xe68] ss:$100 sps:$4 sm:$0xff]  }
 0x278   : > { %4476 = vmatpush2.bf16.msra.mxu1 %v10948_v54  ;;  %4551 = vmatprep.subr.bf16.mxu0 %v10959_v55  ;;  %v13111_v54 = vpop.f32.mrf.mxu0  ;;  %v11012_v55 = vld [vmem:[%s14424_s3 + $0x378] ss:$100 sps:$4 sm:$0xff]  }
 0x279   : > { %4477 = vmatprep.subr.bf16.mxu1 %v10956_v56  ;;  %v11023_v56 = vld [vmem:[%s14424_s3 + $0xda4] ss:$100 sps:$4 sm:$0xff]  }
 0x27b   : > { %4552 = vmatpush2.bf16.msra.mxu0 %v10957_v57  ;;  %v11020_v57 = vld [vmem:[%s14424_s3 + $0x2b4] ss:$100 sps:$4 sm:$0xff]  }
 0x27c   : > { %4478 = vmatpush2.bf16.msra.mxu1 %v10954_v58  ;;  %4553 = vmatprep.subr.bf16.mxu0 %v10965_v59  ;;  %v13122_v58 = vpop.f32.mrf.mxu1  ;;  %v11021_v59 = vld [vmem:[%s14424_s3 + $0xda0] ss:$100 sps:$4 sm:$0xff]  }
 0x27d   : > { %4479 = vmatprep.subr.bf16.mxu1 %v10962_v60  ;;  %v13127_v60 = vpop.f32.mrf.mxu0 }
 0x27f   : > { %4554 = vmatpush2.bf16.msra.mxu0 %v10963_v62  ;;  %v11029_v62 = vld [vmem:[%s14424_s3 + $0xcdc] ss:$100 sps:$4 sm:$0xff]   ;;  %v13143_v5 = vpop.f32.mrf.mxu0 }
 0x280   : > { %4480 = vmatpush2.bf16.msra.mxu1 %v10960_v63  ;;  %4555 = vmatprep.subr.bf16.mxu0 %v10968_v3  ;;  %v11026_v63 = vld [vmem:[%s14424_s3 + $0x1ec] ss:$100 sps:$4 sm:$0xff]   ;;  %v13138_v3 = vpop.f32.mrf.mxu1 }
 0x281   : > { %9436 = vmatprep.subr.msk.bf16.mxu1 %vm3599_vm3, %v9412_v4  ;;  %v11027_v4 = vld [vmem:[%s14424_s3 + $0xcd8] ss:$100 sps:$4 sm:$0xff]  }
 0x283   : > { %4482 = vmatmul.mubr.bf16.vlgmr.msra.gmra.mxu1 %v11761_v7  ;;  %4556 = vmatpush2.bf16.msra.mxu0 %v10966_v8  ;;  %v11024_v8 = vld [vmem:[%s14424_s3 + $0x1e8] ss:$100 sps:$4 sm:$0xff]  }
 0x284   : > { %4585 = vmatpush1.bf16.msra.mxu1 %v3661_v10  ;;  %4557 = vmatprep.subr.bf16.mxu0 %v10973_v9  ;;  %v11033_v9 = vld [vmem:[%s14424_s3 + $0xc18] ss:$100 sps:$4 sm:$0xff]   ;;  %v13151_v10 = vpop.f32.mrf.mxu1 }
 0x285   : > { %4586 = vmatprep.subr.bf16.mxu1 %v10976_v11  ;;  %4610 = vmatprep.mubr.bf16.mxu1 %v11500_v1  ;;  %v11032_v11 = vld [vmem:[%s14424_s3 + $0x124] ss:$100 sps:$4 sm:$0xff]  }
 0x287   : > { %4558 = vmatpush2.bf16.msra.mxu0 %v10971_v12  ;;  %v13156_v12 = vpop.f32.mrf.mxu0 }
 0x288   : > { %4587 = vmatpush1.bf16.msra.mxu1 %v10974_v13  ;;  %4559 = vmatprep.subr.bf16.mxu0 %v10979_v14  ;;  %v11034_v13 = vld [vmem:[%s14424_s3 + $0x5d8] ss:$100 sps:$4 sm:$0xff]   ;;  %v11030_v14 = vld [vmem:[%s14424_s3 + $0x120] ss:$100 sps:$4 sm:$0xff]  }
 0x289   : > { %4588 = vmatprep.subr.bf16.mxu1 %v10982_v15  ;;  %v11038_v15 = vld [vmem:[%s14424_s3 + $0xb50] ss:$100 sps:$4 sm:$0xff]  }
 0x28b   : > { %4560 = vmatpush2.bf16.msra.mxu0 %v10977_v16  ;;  %v13167_v16 = vpop.f32.mrf.mxu1 }
 0x28c   : > { %4589 = vmatpush1.bf16.msra.mxu1 %v10980_v17  ;;  %4561 = vmatprep.subr.bf16.mxu0 %v10985_v18  ;;  %v11037_v17 = vld [vmem:[%s14424_s3 + $0x5c] ss:$100 sps:$4 sm:$0xff]   ;;  %v13172_v18 = vpop.f32.mrf.mxu0 }
 0x28d   : > { %4590 = vmatprep.subr.bf16.mxu1 %v10988_v19  ;;  %v11039_v19 = vld [vmem:[%s14424_s3 + $0x510] ss:$100 sps:$4 sm:$0xff]  }
 0x28f   : > { %4562 = vmatpush2.bf16.msra.mxu0 %v10983_v20  ;;  %v11035_v20 = vld [vmem:[%s14424_s3 + $0x58] ss:$100 sps:$4 sm:$0xff]  }
 0x290   : > { %4591 = vmatpush1.bf16.msra.mxu1 %v10986_v21  ;;  %4563 = vmatprep.subr.bf16.mxu0 %v10991_v22  ;;  %v11043_v21 = vld [vmem:[%s14424_s3 + $0xa88] ss:$100 sps:$4 sm:$0xff]   ;;  %v13186_v22 = vpop.f32.mrf.mxu1 }
 0x291   : > { %4592 = vmatprep.subr.bf16.mxu1 %v10994_v24  ;;  %v13191_v24 = vpop.f32.mrf.mxu0 }
 0x293   : > { %4564 = vmatpush2.bf16.msra.mxu0 %v10989_v26  ;;  %v11044_v26 = vld [vmem:[%s14424_s3 + $0x448] ss:$100 sps:$4 sm:$0xff]  }
 0x294   : > { %4593 = vmatpush1.bf16.msra.mxu1 %v10992_v27  ;;  %4565 = vmatprep.subr.bf16.mxu0 %v10997_v28  ;;  %v11040_v27 = vld [vmem:[%s14424_s3 + $0xc10] ss:$100 sps:$4 sm:$0xff]   ;;  %v11048_v28 = vld [vmem:[%s14424_s3 + $0x9c0] ss:$100 sps:$4 sm:$0xff]  }
 0x295   : > { %4621 = vmatprep.subr.bf16.mxu1 %v11000_v30  ;;  %v13202_v30 = vpop.f32.mrf.mxu1 }
 0x297   : > { %9437 = vmatmul.mubr.msk.bf16.vlgmr.msra.gmra.mxu1 %vm3595_vm5, %v11749_v2  ;;  %4566 = vmatpush2.bf16.msra.mxu0 %v10995_v33  ;;  %v13207_v33 = vpop.f32.mrf.mxu0 }
 0x298   : > { %4622 = vmatpush1.bf16.msra.mxu1 %v10998_v34  ;;  %4653 = vmatprep.mubr.bf16.mxu1 %v11757_v6  ;;  %v13209_v34 = vpop.f32.mrf.mxu1 }
 0x299   : > { %4623 = vmatprep.subr.bf16.mxu1 %v11003_v37  ;;  %9438 = vmatprep.subr.msk.bf16.mxu0 %vm3599_vm3, %v9414_v38  ;;  %v13214_v37 = vpop.f32.mrf.mxu0  ;;  %v11045_v38 = vld [vmem:[%s14424_s3 + $0xb48] ss:$100 sps:$4 sm:$0xff]  }
 0x29a   : > { %4568 = vmatmul.mubr.bf16.vlgmr.msra.gmra.mxu0 %v11761_v7 }
 0x29b   : > { %4671 = vmatpush1.bf16.msra.mxu0 %v3667_v41  ;;  %4696 = vmatprep.mubr.bf16.mxu0 %v11500_v1  ;;  %v11052_v41 = vld [vmem:[%s14424_s3 + $0xa84] ss:$100 sps:$4 sm:$0xff]  }
 0x29c   : > { %4624 = vmatpush1.bf16.msra.mxu1 %v11001_v40  ;;  %4672 = vmatprep.subr.bf16.mxu0 %v11011_v42  ;;  %v11053_v40 = vld [vmem:[%s14424_s3 + $0x8f8] ss:$100 sps:$4 sm:$0xff]   ;;  %v13225_v42 = vpop.f32.mrf.mxu1 }
 0x29d   : > { %4625 = vmatprep.subr.bf16.mxu1 %v11008_v44  ;;  %v11054_v44 = vld [vmem:[%s14424_s3 + $0x2b8] ss:$100 sps:$4 sm:$0xff]  }
 0x29f   : > { %4673 = vmatpush1.bf16.msra.mxu0 %v11009_v47  ;;  %v13230_v47 = vpop.f32.mrf.mxu0 }
 0x2a0   : > { %4626 = vmatpush1.bf16.msra.mxu1 %v11006_v49  ;;  %4674 = vmatprep.subr.bf16.mxu0 %v11017_v50  ;;  %v11050_v49 = vld [vmem:[%s14424_s3 + $0xa80] ss:$100 sps:$4 sm:$0xff]   ;;  %v11058_v50 = vld [vmem:[%s14424_s3 + $0x830] ss:$100 sps:$4 sm:$0xff]  }
 0x2a1   : > { %4627 = vmatprep.subr.bf16.mxu1 %v11014_v51  ;;  %v11057_v51 = vld [vmem:[%s14424_s3 + $0x9bc] ss:$100 sps:$4 sm:$0xff]  }
 0x2a3   : > { %4675 = vmatpush1.bf16.msra.mxu0 %v11015_v53  ;;  %v13241_v53 = vpop.f32.mrf.mxu1 }
 0x2a4   : > { %4628 = vmatpush1.bf16.msra.mxu1 %v11012_v55  ;;  %4676 = vmatprep.subr.bf16.mxu0 %v11023_v56  ;;  %v11059_v55 = vld [vmem:[%s14424_s3 + $0x1f0] ss:$100 sps:$4 sm:$0xff]   ;;  %v13246_v56 = vpop.f32.mrf.mxu0 }
 0x2a5   : > { %4629 = vmatprep.subr.bf16.mxu1 %v11020_v57  ;;  %v11055_v57 = vld [vmem:[%s14424_s3 + $0x9b8] ss:$100 sps:$4 sm:$0xff]  }
 0x2a7   : > { %4677 = vmatpush1.bf16.msra.mxu0 %v11021_v59  ;;  %v11063_v59 = vld [vmem:[%s14424_s3 + $0x768] ss:$100 sps:$4 sm:$0xff]  }
 0x2a8   : > { %4630 = vmatpush1.bf16.msra.mxu1 %v11018_v61  ;;  %4678 = vmatprep.subr.bf16.mxu0 %v11029_v62  ;;  %v11062_v61 = vld [vmem:[%s14424_s3 + $0x8f4] ss:$100 sps:$4 sm:$0xff]   ;;  %v13257_v62 = vpop.f32.mrf.mxu1 }
 0x2a9   : > { %4631 = vmatprep.subr.bf16.mxu1 %v11026_v63  ;;  %v11064_v63 = vld [vmem:[%s14424_s3 + $0x128] ss:$100 sps:$4 sm:$0xff]  }
 0x2ab   : > { %4679 = vmatpush1.bf16.msra.mxu0 %v11027_v4  ;;  %v13262_v4 = vpop.f32.mrf.mxu0 }
 0x2ac   : > { %4632 = vmatpush1.bf16.msra.mxu1 %v11024_v8  ;;  %10043 = vmatprep.subr.bf16.mxu0 %v11033_v9  ;;  %v11060_v8 = vld [vmem:[%s14424_s3 + $0x8f0] ss:$100 sps:$4 sm:$0xff]   ;;  %v11068_v9 = vld [vmem:[%s14424_s3 + $0x6a0] ss:$100 sps:$4 sm:$0xff]  }
 0x2ad   : > { %4633 = vmatprep.subr.bf16.mxu1 %v11032_v11  ;;  %v13270_v11 = vpop.f32.mrf.mxu1 }
 0x2ae   : > { %9439 = vmatmul.mubr.msk.bf16.vlgmr.msra.gmra.mxu0 %vm3595_vm5, %v11749_v2 }
 0x2af   : > { %10044 = vmatpush3.bf16.msra.mxu0 %v11034_v13  ;;  %4739 = vmatprep.mubr.bf16.mxu0 %v11757_v6  ;;  %v11042_v6 = vld [vmem:[%s14424_s3 + $0xc14] ss:$100 sps:$4 sm:$0xff]   ;;  %v11067_v13 = vld [vmem:[%s14424_s3 + $0x82c] ss:$100 sps:$4 sm:$0xff]  }
 0x2b0   : > { %4634 = vmatpush1.bf16.msra.mxu1 %v11030_v14  ;;  %10045 = vmatprep.subr.bf16.mxu0 %v11038_v15  ;;  %v13275_v14 = vpop.f32.mrf.mxu0  ;;  %v11069_v15 = vld [vmem:[%s14424_s3 + $0x60] ss:$100 sps:$4 sm:$0xff]  }
 0x2b1   : > { %4635 = vmatprep.subr.bf16.mxu1 %v11037_v17  ;;  %v11065_v17 = vld [vmem:[%s14424_s3 + $0x828] ss:$100 sps:$4 sm:$0xff]  }
 0x2b3   : > { %10046 = vmatpush3.bf16.msra.mxu0 %v11039_v19  ;;  %v3843_v19 = vadd.f32 %v13127_v60, %v13122_v58 }
 0x2b4   : > { %4636 = vmatpush1.bf16.msra.mxu1 %v11035_v20  ;;  %10047 = vmatprep.subr.bf16.mxu0 %v11043_v21  ;;  %v13285_v20 = vpop.f32.mrf.mxu1  ;;  %v11072_v21 = vld [vmem:[%s14424_s3 + $0x764] ss:$100 sps:$4 sm:$0xff]  }
 0x2b5   : > { %4637 = vmatprep.subr.bf16.mxu1 %v11042_v6  ;;  %v13290_v6 = vpop.f32.mrf.mxu0 }
 0x2b6   : > { %v4100_v60 = vpop.f32.mrf.mxu1 }
 0x2b7   : > { %10048 = vmatpush3.bf16.msra.mxu0 %v11044_v26  ;;  %v3839_v26 = vadd.f32 %v13095_v48, %v13089_v46  ;;  %v11073_v46 = vld [vmem:[%s14424_s3 + $0x698] ss:$100 sps:$4 sm:$0xff]   ;;  %v3929_v48 = vadd.f32 %v13186_v22, %v13191_v24 }
 0x2b8   : > { %4638 = vmatpush2.bf16.msra.mxu1 %v11040_v27  ;;  %10049 = vmatprep.subr.bf16.mxu0 %v11048_v28  ;;  %v11070_v27 = vld [vmem:[%s14424_s3 + $0x760] ss:$100 sps:$4 sm:$0xff]  }
 0x2b9   : > { %4639 = vmatprep.subr.bf16.mxu1 %v11047_v31  ;;  %v4951_v58 = vpack.c.bf16 %v3843_v19, %v3839_v26  ;;  %v11075_v28 = vld [vmem:[%s14424_s3 + $0x69c] ss:$100 sps:$4 sm:$0xff]   ;;  %v4057_v31 = vpop.f32.mrf.mxu0 }
 0x2ba   : > { %v11083_v19 = vld [vmem:[%s14424_s3 + $0xce0] ss:$100 sps:$4 sm:$0xff]  }
 0x2bb   : > { %10050 = vmatpush3.bf16.msra.mxu0 %v11049_v35  ;;  %v13310_v35 = vpop.f32.mrf.mxu1 }
 0x2bc   : > { %4640 = vmatpush2.bf16.msra.mxu1 %v11045_v38  ;;  %10051 = vmatprep.subr.bf16.mxu0 %v11053_v40  ;;  %v11077_v38 = vld [vmem:[%s14424_s3 + $0x1000] ss:$0 sps:$4 sm:$0x33]   ;;  %v13315_v40 = vpop.f32.mrf.mxu0 }
 0x2bd   : > { %4641 = vmatprep.subr.bf16.mxu1 %v11052_v41  ;;  %v11076_v41 = vld [vmem:[%s14425_s4 + $0x10] sm:$0xff]   ;;  %v3673_v24 = vsel %vm3599_vm3, %v11077_v38, 0 }
 0x2bf   : > { %10052 = vmatpush3.bf16.msra.mxu0 %v11054_v44  ;;  %v3925_v44 = vadd.f32 %v13151_v10, %v13156_v12  ;;  %v11078_v10 = vld [vmem:[%s14424_s3 + $0xf38] ss:$100 sps:$4 sm:$0xff]   ;;  %v4015_v12 = vadd.f32 %v13246_v56, %v13241_v53  ;;  %v11080_v53 = vld [vmem:[%s14424_s3 + $0xe70] ss:$100 sps:$4 sm:$0xff]  }
 0x2c0   : > { %4642 = vmatpush2.bf16.msra.mxu1 %v11050_v49  ;;  %10053 = vmatprep.subr.bf16.mxu0 %v11058_v50  ;;  %v4139_v49 = vpop.f32.mrf.mxu1  ;;  %v4182_v50 = vpop.f32.mrf.mxu0 }
 0x2c1   : > { %4643 = vmatprep.subr.bf16.mxu1 %v11057_v51  ;;  %v5065_v22 = vpack.c.bf16 %v3929_v48, %v3925_v44 }
 0x2c2   : > { %v13325_v51 = vpop.f32.mrf.mxu1 }
 0x2c3   : > { %10054 = vmatpush3.bf16.msra.mxu0 %v11059_v55  ;;  %v13328_v55 = vpop.f32.mrf.mxu0 }
 0x2c4   : > { %4644 = vmatpush2.bf16.msra.mxu1 %v11055_v57  ;;  %10055 = vmatprep.subr.bf16.mxu0 %v11063_v59  ;;  %v4011_v57 = vadd.f32 %v13214_v37, %v13209_v34  ;;  %v4143_v59 = vpop.f32.mrf.mxu1  ;;  %v11081_v34 = vld [vmem:[%s14424_s3 + $0xda8] ss:$100 sps:$4 sm:$0xff]   ;;  %v4101_v37 = vadd.f32 %v4100_v60, %v4057_v31  ;;  %v4183_v31 = vadd.f32 %v4182_v50, %v4139_v49  ;;  %v11086_v50 = vld [vmem:[%s14425_s4 + $0x50] sm:$0xff]  }
 0x2c5   : > { %4645 = vmatprep.subr.bf16.mxu1 %v11062_v61  ;;  %v4186_v61 = vpop.f32.mrf.mxu0 }
 0x2c6   : > { %v5179_v56 = vpack.c.bf16 %v4015_v12, %v4011_v57  ;;  %v11087_v12 = vld [vmem:[%s14425_s4] sm:$0xff]  }
 0x2c7   : > { %10056 = vmatpush3.bf16.msra.mxu0 %v11064_v63  ;;  %v13351_v63 = vpop.f32.mrf.mxu1 }
 0x2c8   : > { %4646 = vmatpush2.bf16.msra.mxu1 %v11060_v8  ;;  %10057 = vmatprep.subr.bf16.mxu0 %v11068_v9  ;;  %v13355_v8 = vpop.f32.mrf.mxu0 }
 0x2c9   : > { %4647 = vmatprep.subr.bf16.mxu1 %v11067_v13  ;;  %v4268_v9 = vpop.f32.mrf.mxu1 }
 0x2ca   : > { %v4225_v13 = vpop.f32.mrf.mxu0 }
 0x2cb   : > { %10058 = vmatpush3.bf16.msra.mxu0 %v11069_v15  ;;  %v11082_v15 = vld [vmem:[%s14425_s4 + $0x30] sm:$0xff]   ;;  %v13370_v26 = vpop.f32.mrf.mxu1 }
 0x2cc   : > { %4648 = vmatpush2.bf16.msra.mxu1 %v11065_v17  ;;  %10161 = vmatprep.subr.bf16.mxu0 %v11498_v0  ;;  %v4097_v17 = vadd.f32 %v13270_v11, %v13275_v14  ;;  %v3755_v11 = vadd.f32 %v13047_v29, %v13055_v32  ;;  %v4187_v14 = vadd.f32 %v4186_v61, %v4143_v59 }
 0x2cd   : > { %4649 = vmatprep.subr.bf16.mxu1 %v11072_v21  ;;  %v4272_v60 = vpop.f32.mrf.mxu1 }
 0x2ce   : > { %4740 = vmatmul.mubr.bf16.vlgmr.msra.gmra.mxu0 %v11761_v7  ;;  %v5293_v21 = vpack.c.bf16 %v4101_v37, %v4097_v17  ;;  %v5407_v29 = vpack.c.bf16 %v4187_v14, %v4183_v31  ;;  %v4013_v17 = vadd.f32 %v13230_v47, %v13225_v42  ;;  %v11097_v42 = vld [vmem:[%s14425_s4 + $0x80] sm:$0xff]   ;;  %v11092_v47 = vld [vmem:[%s14425_s4 + $0x38] sm:$0xff]   ;;  %v11095_v31 = vld [vmem:[%s14425_s4 + $0x68] sm:$0xff]  }
 0x2cf   : > { %10162 = vmatpush3.bf16.msra.mxu0 %v4951_v58  ;;  %10163 = vmatprep.mubr.msk.bf16.mxu0 %vm11499_vm1, %v11498_v0  ;;  %v13375_v58 = vpop.f32.mrf.mxu0  ;;  %v13391_v32 = vpop.f32.mrf.mxu1 }
 0x2d0   : > { %4650 = vmatpush2.bf16.msra.mxu1 %v11070_v27  ;;  %10173 = vmatprep.subr.bf16.mxu0 %v11498_v0  ;;  %v3759_v27 = vadd.f32 %v13080_v43, %v13086_v45  ;;  %v11084_v45 = vld [vmem:[%s14425_s4 + $0x40] sm:$0xff]  }
 0x2d1   : > { %4651 = vmatprep.subr.bf16.mxu1 %v11075_v28  ;;  %v4229_v43 = vpop.f32.mrf.mxu0 }
 0x2d2   : > { %v4846_v28 = vpack.c.bf16 %v3759_v27, %v3755_v11 }
 0x2d3   : > { %v13396_v48 = vpop.f32.mrf.mxu0 }
 0x2d4   : > { %4652 = vmatpush2.bf16.msra.mxu1 %v11073_v46  ;;  %v3757_v46 = vadd.f32 %v13063_v36, %v13068_v39  ;;  %v4273_v36 = vadd.f32 %v4272_v60, %v4229_v43  ;;  %v4103_v60 = vadd.f32 %v13310_v35, %v13315_v40  ;;  %v4189_v35 = vadd.f32 %v13355_v8, %v13351_v63  ;;  %v11094_v63 = vld [vmem:[%s14425_s4 + $0x58] sm:$0xff]  }
 0x2d5   : > { %10135 = vmatprep.subr.bf16.mxu1 %v11498_v0  ;;  %v4354_v44 = vpop.f32.mrf.mxu0  ;;  %v4271_v8 = vadd.f32 %v13370_v26, %v13375_v58 }
 0x2d6   : > { %10164 = vmatmul.mubr.msk.bf16.vlgmr.msra.gmra.mxu0 %vm4855_vm6, %v11076_v41  ;;  %v3753_v41 = vadd.f32 %v13031_v23, %v13036_v25  ;;  %v3845_v25 = vadd.f32 %v13143_v5, %v13138_v3  ;;  %v11088_v3 = vld [vmem:[%s14425_s4 + $0x60] sm:$0xff]  }
 0x2d7   : > { %4654 = vmatmul.mubr.bf16.vlgmr.msra.gmra.mxu1 %v11761_v7  ;;  %10174 = vmatpush3.bf16.msra.mxu0 %v5065_v22  ;;  %v11079_v7 = vld [vmem:[%s14425_s4 + $0x20] sm:$0xff]   ;;  %v4269_v22 = vadd.f32 %v4268_v9, %v4225_v13 }
 0x2d8   : > { %10136 = vmatpush3.bf16.msra.mxu1 %v3673_v24  ;;  %10175 = vmatprep.mubr.msk.bf16.mxu0 %vm11499_vm1, %v11498_v0  ;;  %v4841_v39 = vpack.c.bf16 %v3757_v46, %v3753_v41  ;;  %v13413_v24 = vpop.f32.mrf.mxu0  ;;  %v11098_v41 = vld [vmem:[%s14425_s4 + $0x88] sm:$0xff]  }
 0x2d9   : > { %10137 = vmatprep.subr.bf16.mxu1 %v11498_v0  ;;  %10185 = vmatprep.subr.bf16.mxu0 %v11498_v0  ;;  %v5521_v23 = vpack.c.bf16 %v4273_v36, %v4269_v22 }
 0x2da   : > { %10145 = vmatprep.mubr.msk.bf16.mxu1 %vm11499_vm1, %v11498_v0  ;;  %v4358_v57 = vpop.f32.mrf.mxu0 }
 0x2dc   : > { %10138 = vmatpush3.bf16.msra.mxu1 %v11078_v10  ;;  %v4360_v9 = vpop.f32.mrf.mxu0 }
 0x2dd   : > { %10139 = vmatprep.subr.bf16.mxu1 %v11498_v0 }
 0x2de   : > { %10176 = vmatmul.mubr.msk.bf16.vlgmr.msra.gmra.mxu0 %vm4855_vm6, %v11079_v7  ;;  %v3841_v7 = vadd.f32 %v13111_v54, %v13106_v52  ;;  %v3931_v52 = vadd.f32 %v13202_v30, %v13207_v33  ;;  %v11089_v54 = vld [vmem:[%s14425_s4 + $0x18] sm:$0xff]   ;;  %v11091_v30 = vld [vmem:[%s14425_s4 + $0x70] sm:$0xff]  }
 0x2df   : > { %10186 = vmatpush3.bf16.msra.mxu0 %v5179_v56  ;;  %10187 = vmatprep.mubr.msk.bf16.mxu0 %vm11499_vm1, %v11498_v0  ;;  %v3927_v56 = vadd.f32 %v13167_v16, %v13172_v18  ;;  %v4017_v16 = vadd.f32 %v13262_v4, %v13257_v62 }
 0x2e0   : > { %10140 = vmatpush3.bf16.msra.mxu1 %v11080_v53  ;;  %10197 = vmatprep.subr.bf16.mxu0 %v11498_v0  ;;  %v5008_v61 = vpack.c.bf16 %v3845_v25, %v3841_v7 }
 0x2e1   : > { %10141 = vmatprep.subr.bf16.mxu1 %v11498_v0  ;;  %v5122_v37 = vpack.c.bf16 %v3931_v52, %v3927_v56 }
 0x2e4   : > { %10142 = vmatpush3.bf16.msra.mxu1 %v11081_v34 }
 0x2e5   : > { %10143 = vmatprep.subr.bf16.mxu1 %v11498_v0 }
 0x2e6   : > { %10188 = vmatmul.mubr.msk.bf16.vlgmr.msra.gmra.mxu0 %vm4855_vm6, %v11082_v15  ;;  %v11090_v15 = vld [vmem:[%s14425_s4 + $0x28] sm:$0xff]  }
 0x2e7   : > { %10198 = vmatpush3.bf16.msra.mxu0 %v5293_v21  ;;  %10199 = vmatprep.mubr.msk.bf16.mxu0 %vm11499_vm1, %v11498_v0  ;;  %v5236_v21 = vpack.c.bf16 %v4017_v16, %v4013_v17 }
 0x2e8   : > { %10144 = vmatpush3.bf16.msra.mxu1 %v11083_v19  ;;  %10209 = vmatprep.subr.bf16.mxu0 %v11498_v0 }
 0x2e9   : > { %10149 = vmatprep.subr.bf16.mxu1 %v11498_v0 }
 0x2eb   : > { %10146 = vmatmul.mubr.msk.bf16.vlgmr.msra.gmra.mxu1 %vm3595_vm5, %v11749_v2  ;;  %v11085_v2 = vld [vmem:[%s14425_s4 + $0x8] sm:$0xff]  }
 0x2ec   : > { %10150 = vmatpush3.bf16.msra.mxu1 %v4846_v28  ;;  %10151 = vmatprep.mubr.msk.bf16.mxu1 %vm11499_vm1, %v11498_v0  ;;  %v4099_v28 = vadd.f32 %v13285_v20, %v13290_v6  ;;  %v11093_v20 = vld [vmem:[%s14425_s4 + $0x48] sm:$0xff]   ;;  %v4185_v6 = vadd.f32 %v13328_v55, %v13325_v51 }
 0x2ed   : > { %10155 = vmatprep.subr.bf16.mxu1 %v11498_v0 }
 0x2ee   : > { %10200 = vmatmul.mubr.msk.bf16.vlgmr.msra.gmra.mxu0 %vm4855_vm6, %v11084_v45  ;;  %v5350_v43 = vpack.c.bf16 %v4103_v60, %v4099_v28  ;;  %v5464_v40 = vpack.c.bf16 %v4189_v35, %v4185_v6  ;;  %v4275_v45 = vadd.f32 %v13391_v32, %v13396_v48  ;;  %v11096_v48 = vld [vmem:[%s14425_s4 + $0x78] sm:$0xff]  }
 0x2ef   : > { %v4311_v38 = vpop.f32.mrf.mxu1  ;;  %10210 = vmatpush3.bf16.msra.mxu0 %v5407_v29  ;;  %10211 = vmatprep.mubr.msk.bf16.mxu0 %vm11499_vm1, %v11498_v0 }
 0x2f0   : > { %10221 = vmatprep.subr.bf16.mxu0 %v11498_v0  ;;  %v4355_v5 = vadd.f32 %v4354_v44, %v4311_v38  ;;  %v5578_v51 = vpack.c.bf16 %v4275_v45, %v4271_v8 }
 0x2f1   : > { %v13407_v49 = vpop.f32.mrf.mxu1 }
 0x2f2   : > { %v4357_v29 = vadd.f32 %v13413_v24, %v13407_v49 }
 0x2f3   : > { %10152 = vmatmul.mubr.msk.bf16.vlgmr.msra.gmra.mxu1 %vm4855_vm6, %v11085_v2  ;;  %v4315_v10 = vpop.f32.mrf.mxu1 }
 0x2f4   : > { %10156 = vmatpush3.bf16.msra.mxu1 %v4841_v39  ;;  %10157 = vmatprep.mubr.msk.bf16.mxu1 %vm11499_vm1, %v11498_v0  ;;  %v4359_v59 = vadd.f32 %v4358_v57, %v4315_v10 }
 0x2f5   : > { %10167 = vmatprep.subr.bf16.mxu1 %v11498_v0  ;;  %v4317_v34 = vpop.f32.mrf.mxu1 }
 0x2f6   : > { %10212 = vmatmul.mubr.msk.bf16.vlgmr.msra.gmra.mxu0 %vm4855_vm6, %v11086_v50  ;;  %v5635_v53 = vpack.c.bf16 %v4359_v59, %v4355_v5  ;;  %v4361_v55 = vadd.f32 %v4360_v9, %v4317_v34  ;;  %v11100_v5 = vld [vmem:[%s14425_s4 + $0x98] sm:$0xff]  }
 0x2f7   : > { %10222 = vmatpush3.bf16.msra.mxu0 %v5521_v23  ;;  %10223 = vmatprep.mubr.msk.bf16.mxu0 %vm11499_vm1, %v11498_v0 }
 0x2f8   : > { %10233 = vmatprep.subr.bf16.mxu0 %v11498_v0  ;;  %v5692_v32 = vpack.c.bf16 %v4361_v55, %v4357_v29 }
 0x2fb   : > { %10158 = vmatmul.mubr.msk.bf16.vlgmr.msra.gmra.mxu1 %vm4855_vm6, %v11087_v12  ;;  %v6260_v12 = vld [vmem:[%s14426_s5] sm:$0xff] }
 0x2fc   : > { %10168 = vmatpush3.bf16.msra.mxu1 %v5008_v61  ;;  %10169 = vmatprep.mubr.msk.bf16.mxu1 %vm11499_vm1, %v11498_v0  ;;  %v11099_v61 = vld [vmem:[%s14425_s4 + $0x90] sm:$0xff]  }
 0x2fd   : > { %10179 = vmatprep.subr.bf16.mxu1 %v11498_v0  ;;  %6264 = vperm.xlu1 %10314, %v6260_v12  }
 0x2fe   : > { %10224 = vmatmul.mubr.msk.bf16.vlgmr.msra.gmra.mxu0 %vm4855_vm6, %v11088_v3 }
 0x2ff   : > { %10234 = vmatpush3.bf16.msra.mxu0 %v5635_v53  ;;  %10235 = vmatprep.mubr.msk.bf16.mxu0 %vm11499_vm1, %v11498_v0  ;;  %v6261_v53 = vld [vmem:[%s14426_s5 + $0x8] sm:$0xff] }
 0x300   : > { %10245 = vmatprep.subr.bf16.mxu0 %v11498_v0 }
 0x301   : > { %6269 = vperm.xlu1 %10314, %v6261_v53  }
 0x303   : > { %v4440_v33 = vpop.f32.mrf.mxu1  ;;  %10170 = vmatmul.mubr.msk.bf16.vlgmr.msra.gmra.mxu1 %vm4855_vm6, %v11089_v54 }
 0x304   : > { %10180 = vmatpush3.bf16.msra.mxu1 %v5122_v37  ;;  %10181 = vmatprep.mubr.msk.bf16.mxu1 %vm11499_vm1, %v11498_v0 }
 0x305   : > { %10191 = vmatprep.subr.bf16.mxu1 %v11498_v0  ;;  %v4442_v18 = vpop.f32.mrf.mxu1 }
 0x306   : > { %v4397_v13 = vpop.f32.mrf.mxu0  ;;  %10236 = vmatmul.mubr.msk.bf16.vlgmr.msra.gmra.mxu0 %vm4855_vm6, %v11091_v30 }
 0x307   : > { %10247 = vmatprep.mubr.msk.bf16.mxu0 %vm11499_vm1, %v11498_v0  ;;  %v4444_v27 = vpop.f32.mrf.mxu1  ;;  %v4441_v14 = vadd.f32 %v4440_v33, %v4397_v13 }
 0x308   : > { %v4399_v19 = vpop.f32.mrf.mxu0 }
 0x309   : > { %v4446_v26 = vpop.f32.mrf.mxu1  ;;  %v4443_v38 = vadd.f32 %v4442_v18, %v4399_v19  ;;  %v11101_v19 = vld [vmem:[%s14425_s4 + $0xa0] sm:$0xff]  }
 0x30a   : > { %v4401_v11 = vpop.f32.mrf.mxu0 }
 0x30b   : > { %v4445_v62 = vadd.f32 %v4444_v27, %v4401_v11  ;;  %10182 = vmatmul.mubr.msk.bf16.vlgmr.msra.gmra.mxu1 %vm4855_vm6, %v11090_v15  ;;  %v11102_v27 = vld [vmem:[%s14425_s4 + $0xa8] sm:$0xff]  }
 0x30c   : > { %10192 = vmatpush3.bf16.msra.mxu1 %v5236_v21  ;;  %10193 = vmatprep.mubr.msk.bf16.mxu1 %vm11499_vm1, %v11498_v0  ;;  %v4403_v46 = vpop.f32.mrf.mxu0 }
 0x30d   : > { %v5749_v4 = vpack.c.bf16 %v4445_v62, %v4441_v14  ;;  %10203 = vmatprep.subr.bf16.mxu1 %v11498_v0  ;;  %v4447_v58 = vadd.f32 %v4446_v26, %v4403_v46  ;;  %v11103_v26 = vld [vmem:[%s14425_s4 + $0xb0] sm:$0xff]  }
 0x30f   : > { %10246 = vmatpush3.bf16.msra.mxu0 %v5749_v4  ;;  %v5806_v2 = vpack.c.bf16 %v4447_v58, %v4443_v38  ;;  %v11104_v38 = vld [vmem:[%s14425_s4 + $0xb8] sm:$0xff]  }
 0x310   : > { %10257 = vmatprep.subr.bf16.mxu0 %v11498_v0 }
 0x312   : > { %10248 = vmatmul.mubr.msk.bf16.vlgmr.msra.gmra.mxu0 %vm4855_vm6, %v11097_v42 }
 0x313   : > { %10194 = vmatmul.mubr.msk.bf16.vlgmr.msra.gmra.mxu1 %vm4855_vm6, %v11092_v47  ;;  %10259 = vmatprep.mubr.msk.bf16.mxu0 %vm11499_vm1, %v11498_v0 }
 0x314   : > { %10204 = vmatpush3.bf16.msra.mxu1 %v5350_v43  ;;  %10205 = vmatprep.mubr.msk.bf16.mxu1 %vm11499_vm1, %v11498_v0 }
 0x315   : > { %10215 = vmatprep.subr.bf16.mxu1 %v11498_v0 }
 0x31a   : > { %v4526_v44 = vpop.f32.mrf.mxu0 }
 0x31b   : > { %10206 = vmatmul.mubr.msk.bf16.vlgmr.msra.gmra.mxu1 %vm4855_vm6, %v11093_v20 }
 0x31c   : > { %10216 = vmatpush3.bf16.msra.mxu1 %v5464_v40  ;;  %10217 = vmatprep.mubr.msk.bf16.mxu1 %vm11499_vm1, %v11498_v0  ;;  %v4528_v36 = vpop.f32.mrf.mxu0 }
 0x31d   : > { %10227 = vmatprep.subr.bf16.mxu1 %v11498_v0 }
 0x31e   : > { %v4530_v49 = vpop.f32.mrf.mxu0 }
 0x320   : > { %v4532_v25 = vpop.f32.mrf.mxu0 }
 0x323   : > { %10218 = vmatmul.mubr.msk.bf16.vlgmr.msra.gmra.mxu1 %vm4855_vm6, %v11094_v63 }
 0x324   : > { %10228 = vmatpush3.bf16.msra.mxu1 %v5578_v51  ;;  %10229 = vmatprep.mubr.msk.bf16.mxu1 %vm11499_vm1, %v11498_v0 }
 0x325   : > { %10239 = vmatprep.subr.bf16.mxu1 %v11498_v0 }
 0x32b   : > { %10230 = vmatmul.mubr.msk.bf16.vlgmr.msra.gmra.mxu1 %vm4855_vm6, %v11095_v31 }
 0x32c   : > { %10240 = vmatpush3.bf16.msra.mxu1 %v5692_v32  ;;  %10241 = vmatprep.mubr.msk.bf16.mxu1 %vm11499_vm1, %v11498_v0 }
 0x32d   : > { %10251 = vmatprep.subr.bf16.mxu1 %v11498_v0 }
 0x333   : > { %10242 = vmatmul.mubr.msk.bf16.vlgmr.msra.gmra.mxu1 %vm4855_vm6, %v11096_v48 }
 0x334   : > { %10252 = vmatpush3.bf16.msra.mxu1 %v5806_v2  ;;  %10253 = vmatprep.mubr.msk.bf16.mxu1 %vm11499_vm1, %v11498_v0 }
 0x335   : > { %10263 = vmatprep.subr.bf16.mxu1 %v11498_v0 }
 0x33b   : > { %10254 = vmatmul.mubr.msk.bf16.vlgmr.msra.gmra.mxu1 %vm4855_vm6, %v11098_v41 }
 0x33c   : > { %10265 = vmatprep.mubr.msk.bf16.mxu1 %vm11499_vm1, %v11498_v0 }
 0x343   : > { %v4483_v39 = vpop.f32.mrf.mxu1 }
 0x344   : > { %v4527_v24 = vadd.f32 %v4526_v44, %v4483_v39 }
 0x345   : > { %v4485_v50 = vpop.f32.mrf.mxu1 }
 0x346   : > { %v4529_v7 = vadd.f32 %v4528_v36, %v4485_v50 }
 0x347   : > { %v4487_v22 = vpop.f32.mrf.mxu1 }
 0x348   : > { %v4531_v23 = vadd.f32 %v4530_v49, %v4487_v22 }
 0x349   : > { %v4489_v10 = vpop.f32.mrf.mxu1 }
 0x34a   : > { %v5863_v57 = vpack.c.bf16 %v4531_v23, %v4527_v24  ;;  %v4533_v59 = vadd.f32 %v4532_v25, %v4489_v10 }
 0x34c   : > { %v5920_v3 = vpack.c.bf16 %v4533_v59, %v4529_v7  ;;  %10258 = vmatpush3.bf16.msra.mxu0 %v5863_v57 }
 0x34d   : > { %10269 = vmatprep.subr.bf16.mxu0 %v11498_v0 }
 0x34e   : > { %10264 = vmatpush3.bf16.msra.mxu1 %v5920_v3  ;;  %v11105_v3 = vld [vmem:[%s14425_s4 + $0xc0] sm:$0xff]  }
 0x34f   : > { %10260 = vmatmul.mubr.msk.bf16.vlgmr.msra.gmra.mxu0 %vm4855_vm6, %v11099_v61  ;;  %10275 = vmatprep.subr.bf16.mxu1 %v11498_v0 }
 0x350   : > { %10271 = vmatprep.mubr.msk.bf16.mxu0 %vm11499_vm1, %v11498_v0 }
 0x351   : > { %10266 = vmatmul.mubr.msk.bf16.vlgmr.msra.gmra.mxu1 %vm4855_vm6, %v11100_v5 }
 0x352   : > { %10277 = vmatprep.mubr.msk.bf16.mxu1 %vm11499_vm1, %v11498_v0 }
 0x357   : > { %v4612_v52 = vpop.f32.mrf.mxu1 }
 0x359   : > { %v4614_v54 = vpop.f32.mrf.mxu1 }
 0x35a   : > { %v4569_v56 = vpop.f32.mrf.mxu0 }
 0x35b   : > { %v4616_v34 = vpop.f32.mrf.mxu1  ;;  %v4613_v33 = vadd.f32 %v4612_v52, %v4569_v56 }
 0x35c   : > { %v4571_v37 = vpop.f32.mrf.mxu0 }
 0x35d   : > { %v4618_v16 = vpop.f32.mrf.mxu1  ;;  %v4615_v13 = vadd.f32 %v4614_v54, %v4571_v37 }
 0x35e   : > { %v4573_v30 = vpop.f32.mrf.mxu0 }
 0x35f   : > { %v4617_v9 = vadd.f32 %v4616_v34, %v4573_v30 }
 0x360   : > { %v4575_v18 = vpop.f32.mrf.mxu0 }
 0x361   : > { %v5977_v15 = vpack.c.bf16 %v4617_v9, %v4613_v33  ;;  %v4619_v17 = vadd.f32 %v4618_v16, %v4575_v18 }
 0x363   : > { %v6034_v21 = vpack.c.bf16 %v4619_v17, %v4615_v13  ;;  %10270 = vmatpush3.bf16.msra.mxu0 %v5977_v15 }
 0x364   : > { %10281 = vmatprep.subr.bf16.mxu0 %v11498_v0 }
 0x365   : > { %10276 = vmatpush3.bf16.msra.mxu1 %v6034_v21 }
 0x366   : > { %10272 = vmatmul.mubr.msk.bf16.vlgmr.msra.gmra.mxu0 %vm4855_vm6, %v11101_v19  ;;  %10287 = vmatprep.subr.bf16.mxu1 %v11498_v0 }
 0x367   : > { %10283 = vmatprep.mubr.msk.bf16.mxu0 %vm11499_vm1, %v11498_v0 }
 0x368   : > { %10278 = vmatmul.mubr.msk.bf16.vlgmr.msra.gmra.mxu1 %vm4855_vm6, %v11102_v27 }
 0x369   : > { %10289 = vmatprep.mubr.msk.bf16.mxu1 %vm11499_vm1, %v11498_v0 }
 0x36e   : > { %v4698_v11 = vpop.f32.mrf.mxu0 }
 0x370   : > { %v4700_v14 = vpop.f32.mrf.mxu0 }
 0x372   : > { %v4702_v62 = vpop.f32.mrf.mxu0 }
 0x374   : > { %v4704_v4 = vpop.f32.mrf.mxu0 }
 0x38e   : > { %v10059_v60 = vpop.f32.mrf.mxu0 }
 0x390   : > { %v10060_v42 = vpop.f32.mrf.mxu0 }
 0x391   : > { %v10061_v24 = vadd.f32 %v10060_v42, %v10059_v60 }
 0x392   : > { %v10062_v47 = vpop.f32.mrf.mxu0 }
 0x394   : > { %v10063_v28 = vpop.f32.mrf.mxu0 }
 0x395   : > { %v10064_v23 = vadd.f32 %v10063_v28, %v10062_v47 }
 0x396   : > { %v4997_v43 = vpop.f32.mrf.mxu0 }
 0x397   : > { %v4655_v35 = vpop.f32.mrf.mxu1 }
 0x398   : > { %v10165_v20 = vpop.f32.mrf.mxu0  ;;  %v4699_v63 = vadd.f32 %v4698_v11, %v4655_v35 }
 0x399   : > { %v4657_v6 = vpop.f32.mrf.mxu1 }
 0x39a   : > { %v5000_v40 = vpop.f32.mrf.mxu0  ;;  %v4701_v31 = vadd.f32 %v4700_v14, %v4657_v6 }
 0x39b   : > { %v4659_v45 = vpop.f32.mrf.mxu1 }
 0x39c   : > { %v4703_v8 = vadd.f32 %v4702_v62, %v4659_v45  ;;  %v10166_v51 = vpop.f32.mrf.mxu0 }
 0x39d   : > { %v4661_v55 = vpop.f32.mrf.mxu1 }
 0x39e   : > { %v6091_v29 = vpack.c.bf16 %v4703_v8, %v4699_v63  ;;  %v4705_v32 = vadd.f32 %v4704_v4, %v4661_v55  ;;  %v5111_v46 = vpop.f32.mrf.mxu0 }
 0x3a0   : > { %v6148_v58 = vpack.c.bf16 %v4705_v32, %v4701_v31  ;;  %10282 = vmatpush3.bf16.msra.mxu0 %v6091_v29  ;;  %v10177_v48 = vpop.f32.mrf.mxu0 }
 0x3a1   : > { %10293 = vmatprep.subr.bf16.mxu0 %v11498_v0 }
 0x3a2   : > { %10288 = vmatpush3.bf16.msra.mxu1 %v6148_v58  ;;  %v5114_v2 = vpop.f32.mrf.mxu0 }
 0x3a3   : > { %10284 = vmatmul.mubr.msk.bf16.vlgmr.msra.gmra.mxu0 %vm4855_vm6, %v11103_v26 }
 0x3a4   : > { %10295 = vmatprep.mubr.msk.bf16.mxu0 %vm11499_vm1, %v11498_v0  ;;  %v10178_v41 = vpop.f32.mrf.mxu0 }
 0x3a5   : > { %10290 = vmatmul.mubr.msk.bf16.vlgmr.msra.gmra.mxu1 %vm4855_vm6, %v11104_v38 }
 0x3a6   : > { %v5225_v44 = vpop.f32.mrf.mxu0  ;;  %6409 = vmatprep.mubr.bf16.mxu1 %v11500_v1 }
 0x3a8   : > { %v10189_v36 = vpop.f32.mrf.mxu0 }
 0x3aa   : > { %v5228_v39 = vpop.f32.mrf.mxu0 }
 0x3ab   : > { %v4782_v49 = vpop.f32.mrf.mxu1 }
 0x3ac   : > { %v10190_v50 = vpop.f32.mrf.mxu0  ;;  %v4783_v12 = vadd.f32 %v10061_v24, %v4782_v49 }
 0x3ad   : > { %v10147_v22 = vpop.f32.mrf.mxu1 }
 0x3ae   : > { %v5339_v25 = vpop.f32.mrf.mxu0 }
 0x3af   : > { %v4785_v10 = vpop.f32.mrf.mxu1 }
 0x3b0   : > { %v4786_v7 = vadd.f32 %v10064_v23, %v4785_v10  ;;  %v10201_v57 = vpop.f32.mrf.mxu0 }
 0x3b1   : > { %v10148_v59 = vpop.f32.mrf.mxu1 }
 0x3b2   : > { %v6205_v0 = vpack.c.bf16 %v4786_v7, %v4783_v12  ;;  %v5342_v61 = vpop.f32.mrf.mxu0 }
 0x3b3   : > { %v4893_v5 = vpop.f32.mrf.mxu1 }
 0x3b4   : > { %10294 = vmatpush3.bf16.msra.mxu0 %v6205_v0  ;;  %v10202_v53 = vpop.f32.mrf.mxu0 }
 0x3b5   : > { %v10153_v52 = vpop.f32.mrf.mxu1 }
 0x3b6   : > { %v5453_v54 = vpop.f32.mrf.mxu0 }
 0x3b7   : > { %10296 = vmatmul.mubr.msk.bf16.vlgmr.msra.gmra.mxu0 %vm4855_vm6, %v11105_v3  ;;  %v4896_v56 = vpop.f32.mrf.mxu1 }
 0x3b8   : > { %v10213_v34 = vpop.f32.mrf.mxu0  ;;  %6568 = vmatprep.mubr.bf16.mxu0 %v11500_v1 }
 0x3b9   : > { %v10154_v37 = vpop.f32.mrf.mxu1 }
 0x3ba   : > { %v5456_v30 = vpop.f32.mrf.mxu0  ;;  %v11109_v37 = vld [vmem:[%s14427_s6 + $0xf0] ss:$8 sps:$4 sm:$0xff]  }
 0x3bb   : > { %v4942_v33 = vpop.f32.mrf.mxu1 }
 0x3bc   : > { %v4943_v9 = vadd.f32 %v4942_v33, %v4893_v5  ;;  %v10214_v16 = vpop.f32.mrf.mxu0 }
 0x3bd   : > { %v10159_v18 = vpop.f32.mrf.mxu1  ;;  %v11112_v16 = vld [vmem:[%s14427_s6 + $0x60] ss:$8 sps:$4 sm:$0xff]  }
 0x3be   : > { %v5004_v13 = vadd.f32 %v4997_v43, %v4943_v9  ;;  %v5567_v15 = vpop.f32.mrf.mxu0  ;;  %v11114_v18 = vld [vmem:[%s14427_s6 + $0x64] ss:$8 sps:$4 sm:$0xff]  }
 0x3bf   : > { %v4945_v17 = vpop.f32.mrf.mxu1 }
 0x3c0   : > { %v4946_v19 = vadd.f32 %v4945_v17, %v4896_v56  ;;  %v10225_v21 = vpop.f32.mrf.mxu0  ;;  %v11117_v17 = vld [vmem:[%s14427_s6 + $0xe4] ss:$8 sps:$4 sm:$0xff]  }
 0x3c1   : > { %v10160_v27 = vpop.f32.mrf.mxu1 }
 0x3c2   : > { %v5005_v11 = vadd.f32 %v5000_v40, %v4946_v19  ;;  %v5570_v14 = vpop.f32.mrf.mxu0  ;;  %v11120_v19 = vld [vmem:[%s14427_s6 + $0x54] ss:$8 sps:$4 sm:$0xff]  }
 0x3c3   : > { %v5054_v62 = vpop.f32.mrf.mxu1  ;;  %v11123_v27 = vld [vmem:[%s14427_s6 + $0xd4] ss:$8 sps:$4 sm:$0xff]  }
 0x3c4   : > { %v5061_v4 = vadd.f32 %v5054_v62, %v5004_v13  ;;  %v10226_v60 = vpop.f32.mrf.mxu0  ;;  %v11115_v13 = vld [vmem:[%s14427_s6 + $0xe0] ss:$8 sps:$4 sm:$0xff]  }
 0x3c5   : > { %v10171_v42 = vpop.f32.mrf.mxu1  ;;  %v11126_v60 = vld [vmem:[%s14427_s6 + $0x44] ss:$8 sps:$4 sm:$0xff]  }
 0x3c6   : > { %v5118_v47 = vadd.f32 %v5111_v46, %v5061_v4  ;;  %v13581_v28 = vpop.f32.mrf.mxu0  ;;  %v11121_v4 = vld [vmem:[%s14427_s6 + $0xd0] ss:$8 sps:$4 sm:$0xff]  }
 0x3c7   : > { %v5057_v35 = vpop.f32.mrf.mxu1 }
 0x3c8   : > { %v5062_v20 = vadd.f32 %v5057_v35, %v5005_v11  ;;  %v10237_v6 = vpop.f32.mrf.mxu0 }
 0x3c9   : > { %v10172_v45 = vpop.f32.mrf.mxu1 }
 0x3ca   : > { %v5119_v63 = vadd.f32 %v5114_v2, %v5062_v20  ;;  %v13583_v43 = vpop.f32.mrf.mxu0  ;;  %v11127_v45 = vld [vmem:[%s14427_s6 + $0xc0] ss:$8 sps:$4 sm:$0xff]  }
 0x3cb   : > { %v5168_v8 = vpop.f32.mrf.mxu1 }
 0x3cc   : > { %v5175_v51 = vadd.f32 %v5168_v8, %v5118_v47  ;;  %v10238_v55 = vpop.f32.mrf.mxu0  ;;  %v11129_v47 = vld [vmem:[%s14427_s6 + $0xc4] ss:$8 sps:$4 sm:$0xff]  }
 0x3cd   : > { %v10183_v31 = vpop.f32.mrf.mxu1 }
 0x3ce   : > { %v5232_v40 = vadd.f32 %v5225_v44, %v5175_v51  ;;  %v11132_v31 = vld [vmem:[%s14427_s6 + $0x34] ss:$8 sps:$4 sm:$0xff]  }
 0x3cf   : > { %v5171_v29 = vpop.f32.mrf.mxu1 }
 0x3d0   : > { %v5176_v32 = vadd.f32 %v5171_v29, %v5119_v63  ;;  %v11130_v29 = vld [vmem:[%s14427_s6 + $0x30] ss:$8 sps:$4 sm:$0xff]  }
 0x3d1   : > { %v10184_v26 = vpop.f32.mrf.mxu1 }
 0x3d2   : > { %v5233_v58 = vadd.f32 %v5228_v39, %v5176_v32  ;;  %v13585_v48 = vpop.f32.mrf.mxu0  ;;  %v11133_v32 = vld [vmem:[%s14427_s6 + $0xb0] ss:$8 sps:$4 sm:$0xff]  }
 0x3d3   : > { %v5282_v46 = vpop.f32.mrf.mxu1 }
 0x3d4   : > { %v5289_v38 = vadd.f32 %v5282_v46, %v5232_v40  ;;  %v10249_v41 = vpop.f32.mrf.mxu0  ;;  %v11138_v46 = vld [vmem:[%s14427_s6 + $0x24] ss:$8 sps:$4 sm:$0xff]  }
 0x3d5   : > { %v10195_v36 = vpop.f32.mrf.mxu1 }
 0x3d6   : > { %v5346_v49 = vadd.f32 %v5339_v25, %v5289_v38  ;;  %v13587_v50 = vpop.f32.mrf.mxu0  ;;  %v11108_v25 = vld [vmem:[%s14427_s6 + $0x74] ss:$8 sps:$4 sm:$0xff]   ;;  %v11141_v38 = vld [vmem:[%s14427_s6 + $0xa4] ss:$8 sps:$4 sm:$0xff]   ;;  %v11136_v36 = vld [vmem:[%s14427_s6 + $0x20] ss:$8 sps:$4 sm:$0xff]  }
 0x3d7   : > { %v5285_v2 = vpop.f32.mrf.mxu1  ;;  %6377 = vmatprep.subr.bf16.mxu1 %v11108_v25 }
 0x3d8   : > { %v5290_v22 = vadd.f32 %v5285_v2, %v5233_v58  ;;  %v10250_v24 = vpop.f32.mrf.mxu0 }
 0x3d9   : > { %v10196_v23 = vpop.f32.mrf.mxu1  ;;  %v11147_v24 = vld [vmem:[%s14427_s6 + $0x94] ss:$8 sps:$4 sm:$0xff]  }
 0x3da   : > { %v5347_v10 = vadd.f32 %v5342_v61, %v5290_v22  ;;  %v11111_v61 = vld [vmem:[%s14427_s6 + $0xf4] ss:$8 sps:$4 sm:$0xff]  }
 0x3db   : > { %v5396_v12 = vpop.f32.mrf.mxu1  ;;  %6536 = vmatprep.subr.bf16.mxu0 %v11111_v61  ;;  %v11144_v22 = vld [vmem:[%s14427_s6 + $0x14] ss:$8 sps:$4 sm:$0xff]  }
 0x3dc   : > { %v5403_v44 = vadd.f32 %v5396_v12, %v5346_v49  ;;  %6537 = vmatpush1.bf16.msra.mxu0 %v11109_v37  ;;  %v11139_v49 = vld [vmem:[%s14427_s6 + $0xa0] ss:$8 sps:$4 sm:$0xff]   ;;  %v11145_v12 = vld [vmem:[%s14427_s6 + $0x90] ss:$8 sps:$4 sm:$0xff]  }
 0x3dd   : > { %v10207_v7 = vpop.f32.mrf.mxu1  ;;  %6538 = vmatprep.subr.bf16.mxu0 %v11117_v17 }
 0x3de   : > { %v5460_v57 = vadd.f32 %v5453_v54, %v5403_v44  ;;  %v11106_v54 = vld [vmem:[%s14427_s6 + $0x70] ss:$8 sps:$4 sm:$0xff]  }
 0x3df   : > { %v5399_v59 = vpop.f32.mrf.mxu1  ;;  %6378 = vmatpush1.bf16.msra.mxu1 %v11106_v54 }
 0x3e0   : > { %v5404_v39 = vadd.f32 %v5399_v59, %v5347_v10  ;;  %6379 = vmatprep.subr.bf16.mxu1 %v11114_v18  ;;  %6539 = vmatpush1.bf16.msra.mxu0 %v11115_v13  ;;  %v11142_v10 = vld [vmem:[%s14427_s6 + $0x10] ss:$8 sps:$4 sm:$0xff]   ;;  %v11150_v59 = vld [vmem:[%s14427_s6 + $0x4] ss:$8 sps:$4 sm:$0xff]  }
 0x3e1   : > { %v10208_v0 = vpop.f32.mrf.mxu1  ;;  %6540 = vmatprep.subr.bf16.mxu0 %v11123_v27 }
 0x3e2   : > { %v5461_v3 = vadd.f32 %v5456_v30, %v5404_v39  ;;  %v11151_v39 = vld [vmem:[%s14427_s6 + $0x80] ss:$8 sps:$4 sm:$0xff]   ;;  %v11153_v0 = vld [vmem:[%s14427_s6 + $0x84] ss:$8 sps:$4 sm:$0xff]  }
 0x3e3   : > { %v5510_v5 = vpop.f32.mrf.mxu1  ;;  %6380 = vmatpush1.bf16.msra.mxu1 %v11112_v16 }
 0x3e4   : > { %v5517_v53 = vadd.f32 %v5510_v5, %v5460_v57  ;;  %6381 = vmatprep.subr.bf16.mxu1 %v11120_v19  ;;  %6541 = vmatpush1.bf16.msra.mxu0 %v11121_v4  ;;  %v11148_v57 = vld [vmem:[%s14427_s6] ss:$8 sps:$4 sm:$0xff]   ;;  %v11159_v5 = vld [vmem:[%s14427_s6 + $0x1f4] ss:$8 sps:$4 sm:$0xff]  }
 0x3e5   : > { %v10219_v52 = vpop.f32.mrf.mxu1  ;;  %6542 = vmatprep.subr.bf16.mxu0 %v11129_v47 }
 0x3e6   : > { %v5574_v56 = vadd.f32 %v5567_v15, %v5517_v53 }
 0x3e7   : > { %v5513_v34 = vpop.f32.mrf.mxu1 }
 0x3e8   : > { %v5518_v30 = vadd.f32 %v5513_v34, %v5461_v3  ;;  %6543 = vmatpush1.bf16.msra.mxu0 %v11127_v45  ;;  %v11156_v3 = vld [vmem:[%s14427_s6 + $0x174] ss:$8 sps:$4 sm:$0xff]  }
 0x3e9   : > { %v10220_v33 = vpop.f32.mrf.mxu1 }
 0x3ea   : > { %v5575_v9 = vadd.f32 %v5570_v14, %v5518_v30  ;;  %v11118_v14 = vld [vmem:[%s14427_s6 + $0x50] ss:$8 sps:$4 sm:$0xff]  }
 0x3eb   : > { %v5624_v15 = vpop.f32.mrf.mxu1  ;;  %6382 = vmatpush1.bf16.msra.mxu1 %v11118_v14 }
 0x3ec   : > { %v5631_v21 = vadd.f32 %v5624_v15, %v5574_v56  ;;  %6383 = vmatprep.subr.bf16.mxu1 %v11126_v60 }
 0x3ed   : > { %v10231_v11 = vpop.f32.mrf.mxu1 }
 0x3ee   : > { %v5688_v62 = vadd.f32 %v13581_v28, %v5631_v21  ;;  %v11124_v28 = vld [vmem:[%s14427_s6 + $0x40] ss:$8 sps:$4 sm:$0xff]  }
 0x3ef   : > { %v5627_v42 = vpop.f32.mrf.mxu1  ;;  %6384 = vmatpush1.bf16.msra.mxu1 %v11124_v28 }
 0x3f0   : > { %v5632_v35 = vadd.f32 %v5627_v42, %v5575_v9  ;;  %6385 = vmatprep.subr.bf16.mxu1 %v11132_v31 }
 0x3f1   : > { %v10232_v20 = vpop.f32.mrf.mxu1 }
 0x3f2   : > { %v5689_v6 = vadd.f32 %v13583_v43, %v5632_v35  ;;  %v11135_v43 = vld [vmem:[%s14427_s6 + $0xb4] ss:$8 sps:$4 sm:$0xff]  }
 0x3f3   : > { %v5738_v63 = vpop.f32.mrf.mxu1  ;;  %6544 = vmatprep.subr.bf16.mxu0 %v11135_v43  ;;  %6386 = vmatpush1.bf16.msra.mxu1 %v11130_v29  ;;  %v6265_v43 = vpop.permute.xlu1 %6264 }
 0x3f4   : > { %v5745_v8 = vadd.f32 %v5738_v63, %v5688_v62  ;;  %6545 = vmatpush1.bf16.msra.mxu0 %v11133_v32  ;;  %6387 = vmatprep.subr.bf16.mxu1 %v11138_v46 }
 0x3f5   : > { %v10243_v51 = vpop.f32.mrf.mxu1  ;;  %6546 = vmatprep.subr.bf16.mxu0 %v11141_v38 }
 0x3f6   : > { %v5802_v55 = vadd.f32 %v13585_v48, %v5745_v8 }
 0x3f7   : > { %v5741_v40 = vpop.f32.mrf.mxu1  ;;  %6388 = vmatpush1.bf16.msra.mxu1 %v11136_v36  ;;  %v6270_v38 = vpop.permute.xlu1 %6269 }
 0x3f8   : > { %v5746_v26 = vadd.f32 %v5741_v40, %v5689_v6  ;;  %6547 = vmatpush1.bf16.msra.mxu0 %v11139_v49  ;;  %6389 = vmatprep.subr.bf16.mxu1 %v11144_v22 }
 0x3f9   : > { %v10244_v58 = vpop.f32.mrf.mxu1  ;;  %6548 = vmatprep.subr.bf16.mxu0 %v11147_v24 }
 0x3fa   : > { %v5803_v48 = vadd.f32 %v13587_v50, %v5746_v26 }
 0x3fb   : > { %v5852_v41 = vpop.f32.mrf.mxu1  ;;  %6390 = vmatpush1.bf16.msra.mxu1 %v11142_v10 }
 0x3fc   : > { %v5859_v2 = vadd.f32 %v5852_v41, %v5802_v55  ;;  %6549 = vmatpush1.bf16.msra.mxu0 %v11145_v12  ;;  %6391 = vmatprep.subr.bf16.mxu1 %v11150_v59  ;;  %v11162_v12 = vld [vmem:[%s14427_s6 + $0x164] ss:$8 sps:$4 sm:$0xff]   ;;  %v11168_v59 = vld [vmem:[%s14427_s6 + $0x154] ss:$8 sps:$4 sm:$0xff]  }
 0x3fd   : > { %v10255_v50 = vpop.f32.mrf.mxu1  ;;  %6550 = vmatprep.subr.bf16.mxu0 %v11153_v0  ;;  %v11166_v0 = vld [vmem:[%s14427_s6 + $0x150] ss:$8 sps:$4 sm:$0xff]  }
 0x3fe   : > { %v11157_v50 = vld [vmem:[%s14427_s6 + $0x1f0] ss:$8 sps:$4 sm:$0xff]  }
 0x3ff   : > { %v5855_v23 = vpop.f32.mrf.mxu1  ;;  %6392 = vmatpush1.bf16.msra.mxu1 %v11148_v57  ;;  %v11163_v57 = vld [vmem:[%s14427_s6 + $0x1e0] ss:$8 sps:$4 sm:$0xff]  }
 0x400   : > { %v5860_v44 = vadd.f32 %v5855_v23, %v5803_v48  ;;  %6551 = vmatpush1.bf16.msra.mxu0 %v11151_v39  ;;  %6695 = vmatprep.subr.bf16.mxu1 %v11156_v3  ;;  %v11171_v39 = vld [vmem:[%s14427_s6 + $0x1d4] ss:$8 sps:$4 sm:$0xff]   ;;  %v11169_v3 = vld [vmem:[%s14427_s6 + $0x1d0] ss:$8 sps:$4 sm:$0xff]  }
 0x401   : > { %v10256_v7 = vpop.f32.mrf.mxu1  ;;  %6854 = vmatprep.subr.bf16.mxu0 %v11159_v5  ;;  %v11174_v5 = vld [vmem:[%s14427_s6 + $0x144] ss:$8 sps:$4 sm:$0xff]  }
 0x402   : > { %v11160_v7 = vld [vmem:[%s14427_s6 + $0x160] ss:$8 sps:$4 sm:$0xff]  }
 0x40f   : > { %v5909_v53 = vpop.f32.mrf.mxu0 }
 0x410   : > { %v5916_v52 = vadd.f32 %v5909_v53, %v5859_v2  ;;  %v11154_v2 = vld [vmem:[%s14427_s6 + $0x170] ss:$8 sps:$4 sm:$0xff]   ;;  %v11177_v53 = vld [vmem:[%s14427_s6 + $0x1c4] ss:$8 sps:$4 sm:$0xff]  }
 0x411   : > { %v10261_v56 = vpop.f32.mrf.mxu0  ;;  %v5966_v25 = vpop.f32.mrf.mxu1 }
 0x412   : > { %v5973_v61 = vadd.f32 %v5966_v25, %v5916_v52  ;;  %v11172_v52 = vld [vmem:[%s14427_s6 + $0x140] ss:$8 sps:$4 sm:$0xff]   ;;  %v11180_v25 = vld [vmem:[%s14427_s6 + $0x134] ss:$8 sps:$4 sm:$0xff]  }
 0x413   : > { %v5912_v34 = vpop.f32.mrf.mxu0  ;;  %v10267_v54 = vpop.f32.mrf.mxu1  ;;  %v11175_v56 = vld [vmem:[%s14427_s6 + $0x1c0] ss:$8 sps:$4 sm:$0xff]  }
 0x414   : > { %v5917_v37 = vadd.f32 %v5912_v34, %v5860_v44  ;;  %v11165_v44 = vld [vmem:[%s14427_s6 + $0x1e4] ss:$8 sps:$4 sm:$0xff]   ;;  %v11178_v34 = vld [vmem:[%s14427_s6 + $0x130] ss:$8 sps:$4 sm:$0xff]  }
 0x415   : > { %v10262_v30 = vpop.f32.mrf.mxu0  ;;  %v5969_v33 = vpop.f32.mrf.mxu1  ;;  %v11181_v54 = vld [vmem:[%s14427_s6 + $0x1b0] ss:$8 sps:$4 sm:$0xff]  }
 0x416   : > { %v5974_v9 = vadd.f32 %v5969_v33, %v5917_v37  ;;  %v11186_v37 = vld [vmem:[%s14427_s6 + $0x124] ss:$8 sps:$4 sm:$0xff]   ;;  %v11184_v33 = vld [vmem:[%s14427_s6 + $0x120] ss:$8 sps:$4 sm:$0xff]  }
 0x417   : > { %v10268_v16 = vpop.f32.mrf.mxu1  ;;  %v11189_v30 = vld [vmem:[%s14427_s6 + $0x1a4] ss:$8 sps:$4 sm:$0xff]  }
 0x418   : > { %v11192_v16 = vld [vmem:[%s14427_s6 + $0x114] ss:$8 sps:$4 sm:$0xff]  }
 0x426   : > { %v6023_v18 = vpop.f32.mrf.mxu0 }
 0x427   : > { %v6030_v13 = vadd.f32 %v6023_v18, %v5973_v61  ;;  %v11183_v61 = vld [vmem:[%s14427_s6 + $0x1b4] ss:$8 sps:$4 sm:$0xff]  }
 0x428   : > { %v10273_v15 = vpop.f32.mrf.mxu0  ;;  %v6080_v17 = vpop.f32.mrf.mxu1  ;;  %v11195_v18 = vld [vmem:[%s14427_s6 + $0x194] ss:$8 sps:$4 sm:$0xff]  }
 0x429   : > { %v6087_v19 = vadd.f32 %v6080_v17, %v6030_v13  ;;  %v11190_v13 = vld [vmem:[%s14427_s6 + $0x110] ss:$8 sps:$4 sm:$0xff]   ;;  %v11198_v17 = vld [vmem:[%s14427_s6 + $0x104] ss:$8 sps:$4 sm:$0xff]  }
 0x42a   : > { %v6026_v21 = vpop.f32.mrf.mxu0  ;;  %v10279_v27 = vpop.f32.mrf.mxu1  ;;  %v11193_v15 = vld [vmem:[%s14427_s6 + $0x190] ss:$8 sps:$4 sm:$0xff]  }
 0x42b   : > { %v6031_v11 = vadd.f32 %v6026_v21, %v5974_v9  ;;  %v11187_v9 = vld [vmem:[%s14427_s6 + $0x1a0] ss:$8 sps:$4 sm:$0xff]  }
 0x42c   : > { %v6083_v14 = vpop.f32.mrf.mxu1  ;;  %v10274_v62 = vpop.f32.mrf.mxu0  ;;  %v11196_v21 = vld [vmem:[%s14427_s6 + $0x100] ss:$8 sps:$4 sm:$0xff]  }
 0x42d   : > { %v6088_v4 = vadd.f32 %v6083_v14, %v6031_v11  ;;  %v11199_v27 = vld [vmem:[%s14427_s6 + $0x180] ss:$8 sps:$4 sm:$0xff]   ;;  %v11204_v11 = vld [vmem:[%s14427_s6 + $0x274] ss:$8 sps:$4 sm:$0xff]  }
 0x42e   : > { %v10280_v60 = vpop.f32.mrf.mxu1  ;;  %v11207_v14 = vld [vmem:[%s14427_s6 + $0x2f4] ss:$8 sps:$4 sm:$0xff]  }
 0x42f   : > { %v11202_v60 = vld [vmem:[%s14427_s6 + $0x270] ss:$8 sps:$4 sm:$0xff]  }
 0x463   : > { %v6137_v42 = vpop.f32.mrf.mxu0 }
 0x464   : > { %v6144_v8 = vadd.f32 %v6137_v42, %v6087_v19  ;;  %v11201_v19 = vld [vmem:[%s14427_s6 + $0x184] ss:$8 sps:$4 sm:$0xff]   ;;  %v11205_v42 = vld [vmem:[%s14427_s6 + $0x2f0] ss:$8 sps:$4 sm:$0xff]  }
 0x465   : > { %v10285_v47 = vpop.f32.mrf.mxu0  ;;  %v6194_v35 = vpop.f32.mrf.mxu1 }
 0x466   : > { %v6201_v51 = vadd.f32 %v6194_v35, %v6144_v8  ;;  %v11219_v8 = vld [vmem:[%s14427_s6 + $0x2d4] ss:$8 sps:$4 sm:$0xff]  }
 0x467   : > { %v6140_v20 = vpop.f32.mrf.mxu0  ;;  %v10291_v28 = vpop.f32.mrf.mxu1 }
 0x468   : > { %v6145_v55 = vadd.f32 %v6140_v20, %v6088_v4  ;;  %v11210_v20 = vld [vmem:[%s14427_s6 + $0x264] ss:$8 sps:$4 sm:$0xff]  }
 0x469   : > { %v6197_v6 = vpop.f32.mrf.mxu1  ;;  %v10286_v45 = vpop.f32.mrf.mxu0  ;;  %v11213_v28 = vld [vmem:[%s14427_s6 + $0x2e4] ss:$8 sps:$4 sm:$0xff]  }
 0x46a   : > { %v6202_v32 = vadd.f32 %v6197_v6, %v6145_v55  ;;  %v11208_v6 = vld [vmem:[%s14427_s6 + $0x260] ss:$8 sps:$4 sm:$0xff]   ;;  %v11217_v55 = vld [vmem:[%s14427_s6 + $0x2d0] ss:$8 sps:$4 sm:$0xff]  }
 0x46b   : > { %v10292_v63 = vpop.f32.mrf.mxu1  ;;  %v11211_v45 = vld [vmem:[%s14427_s6 + $0x2e0] ss:$8 sps:$4 sm:$0xff]  }
 0x46c   : > { %v11216_v63 = vld [vmem:[%s14427_s6 + $0x254] ss:$8 sps:$4 sm:$0xff]  }
 0x477   : > { %v6251_v31 = vpop.f32.mrf.mxu0 }
 0x478   : > { %v6258_v40 = vadd.f32 %v6251_v31, %v6201_v51  ;;  %v11214_v51 = vld [vmem:[%s14427_s6 + $0x250] ss:$8 sps:$4 sm:$0xff]   ;;  %v11222_v31 = vld [vmem:[%s14427_s6 + $0x244] ss:$8 sps:$4 sm:$0xff]  }
 0x479   : > { %v10297_v29 = vpop.f32.mrf.mxu0 }
 0x47a   : > { %v6272_v26 = vadd.f32 %v6265_v43, %v6258_v40  ;;  %v11225_v43 = vld [vmem:[%s14427_s6 + $0x2c4] ss:$8 sps:$4 sm:$0xff]   ;;  %v11220_v40 = vld [vmem:[%s14427_s6 + $0x240] ss:$8 sps:$4 sm:$0xff]  }
 0x47b   : > { %v6254_v58 = vpop.f32.mrf.mxu0  ;;  %v11223_v29 = vld [vmem:[%s14427_s6 + $0x2c0] ss:$8 sps:$4 sm:$0xff]  }
 0x47c   : > { %v6274_v48 = vmax.f32 %v6272_v26, 0.0  ;;  %v6259_v46 = vadd.f32 %v6254_v58, %v6202_v32  ;;  %v11228_v32 = vld [vmem:[%s14427_s6 + $0x234] ss:$8 sps:$4 sm:$0xff]   ;;  %v11226_v58 = vld [vmem:[%s14427_s6 + $0x230] ss:$8 sps:$4 sm:$0xff]  }
 0x47d   : > { %v10298_v41 = vpop.f32.mrf.mxu0  ;;  %v11231_v26 = vld [vmem:[%s14427_s6 + $0x2b4] ss:$8 sps:$4 sm:$0xff]  }
 0x47e   : > { %6276 = vst [vmem:[#allocation3] sm:$0xff] %v6274_v48  ;;  %v6273_v36 = vadd.f32 %v6270_v38, %v6259_v46  ;;  %v11229_v48 = vld [vmem:[%s14427_s6 + $0x2b0] ss:$8 sps:$4 sm:$0xff]   ;;  %v11234_v46 = vld [vmem:[%s14427_s6 + $0x224] ss:$8 sps:$4 sm:$0xff]  }
 0x47f   : > { %v11237_v38 = vld [vmem:[%s14427_s6 + $0x2a4] ss:$8 sps:$4 sm:$0xff]   ;;  %v11232_v41 = vld [vmem:[%s14427_s6 + $0x220] ss:$8 sps:$4 sm:$0xff]  }
 0x480   : > { %v6275_v49 = vmax.f32 %v6273_v36, 0.0  ;;  %v11235_v36 = vld [vmem:[%s14427_s6 + $0x2a0] ss:$8 sps:$4 sm:$0xff]  }
 0x482   : > { %6277 = vst [vmem:[#allocation3 + $0x8] sm:$0xff] %v6275_v49  ;;  %v11240_v49 = vld [vmem:[%s14427_s6 + $0x214] ss:$8 sps:$4 sm:$0xff]  }
 0x485   : > { %v6279_v22 = vld [vmem:[#allocation3] sm:$0x1]  ;;  %v6437_v24 = vld [vmem:[#allocation3 + $0x1] sm:$0x1]  ;;  %v6596_v62 = vld [vmem:[#allocation3 + $0x2] sm:$0x1] }
 0x486   : > { %v6280_v23 = vpack.c.bf16 %v6279_v22, %v6279_v22  ;;  %v6438_v10 = vpack.c.bf16 %v6437_v24, %v6437_v24  ;;  %v6755_v4 = vld [vmem:[#allocation3 + $0x3] sm:$0x1]  ;;  %v6597_v47 = vpack.c.bf16 %v6596_v62, %v6596_v62  ;;  %v11241_v22 = vld [vmem:[%s14427_s6 + $0x290] ss:$8 sps:$4 sm:$0xff]   ;;  %v11246_v24 = vld [vmem:[%s14427_s6 + $0x204] ss:$8 sps:$4 sm:$0xff]  }
 0x487   : > { %v6756_v35 = vpack.c.bf16 %v6755_v4, %v6755_v4  ;;  %v11291_v62 = vld [vmem:[%s14427_s6 + $0x394] ss:$8 sps:$4 sm:$0xff]   ;;  %v11286_v4 = vld [vmem:[%s14427_s6 + $0x310] ss:$8 sps:$4 sm:$0xff]  }
 0x488   : > { %6410 = vmatmul.mubr.bf16.vlgmr.msra.gmra.mxu1 %v6280_v23  ;;  %6569 = vmatmul.mubr.bf16.vlgmr.msra.gmra.mxu0 %v6438_v10  ;;  %v11249_v23 = vld [vmem:[%s14427_s6 + $0x284] ss:$8 sps:$4 sm:$0xff]   ;;  %v11244_v10 = vld [vmem:[%s14427_s6 + $0x200] ss:$8 sps:$4 sm:$0xff]  }
 0x489   : > { %6696 = vmatpush1.bf16.msra.mxu1 %v11154_v2  ;;  %6855 = vmatpush1.bf16.msra.mxu0 %v11157_v50  ;;  %v11243_v2 = vld [vmem:[%s14427_s6 + $0x294] ss:$8 sps:$4 sm:$0xff]   ;;  %v11238_v50 = vld [vmem:[%s14427_s6 + $0x210] ss:$8 sps:$4 sm:$0xff]  }
 0x48a   : > { %6697 = vmatprep.subr.bf16.mxu1 %v11162_v12  ;;  %6856 = vmatprep.subr.bf16.mxu0 %v11165_v44  ;;  %v11247_v12 = vld [vmem:[%s14427_s6 + $0x280] ss:$8 sps:$4 sm:$0xff]   ;;  %v11252_v44 = vld [vmem:[%s14427_s6 + $0x374] ss:$8 sps:$4 sm:$0xff]  }
 0x48b   : > { %6727 = vmatprep.mubr.bf16.mxu1 %v11500_v1  ;;  %6886 = vmatprep.mubr.bf16.mxu0 %v11500_v1 }
 0x48d   : > { %6698 = vmatpush1.bf16.msra.mxu1 %v11160_v7  ;;  %6857 = vmatpush1.bf16.msra.mxu0 %v11163_v57  ;;  %v11255_v7 = vld [vmem:[%s14427_s6 + $0x3f4] ss:$8 sps:$4 sm:$0xff]   ;;  %v6914_v57 = vld [vmem:[#allocation3 + $0x4] sm:$0x1] }
 0x48e   : > { %6699 = vmatprep.subr.bf16.mxu1 %v11168_v59  ;;  %6858 = vmatprep.subr.bf16.mxu0 %v11171_v39  ;;  %v7073_v59 = vld [vmem:[#allocation3 + $0x5] sm:$0x1]  ;;  %v11250_v39 = vld [vmem:[%s14427_s6 + $0x370] ss:$8 sps:$4 sm:$0xff]  }
 0x491   : > { %6700 = vmatpush1.bf16.msra.mxu1 %v11166_v0  ;;  %6859 = vmatpush1.bf16.msra.mxu0 %v11169_v3  ;;  %v11253_v0 = vld [vmem:[%s14427_s6 + $0x3f0] ss:$8 sps:$4 sm:$0xff]   ;;  %v6915_v3 = vpack.c.bf16 %v6914_v57, %v6914_v57  ;;  %v11339_v57 = vld [vmem:[%s14427_s6 + $0x494] ss:$8 sps:$4 sm:$0xff]  }
 0x492   : > { %6701 = vmatprep.subr.bf16.mxu1 %v11174_v5  ;;  %6860 = vmatprep.subr.bf16.mxu0 %v11177_v53  ;;  %v7074_v5 = vpack.c.bf16 %v7073_v59, %v7073_v59  ;;  %v11258_v53 = vld [vmem:[%s14427_s6 + $0x364] ss:$8 sps:$4 sm:$0xff]   ;;  %v11334_v59 = vld [vmem:[%s14427_s6 + $0x410] ss:$8 sps:$4 sm:$0xff]  }
 0x495   : > { %6702 = vmatpush1.bf16.msra.mxu1 %v11172_v52  ;;  %6861 = vmatpush1.bf16.msra.mxu0 %v11175_v56  ;;  %v11261_v52 = vld [vmem:[%s14427_s6 + $0x3e4] ss:$8 sps:$4 sm:$0xff]   ;;  %v11256_v56 = vld [vmem:[%s14427_s6 + $0x360] ss:$8 sps:$4 sm:$0xff]  }
 0x496   : > { %6703 = vmatprep.subr.bf16.mxu1 %v11180_v25  ;;  %6862 = vmatprep.subr.bf16.mxu0 %v11183_v61  ;;  %v11259_v25 = vld [vmem:[%s14427_s6 + $0x3e0] ss:$8 sps:$4 sm:$0xff]   ;;  %v11264_v61 = vld [vmem:[%s14427_s6 + $0x354] ss:$8 sps:$4 sm:$0xff]  }
 0x499   : > { %6704 = vmatpush1.bf16.msra.mxu1 %v11178_v34  ;;  %6863 = vmatpush1.bf16.msra.mxu0 %v11181_v54  ;;  %v11267_v34 = vld [vmem:[%s14427_s6 + $0x3d4] ss:$8 sps:$4 sm:$0xff]   ;;  %v11262_v54 = vld [vmem:[%s14427_s6 + $0x350] ss:$8 sps:$4 sm:$0xff]  }
 0x49a   : > { %6705 = vmatprep.subr.bf16.mxu1 %v11186_v37  ;;  %6864 = vmatprep.subr.bf16.mxu0 %v11189_v30  ;;  %v11265_v37 = vld [vmem:[%s14427_s6 + $0x3d0] ss:$8 sps:$4 sm:$0xff]   ;;  %v11270_v30 = vld [vmem:[%s14427_s6 + $0x344] ss:$8 sps:$4 sm:$0xff]  }
 0x49d   : > { %6706 = vmatpush1.bf16.msra.mxu1 %v11184_v33  ;;  %6865 = vmatpush1.bf16.msra.mxu0 %v11187_v9  ;;  %v11273_v33 = vld [vmem:[%s14427_s6 + $0x3c4] ss:$8 sps:$4 sm:$0xff]   ;;  %v11268_v9 = vld [vmem:[%s14427_s6 + $0x340] ss:$8 sps:$4 sm:$0xff]  }
 0x49e   : > { %6707 = vmatprep.subr.bf16.mxu1 %v11192_v16  ;;  %6866 = vmatprep.subr.bf16.mxu0 %v11195_v18  ;;  %v11271_v16 = vld [vmem:[%s14427_s6 + $0x3c0] ss:$8 sps:$4 sm:$0xff]   ;;  %v11276_v18 = vld [vmem:[%s14427_s6 + $0x334] ss:$8 sps:$4 sm:$0xff]  }
 0x4a1   : > { %6708 = vmatpush1.bf16.msra.mxu1 %v11190_v13  ;;  %6867 = vmatpush1.bf16.msra.mxu0 %v11193_v15  ;;  %v11279_v13 = vld [vmem:[%s14427_s6 + $0x3b4] ss:$8 sps:$4 sm:$0xff]   ;;  %v11274_v15 = vld [vmem:[%s14427_s6 + $0x330] ss:$8 sps:$4 sm:$0xff]  }
 0x4a2   : > { %6709 = vmatprep.subr.bf16.mxu1 %v11198_v17  ;;  %6868 = vmatprep.subr.bf16.mxu0 %v11201_v19  ;;  %v11277_v17 = vld [vmem:[%s14427_s6 + $0x3b0] ss:$8 sps:$4 sm:$0xff]   ;;  %v11282_v19 = vld [vmem:[%s14427_s6 + $0x324] ss:$8 sps:$4 sm:$0xff]  }
 0x4a5   : > { %6710 = vmatpush1.bf16.msra.mxu1 %v11196_v21  ;;  %6869 = vmatpush1.bf16.msra.mxu0 %v11199_v27  ;;  %v11285_v21 = vld [vmem:[%s14427_s6 + $0x3a4] ss:$8 sps:$4 sm:$0xff]   ;;  %v11280_v27 = vld [vmem:[%s14427_s6 + $0x320] ss:$8 sps:$4 sm:$0xff]  }
 0x4a6   : > { %7013 = vmatprep.subr.bf16.mxu1 %v11204_v11  ;;  %7172 = vmatprep.subr.bf16.mxu0 %v11207_v14  ;;  %v11283_v11 = vld [vmem:[%s14427_s6 + $0x3a0] ss:$8 sps:$4 sm:$0xff]   ;;  %v11288_v14 = vld [vmem:[%s14427_s6 + $0x314] ss:$8 sps:$4 sm:$0xff]  }
 0x4a8   : > { %6728 = vmatmul.mubr.bf16.vlgmr.msra.gmra.mxu1 %v6597_v47  ;;  %6887 = vmatmul.mubr.bf16.vlgmr.msra.gmra.mxu0 %v6756_v35  ;;  %v11297_v47 = vld [vmem:[%s14427_s6 + $0x384] ss:$8 sps:$4 sm:$0xff]   ;;  %v11292_v35 = vld [vmem:[%s14427_s6 + $0x300] ss:$8 sps:$4 sm:$0xff]  }
 0x4a9   : > { %7014 = vmatpush1.bf16.msra.mxu1 %v11202_v60  ;;  %7173 = vmatpush1.bf16.msra.mxu0 %v11205_v42  ;;  %v11289_v60 = vld [vmem:[%s14427_s6 + $0x390] ss:$8 sps:$4 sm:$0xff]   ;;  %v11294_v42 = vld [vmem:[%s14427_s6 + $0x304] ss:$8 sps:$4 sm:$0xff]  }
 0x4aa   : > { %7015 = vmatprep.subr.bf16.mxu1 %v11210_v20  ;;  %7174 = vmatprep.subr.bf16.mxu0 %v11213_v28  ;;  %v11295_v20 = vld [vmem:[%s14427_s6 + $0x380] ss:$8 sps:$4 sm:$0xff]   ;;  %v11300_v28 = vld [vmem:[%s14427_s6 + $0x474] ss:$8 sps:$4 sm:$0xff]  }
 0x4ab   : > { %7045 = vmatprep.mubr.bf16.mxu1 %v11500_v1  ;;  %7204 = vmatprep.mubr.bf16.mxu0 %v11500_v1 }
 0x4ad   : > { %7016 = vmatpush1.bf16.msra.mxu1 %v11208_v6  ;;  %7175 = vmatpush1.bf16.msra.mxu0 %v11211_v45  ;;  %v11303_v6 = vld [vmem:[%s14427_s6 + $0x4f4] ss:$8 sps:$4 sm:$0xff]   ;;  %v7232_v45 = vld [vmem:[#allocation3 + $0x6] sm:$0x1] }
 0x4ae   : > { %7017 = vmatprep.subr.bf16.mxu1 %v11216_v63  ;;  %7176 = vmatprep.subr.bf16.mxu0 %v11219_v8  ;;  %v7391_v63 = vld [vmem:[#allocation3 + $0x7] sm:$0x1]  ;;  %v11298_v8 = vld [vmem:[%s14427_s6 + $0x470] ss:$8 sps:$4 sm:$0xff]  }
 0x4b1   : > { %7018 = vmatpush1.bf16.msra.mxu1 %v11214_v51  ;;  %7177 = vmatpush1.bf16.msra.mxu0 %v11217_v55  ;;  %v11301_v51 = vld [vmem:[%s14427_s6 + $0x4f0] ss:$8 sps:$4 sm:$0xff]   ;;  %v7233_v55 = vpack.c.bf16 %v7232_v45, %v7232_v45  ;;  %v11387_v45 = vld [vmem:[%s14427_s6 + $0x594] ss:$8 sps:$4 sm:$0xff]  }
 0x4b2   : > { %7019 = vmatprep.subr.bf16.mxu1 %v11222_v31  ;;  %7178 = vmatprep.subr.bf16.mxu0 %v11225_v43  ;;  %v7392_v31 = vpack.c.bf16 %v7391_v63, %v7391_v63  ;;  %v11306_v43 = vld [vmem:[%s14427_s6 + $0x464] ss:$8 sps:$4 sm:$0xff]   ;;  %v11382_v63 = vld [vmem:[%s14427_s6 + $0x510] ss:$8 sps:$4 sm:$0xff]  }
 0x4b5   : > { %7020 = vmatpush1.bf16.msra.mxu1 %v11220_v40  ;;  %7179 = vmatpush1.bf16.msra.mxu0 %v11223_v29  ;;  %v11309_v40 = vld [vmem:[%s14427_s6 + $0x4e4] ss:$8 sps:$4 sm:$0xff]   ;;  %v11304_v29 = vld [vmem:[%s14427_s6 + $0x460] ss:$8 sps:$4 sm:$0xff]  }
 0x4b6   : > { %7021 = vmatprep.subr.bf16.mxu1 %v11228_v32  ;;  %7180 = vmatprep.subr.bf16.mxu0 %v11231_v26  ;;  %v11307_v32 = vld [vmem:[%s14427_s6 + $0x4e0] ss:$8 sps:$4 sm:$0xff]   ;;  %v11312_v26 = vld [vmem:[%s14427_s6 + $0x454] ss:$8 sps:$4 sm:$0xff]  }
 0x4b9   : > { %7022 = vmatpush1.bf16.msra.mxu1 %v11226_v58  ;;  %7181 = vmatpush1.bf16.msra.mxu0 %v11229_v48  ;;  %v11315_v58 = vld [vmem:[%s14427_s6 + $0x4d4] ss:$8 sps:$4 sm:$0xff]   ;;  %v11310_v48 = vld [vmem:[%s14427_s6 + $0x450] ss:$8 sps:$4 sm:$0xff]  }
 0x4ba   : > { %7023 = vmatprep.subr.bf16.mxu1 %v11234_v46  ;;  %7182 = vmatprep.subr.bf16.mxu0 %v11237_v38  ;;  %v11313_v46 = vld [vmem:[%s14427_s6 + $0x4d0] ss:$8 sps:$4 sm:$0xff]   ;;  %v11318_v38 = vld [vmem:[%s14427_s6 + $0x444] ss:$8 sps:$4 sm:$0xff]  }
 0x4bd   : > { %7024 = vmatpush1.bf16.msra.mxu1 %v11232_v41  ;;  %7183 = vmatpush1.bf16.msra.mxu0 %v11235_v36  ;;  %v11321_v41 = vld [vmem:[%s14427_s6 + $0x4c4] ss:$8 sps:$4 sm:$0xff]   ;;  %v11316_v36 = vld [vmem:[%s14427_s6 + $0x440] ss:$8 sps:$4 sm:$0xff]  }
 0x4be   : > { %7025 = vmatprep.subr.bf16.mxu1 %v11240_v49  ;;  %7184 = vmatprep.subr.bf16.mxu0 %v11243_v2  ;;  %v11319_v49 = vld [vmem:[%s14427_s6 + $0x4c0] ss:$8 sps:$4 sm:$0xff]   ;;  %v11324_v2 = vld [vmem:[%s14427_s6 + $0x434] ss:$8 sps:$4 sm:$0xff]  }
 0x4c1   : > { %7026 = vmatpush1.bf16.msra.mxu1 %v11238_v50  ;;  %7185 = vmatpush1.bf16.msra.mxu0 %v11241_v22  ;;  %v11327_v50 = vld [vmem:[%s14427_s6 + $0x4b4] ss:$8 sps:$4 sm:$0xff]   ;;  %v11322_v22 = vld [vmem:[%s14427_s6 + $0x430] ss:$8 sps:$4 sm:$0xff]  }
 0x4c2   : > { %7027 = vmatprep.subr.bf16.mxu1 %v11246_v24  ;;  %7186 = vmatprep.subr.bf16.mxu0 %v11249_v23  ;;  %v11325_v24 = vld [vmem:[%s14427_s6 + $0x4b0] ss:$8 sps:$4 sm:$0xff]   ;;  %v11330_v23 = vld [vmem:[%s14427_s6 + $0x424] ss:$8 sps:$4 sm:$0xff]  }
 0x4c5   : > { %7028 = vmatpush1.bf16.msra.mxu1 %v11244_v10  ;;  %7187 = vmatpush1.bf16.msra.mxu0 %v11247_v12  ;;  %v11333_v10 = vld [vmem:[%s14427_s6 + $0x4a4] ss:$8 sps:$4 sm:$0xff]   ;;  %v11328_v12 = vld [vmem:[%s14427_s6 + $0x420] ss:$8 sps:$4 sm:$0xff]  }
 0x4c6   : > { %7331 = vmatprep.subr.bf16.mxu1 %v11252_v44  ;;  %7490 = vmatprep.subr.bf16.mxu0 %v11255_v7  ;;  %v11331_v44 = vld [vmem:[%s14427_s6 + $0x4a0] ss:$8 sps:$4 sm:$0xff]   ;;  %v11336_v7 = vld [vmem:[%s14427_s6 + $0x414] ss:$8 sps:$4 sm:$0xff]  }
 0x4c8   : > { %7046 = vmatmul.mubr.bf16.vlgmr.msra.gmra.mxu1 %v6915_v3  ;;  %7205 = vmatmul.mubr.bf16.vlgmr.msra.gmra.mxu0 %v7074_v5  ;;  %v11345_v3 = vld [vmem:[%s14427_s6 + $0x484] ss:$8 sps:$4 sm:$0xff]   ;;  %v11340_v5 = vld [vmem:[%s14427_s6 + $0x400] ss:$8 sps:$4 sm:$0xff]  }
 0x4c9   : > { %7332 = vmatpush1.bf16.msra.mxu1 %v11250_v39  ;;  %7491 = vmatpush1.bf16.msra.mxu0 %v11253_v0  ;;  %v11337_v39 = vld [vmem:[%s14427_s6 + $0x490] ss:$8 sps:$4 sm:$0xff]   ;;  %v11342_v0 = vld [vmem:[%s14427_s6 + $0x404] ss:$8 sps:$4 sm:$0xff]  }
 0x4ca   : > { %7333 = vmatprep.subr.bf16.mxu1 %v11258_v53  ;;  %7492 = vmatprep.subr.bf16.mxu0 %v11261_v52  ;;  %v11343_v53 = vld [vmem:[%s14427_s6 + $0x480] ss:$8 sps:$4 sm:$0xff]   ;;  %v11348_v52 = vld [vmem:[%s14427_s6 + $0x574] ss:$8 sps:$4 sm:$0xff]  }
 0x4cb   : > { %7363 = vmatprep.mubr.bf16.mxu1 %v11500_v1  ;;  %7522 = vmatprep.mubr.bf16.mxu0 %v11500_v1 }
 0x4cd   : > { %7334 = vmatpush1.bf16.msra.mxu1 %v11256_v56  ;;  %7493 = vmatpush1.bf16.msra.mxu0 %v11259_v25  ;;  %v11351_v56 = vld [vmem:[%s14427_s6 + $0x5f4] ss:$8 sps:$4 sm:$0xff]   ;;  %v7550_v25 = vld [vmem:[#allocation3 + $0x8] sm:$0x1] }
 0x4ce   : > { %7335 = vmatprep.subr.bf16.mxu1 %v11264_v61  ;;  %7494 = vmatprep.subr.bf16.mxu0 %v11267_v34  ;;  %v7709_v61 = vld [vmem:[#allocation3 + $0x9] sm:$0x1]  ;;  %v11346_v34 = vld [vmem:[%s14427_s6 + $0x570] ss:$8 sps:$4 sm:$0xff]  }
 0x4d1   : > { %7336 = vmatpush1.bf16.msra.mxu1 %v11262_v54  ;;  %7495 = vmatpush1.bf16.msra.mxu0 %v11265_v37  ;;  %v11349_v54 = vld [vmem:[%s14427_s6 + $0x5f0] ss:$8 sps:$4 sm:$0xff]   ;;  %v7551_v37 = vpack.c.bf16 %v7550_v25, %v7550_v25  ;;  %v11435_v25 = vld [vmem:[%s14427_s6 + $0x694] ss:$8 sps:$4 sm:$0xff]  }
 0x4d2   : > { %7337 = vmatprep.subr.bf16.mxu1 %v11270_v30  ;;  %7496 = vmatprep.subr.bf16.mxu0 %v11273_v33  ;;  %v7710_v30 = vpack.c.bf16 %v7709_v61, %v7709_v61  ;;  %v11354_v33 = vld [vmem:[%s14427_s6 + $0x564] ss:$8 sps:$4 sm:$0xff]   ;;  %v11430_v61 = vld [vmem:[%s14427_s6 + $0x610] ss:$8 sps:$4 sm:$0xff]  }
 0x4d5   : > { %7338 = vmatpush1.bf16.msra.mxu1 %v11268_v9  ;;  %7497 = vmatpush1.bf16.msra.mxu0 %v11271_v16  ;;  %v11357_v9 = vld [vmem:[%s14427_s6 + $0x5e4] ss:$8 sps:$4 sm:$0xff]   ;;  %v11352_v16 = vld [vmem:[%s14427_s6 + $0x560] ss:$8 sps:$4 sm:$0xff]  }
 0x4d6   : > { %7339 = vmatprep.subr.bf16.mxu1 %v11276_v18  ;;  %7498 = vmatprep.subr.bf16.mxu0 %v11279_v13  ;;  %v11355_v18 = vld [vmem:[%s14427_s6 + $0x5e0] ss:$8 sps:$4 sm:$0xff]   ;;  %v11360_v13 = vld [vmem:[%s14427_s6 + $0x554] ss:$8 sps:$4 sm:$0xff]  }
 0x4d9   : > { %7340 = vmatpush1.bf16.msra.mxu1 %v11274_v15  ;;  %7499 = vmatpush1.bf16.msra.mxu0 %v11277_v17  ;;  %v11363_v15 = vld [vmem:[%s14427_s6 + $0x5d4] ss:$8 sps:$4 sm:$0xff]   ;;  %v11358_v17 = vld [vmem:[%s14427_s6 + $0x550] ss:$8 sps:$4 sm:$0xff]  }
 0x4da   : > { %7341 = vmatprep.subr.bf16.mxu1 %v11282_v19  ;;  %7500 = vmatprep.subr.bf16.mxu0 %v11285_v21  ;;  %v11361_v19 = vld [vmem:[%s14427_s6 + $0x5d0] ss:$8 sps:$4 sm:$0xff]   ;;  %v11366_v21 = vld [vmem:[%s14427_s6 + $0x544] ss:$8 sps:$4 sm:$0xff]  }
 0x4dd   : > { %7342 = vmatpush1.bf16.msra.mxu1 %v11280_v27  ;;  %7501 = vmatpush1.bf16.msra.mxu0 %v11283_v11  ;;  %v11369_v27 = vld [vmem:[%s14427_s6 + $0x5c4] ss:$8 sps:$4 sm:$0xff]   ;;  %v11364_v11 = vld [vmem:[%s14427_s6 + $0x540] ss:$8 sps:$4 sm:$0xff]  }
 0x4de   : > { %7343 = vmatprep.subr.bf16.mxu1 %v11288_v14  ;;  %7502 = vmatprep.subr.bf16.mxu0 %v11291_v62  ;;  %v11367_v14 = vld [vmem:[%s14427_s6 + $0x5c0] ss:$8 sps:$4 sm:$0xff]   ;;  %v11372_v62 = vld [vmem:[%s14427_s6 + $0x534] ss:$8 sps:$4 sm:$0xff]  }
 0x4e1   : > { %7344 = vmatpush1.bf16.msra.mxu1 %v11286_v4  ;;  %7503 = vmatpush1.bf16.msra.mxu0 %v11289_v60  ;;  %v11375_v4 = vld [vmem:[%s14427_s6 + $0x5b4] ss:$8 sps:$4 sm:$0xff]   ;;  %v11370_v60 = vld [vmem:[%s14427_s6 + $0x530] ss:$8 sps:$4 sm:$0xff]  }
 0x4e2   : > { %7345 = vmatprep.subr.bf16.mxu1 %v11294_v42  ;;  %7504 = vmatprep.subr.bf16.mxu0 %v11297_v47  ;;  %v11373_v42 = vld [vmem:[%s14427_s6 + $0x5b0] ss:$8 sps:$4 sm:$0xff]   ;;  %v11378_v47 = vld [vmem:[%s14427_s6 + $0x524] ss:$8 sps:$4 sm:$0xff]  }
 0x4e5   : > { %7346 = vmatpush1.bf16.msra.mxu1 %v11292_v35  ;;  %7505 = vmatpush1.bf16.msra.mxu0 %v11295_v20  ;;  %v11381_v35 = vld [vmem:[%s14427_s6 + $0x5a4] ss:$8 sps:$4 sm:$0xff]   ;;  %v11376_v20 = vld [vmem:[%s14427_s6 + $0x520] ss:$8 sps:$4 sm:$0xff]  }
 0x4e6   : > { %7649 = vmatprep.subr.bf16.mxu1 %v11300_v28  ;;  %7808 = vmatprep.subr.bf16.mxu0 %v11303_v6  ;;  %v11379_v28 = vld [vmem:[%s14427_s6 + $0x5a0] ss:$8 sps:$4 sm:$0xff]   ;;  %v11384_v6 = vld [vmem:[%s14427_s6 + $0x514] ss:$8 sps:$4 sm:$0xff]  }
 0x4e8   : > { %7364 = vmatmul.mubr.bf16.vlgmr.msra.gmra.mxu1 %v7233_v55  ;;  %7523 = vmatmul.mubr.bf16.vlgmr.msra.gmra.mxu0 %v7392_v31  ;;  %v11393_v55 = vld [vmem:[%s14427_s6 + $0x584] ss:$8 sps:$4 sm:$0xff]   ;;  %v11388_v31 = vld [vmem:[%s14427_s6 + $0x500] ss:$8 sps:$4 sm:$0xff]  }
 0x4e9   : > { %7650 = vmatpush1.bf16.msra.mxu1 %v11298_v8  ;;  %7809 = vmatpush1.bf16.msra.mxu0 %v11301_v51  ;;  %v11385_v8 = vld [vmem:[%s14427_s6 + $0x590] ss:$8 sps:$4 sm:$0xff]   ;;  %v11390_v51 = vld [vmem:[%s14427_s6 + $0x504] ss:$8 sps:$4 sm:$0xff]  }
 0x4ea   : > { %7651 = vmatprep.subr.bf16.mxu1 %v11306_v43  ;;  %7810 = vmatprep.subr.bf16.mxu0 %v11309_v40  ;;  %v11391_v43 = vld [vmem:[%s14427_s6 + $0x580] ss:$8 sps:$4 sm:$0xff]   ;;  %v11396_v40 = vld [vmem:[%s14427_s6 + $0x674] ss:$8 sps:$4 sm:$0xff]  }
 0x4eb   : > { %7681 = vmatprep.mubr.bf16.mxu1 %v11500_v1  ;;  %7840 = vmatprep.mubr.bf16.mxu0 %v11500_v1 }
 0x4ed   : > { %7652 = vmatpush1.bf16.msra.mxu1 %v11304_v29  ;;  %7811 = vmatpush1.bf16.msra.mxu0 %v11307_v32  ;;  %v11399_v29 = vld [vmem:[%s14427_s6 + $0x6f4] ss:$8 sps:$4 sm:$0xff]   ;;  %v7868_v32 = vld [vmem:[#allocation3 + $0xa] sm:$0x1] }
 0x4ee   : > { %7653 = vmatprep.subr.bf16.mxu1 %v11312_v26  ;;  %7812 = vmatprep.subr.bf16.mxu0 %v11315_v58  ;;  %v8027_v26 = vld [vmem:[#allocation3 + $0xb] sm:$0x1]  ;;  %v11394_v58 = vld [vmem:[%s14427_s6 + $0x670] ss:$8 sps:$4 sm:$0xff]  }
 0x4f1   : > { %7654 = vmatpush1.bf16.msra.mxu1 %v11310_v48  ;;  %7813 = vmatpush1.bf16.msra.mxu0 %v11313_v46  ;;  %v11397_v48 = vld [vmem:[%s14427_s6 + $0x6f0] ss:$8 sps:$4 sm:$0xff]   ;;  %v7869_v46 = vpack.c.bf16 %v7868_v32, %v7868_v32 }
 0x4f2   : > { %7655 = vmatprep.subr.bf16.mxu1 %v11318_v38  ;;  %7814 = vmatprep.subr.bf16.mxu0 %v11321_v41  ;;  %v8028_v38 = vpack.c.bf16 %v8027_v26, %v8027_v26  ;;  %v11402_v41 = vld [vmem:[%s14427_s6 + $0x664] ss:$8 sps:$4 sm:$0xff]   ;;  %v11454_v26 = vld [vmem:[%s14427_s6 + $0x750] ss:$8 sps:$4 sm:$0xff]  }
 0x4f5   : > { %7656 = vmatpush1.bf16.msra.mxu1 %v11316_v36  ;;  %7815 = vmatpush1.bf16.msra.mxu0 %v11319_v49  ;;  %v11405_v36 = vld [vmem:[%s14427_s6 + $0x6e4] ss:$8 sps:$4 sm:$0xff]   ;;  %v11400_v49 = vld [vmem:[%s14427_s6 + $0x660] ss:$8 sps:$4 sm:$0xff]  }
 0x4f6   : > { %7657 = vmatprep.subr.bf16.mxu1 %v11324_v2  ;;  %7816 = vmatprep.subr.bf16.mxu0 %v11327_v50  ;;  %v11403_v2 = vld [vmem:[%s14427_s6 + $0x6e0] ss:$8 sps:$4 sm:$0xff]   ;;  %v11408_v50 = vld [vmem:[%s14427_s6 + $0x654] ss:$8 sps:$4 sm:$0xff]  }
 0x4f9   : > { %7658 = vmatpush1.bf16.msra.mxu1 %v11322_v22  ;;  %7817 = vmatpush1.bf16.msra.mxu0 %v11325_v24  ;;  %v11411_v22 = vld [vmem:[%s14427_s6 + $0x6d4] ss:$8 sps:$4 sm:$0xff]   ;;  %v11406_v24 = vld [vmem:[%s14427_s6 + $0x650] ss:$8 sps:$4 sm:$0xff]  }
 0x4fa   : > { %7659 = vmatprep.subr.bf16.mxu1 %v11330_v23  ;;  %7818 = vmatprep.subr.bf16.mxu0 %v11333_v10  ;;  %v11409_v23 = vld [vmem:[%s14427_s6 + $0x6d0] ss:$8 sps:$4 sm:$0xff]   ;;  %v11414_v10 = vld [vmem:[%s14427_s6 + $0x644] ss:$8 sps:$4 sm:$0xff]  }
 0x4fd   : > { %7660 = vmatpush1.bf16.msra.mxu1 %v11328_v12  ;;  %7819 = vmatpush1.bf16.msra.mxu0 %v11331_v44  ;;  %v11417_v12 = vld [vmem:[%s14427_s6 + $0x6c4] ss:$8 sps:$4 sm:$0xff]   ;;  %v11412_v44 = vld [vmem:[%s14427_s6 + $0x640] ss:$8 sps:$4 sm:$0xff]  }
 0x4fe   : > { %7661 = vmatprep.subr.bf16.mxu1 %v11336_v7  ;;  %7820 = vmatprep.subr.bf16.mxu0 %v11339_v57  ;;  %v11415_v7 = vld [vmem:[%s14427_s6 + $0x6c0] ss:$8 sps:$4 sm:$0xff]   ;;  %v11420_v57 = vld [vmem:[%s14427_s6 + $0x634] ss:$8 sps:$4 sm:$0xff]  }
 0x501   : > { %7662 = vmatpush1.bf16.msra.mxu1 %v11334_v59  ;;  %7821 = vmatpush1.bf16.msra.mxu0 %v11337_v39  ;;  %v11423_v59 = vld [vmem:[%s14427_s6 + $0x6b4] ss:$8 sps:$4 sm:$0xff]   ;;  %v11418_v39 = vld [vmem:[%s14427_s6 + $0x630] ss:$8 sps:$4 sm:$0xff]  }
 0x502   : > { %7663 = vmatprep.subr.bf16.mxu1 %v11342_v0  ;;  %7822 = vmatprep.subr.bf16.mxu0 %v11345_v3  ;;  %v11421_v0 = vld [vmem:[%s14427_s6 + $0x6b0] ss:$8 sps:$4 sm:$0xff]   ;;  %v11426_v3 = vld [vmem:[%s14427_s6 + $0x624] ss:$8 sps:$4 sm:$0xff]  }
 0x505   : > { %7664 = vmatpush1.bf16.msra.mxu1 %v11340_v5  ;;  %7823 = vmatpush1.bf16.msra.mxu0 %v11343_v53  ;;  %v11429_v5 = vld [vmem:[%s14427_s6 + $0x6a4] ss:$8 sps:$4 sm:$0xff]   ;;  %v11424_v53 = vld [vmem:[%s14427_s6 + $0x620] ss:$8 sps:$4 sm:$0xff]  }
 0x506   : > { %7967 = vmatprep.subr.bf16.mxu1 %v11348_v52  ;;  %8126 = vmatprep.subr.bf16.mxu0 %v11351_v56  ;;  %v11427_v52 = vld [vmem:[%s14427_s6 + $0x6a0] ss:$8 sps:$4 sm:$0xff]   ;;  %v11432_v56 = vld [vmem:[%s14427_s6 + $0x614] ss:$8 sps:$4 sm:$0xff]  }
 0x508   : > { %7682 = vmatmul.mubr.bf16.vlgmr.msra.gmra.mxu1 %v7551_v37  ;;  %7841 = vmatmul.mubr.bf16.vlgmr.msra.gmra.mxu0 %v7710_v30  ;;  %v11441_v37 = vld [vmem:[%s14427_s6 + $0x684] ss:$8 sps:$4 sm:$0xff]   ;;  %v11436_v30 = vld [vmem:[%s14427_s6 + $0x600] ss:$8 sps:$4 sm:$0xff]  }
 0x509   : > { %7968 = vmatpush1.bf16.msra.mxu1 %v11346_v34  ;;  %8127 = vmatpush1.bf16.msra.mxu0 %v11349_v54  ;;  %v11433_v34 = vld [vmem:[%s14427_s6 + $0x690] ss:$8 sps:$4 sm:$0xff]   ;;  %v11438_v54 = vld [vmem:[%s14427_s6 + $0x604] ss:$8 sps:$4 sm:$0xff]  }
 0x50a   : > { %7969 = vmatprep.subr.bf16.mxu1 %v11354_v33  ;;  %8128 = vmatprep.subr.bf16.mxu0 %v11357_v9  ;;  %v11439_v33 = vld [vmem:[%s14427_s6 + $0x680] ss:$8 sps:$4 sm:$0xff]   ;;  %v11502_v9 = vmov 1966171168  }
 0x50b   : > { %7999 = vmatprep.mubr.bf16.mxu1 %v11500_v1  ;;  %8158 = vmatprep.mubr.bf16.mxu0 %v11500_v1 }
 0x50d   : > { %7970 = vmatpush1.bf16.msra.mxu1 %v11352_v16  ;;  %8129 = vmatpush1.bf16.msra.mxu0 %v11355_v18  ;;  %v6422_v16 = vunpack.c.l.s4 %v11502_v9  ;;  %v6424_v18 = vlaneseq }
 0x50e   : > { %7971 = vmatprep.subr.bf16.mxu1 %v11360_v13  ;;  %8130 = vmatprep.subr.bf16.mxu0 %v11363_v15  ;;  %v11444_v13 = vld [vmem:[%s14427_s6 + $0x774] ss:$8 sps:$4 sm:$0xff]  }
 0x50f   : > { %v11447_v15 = vld [vmem:[%s14427_s6 + $0x7f4] ss:$8 sps:$4 sm:$0xff]   ;;  %vm8825_vm7 = vcmp.lt.s32.totalorder %v6424_v18, 256 }
 0x511   : > { %7972 = vmatpush1.bf16.msra.mxu1 %v11358_v17  ;;  %8131 = vmatpush1.bf16.msra.mxu0 %v11361_v19  ;;  %v8186_v17 = vld [vmem:[#allocation3 + $0xc] sm:$0x1]  ;;  %v8345_v19 = vld [vmem:[#allocation3 + $0xd] sm:$0x1] }
 0x512   : > { %7973 = vmatprep.subr.bf16.mxu1 %v11366_v21  ;;  %8132 = vmatprep.subr.bf16.mxu0 %v11369_v27  ;;  %v11442_v21 = vld [vmem:[%s14427_s6 + $0x770] ss:$8 sps:$4 sm:$0xff]  }
 0x513   : > { %v11445_v27 = vld [vmem:[%s14427_s6 + $0x7f0] ss:$8 sps:$4 sm:$0xff]  }
 0x515   : > { %7974 = vmatpush1.bf16.msra.mxu1 %v11364_v11  ;;  %8133 = vmatpush1.bf16.msra.mxu0 %v11367_v14  ;;  %v6423_v11 = vunpack.c.0.s8 %v6422_v16  ;;  %v6425_v14 = vshrl.u32 %v6424_v18, 7 }
 0x516   : > { %7975 = vmatprep.subr.bf16.mxu1 %v11372_v62  ;;  %8134 = vmatprep.subr.bf16.mxu0 %v11375_v4  ;;  %v8187_v62 = vpack.c.bf16 %v8186_v17, %v8186_v17  ;;  %v8346_v4 = vpack.c.bf16 %v8345_v19, %v8345_v19 }
 0x519   : > { %7976 = vmatpush1.bf16.msra.mxu1 %v11370_v60  ;;  %8135 = vmatpush1.bf16.msra.mxu0 %v11373_v42  ;;  %v11450_v60 = vld [vmem:[%s14427_s6 + $0x764] ss:$8 sps:$4 sm:$0xff]  }
 0x51a   : > { %7977 = vmatprep.subr.bf16.mxu1 %v11378_v47  ;;  %8136 = vmatprep.subr.bf16.mxu0 %v11381_v35  ;;  %v11453_v42 = vld [vmem:[%s14427_s6 + $0x7e4] ss:$8 sps:$4 sm:$0xff]  }
 0x51d   : > { %7978 = vmatpush1.bf16.msra.mxu1 %v11376_v20  ;;  %8137 = vmatpush1.bf16.msra.mxu0 %v11379_v28  ;;  %v14296_v20 = vsub.s32 %v6423_v11, %v6425_v14  ;;  %v11448_v28 = vld [vmem:[%s14427_s6 + $0x760] ss:$8 sps:$4 sm:$0xff]  }
 0x51e   : > { %7979 = vmatprep.subr.bf16.mxu1 %v11384_v6  ;;  %8138 = vmatprep.subr.bf16.mxu0 %v11387_v45  ;;  %v11451_v6 = vld [vmem:[%s14427_s6 + $0x7e0] ss:$8 sps:$4 sm:$0xff]  }
 0x521   : > { %7980 = vmatpush1.bf16.msra.mxu1 %v11382_v63  ;;  %8139 = vmatpush1.bf16.msra.mxu0 %v11385_v8  ;;  %v11456_v8 = vld [vmem:[%s14427_s6 + $0x754] ss:$8 sps:$4 sm:$0xff]  }
 0x522   : > { %7981 = vmatprep.subr.bf16.mxu1 %v11390_v51  ;;  %8140 = vmatprep.subr.bf16.mxu0 %v11393_v55  ;;  %v11459_v51 = vld [vmem:[%s14427_s6 + $0x7d4] ss:$8 sps:$4 sm:$0xff]  }
 0x525   : > { %7982 = vmatpush1.bf16.msra.mxu1 %v11388_v31  ;;  %8141 = vmatpush1.bf16.msra.mxu0 %v11391_v43 }
 0x526   : > { %8285 = vmatprep.subr.bf16.mxu1 %v11396_v40  ;;  %8444 = vmatprep.subr.bf16.mxu0 %v11399_v29 }
 0x528   : > { %8000 = vmatmul.mubr.bf16.vlgmr.msra.gmra.mxu1 %v7869_v46  ;;  %8159 = vmatmul.mubr.bf16.vlgmr.msra.gmra.mxu0 %v8028_v38  ;;  %v11462_v38 = vld [vmem:[%s14427_s6 + $0x744] ss:$8 sps:$4 sm:$0xff]  }
 0x529   : > { %8286 = vmatpush1.bf16.msra.mxu1 %v11394_v58  ;;  %8445 = vmatpush1.bf16.msra.mxu0 %v11397_v48  ;;  %v11457_v58 = vld [vmem:[%s14427_s6 + $0x7d0] ss:$8 sps:$4 sm:$0xff]  }
 0x52a   : > { %8287 = vmatprep.subr.bf16.mxu1 %v11402_v41  ;;  %8446 = vmatprep.subr.bf16.mxu0 %v11405_v36  ;;  %v11465_v41 = vld [vmem:[%s14427_s6 + $0x7c4] ss:$8 sps:$4 sm:$0xff]  }
 0x52b   : > { %8317 = vmatprep.mubr.bf16.mxu1 %v11500_v1  ;;  %8476 = vmatprep.mubr.bf16.mxu0 %v11500_v1 }
 0x52d   : > { %8288 = vmatpush1.bf16.msra.mxu1 %v11400_v49  ;;  %8447 = vmatpush1.bf16.msra.mxu0 %v11403_v2 }
 0x52e   : > { %8289 = vmatprep.subr.bf16.mxu1 %v11408_v50  ;;  %8448 = vmatprep.subr.bf16.mxu0 %v11411_v22  ;;  %v11460_v50 = vld [vmem:[%s14427_s6 + $0x740] ss:$8 sps:$4 sm:$0xff]  }
 0x52f   : > { %v11463_v22 = vld [vmem:[%s14427_s6 + $0x7c0] ss:$8 sps:$4 sm:$0xff]  }
 0x531   : > { %8290 = vmatpush1.bf16.msra.mxu1 %v11406_v24  ;;  %8449 = vmatpush1.bf16.msra.mxu0 %v11409_v23  ;;  %v11468_v24 = vld [vmem:[%s14427_s6 + $0x734] ss:$8 sps:$4 sm:$0xff]  }
 0x532   : > { %8291 = vmatprep.subr.bf16.mxu1 %v11414_v10  ;;  %8450 = vmatprep.subr.bf16.mxu0 %v11417_v12  ;;  %v11471_v23 = vld [vmem:[%s14427_s6 + $0x7b4] ss:$8 sps:$4 sm:$0xff]   ;;  %v11466_v12 = vld [vmem:[%s14427_s6 + $0x730] ss:$8 sps:$4 sm:$0xff]  }
 0x535   : > { %8292 = vmatpush1.bf16.msra.mxu1 %v11412_v44  ;;  %8451 = vmatpush1.bf16.msra.mxu0 %v11415_v7  ;;  %v11469_v44 = vld [vmem:[%s14427_s6 + $0x7b0] ss:$8 sps:$4 sm:$0xff]   ;;  %v11474_v7 = vld [vmem:[%s14427_s6 + $0x724] ss:$8 sps:$4 sm:$0xff]  }
 0x536   : > { %8293 = vmatprep.subr.bf16.mxu1 %v11420_v57  ;;  %8452 = vmatprep.subr.bf16.mxu0 %v11423_v59  ;;  %v11477_v57 = vld [vmem:[%s14427_s6 + $0x7a4] ss:$8 sps:$4 sm:$0xff]   ;;  %v11472_v59 = vld [vmem:[%s14427_s6 + $0x720] ss:$8 sps:$4 sm:$0xff]  }
 0x539   : > { %8294 = vmatpush1.bf16.msra.mxu1 %v11418_v39  ;;  %8453 = vmatpush1.bf16.msra.mxu0 %v11421_v0  ;;  %v11475_v39 = vld [vmem:[%s14427_s6 + $0x7a0] ss:$8 sps:$4 sm:$0xff]   ;;  %v11480_v0 = vld [vmem:[%s14427_s6 + $0x714] ss:$8 sps:$4 sm:$0xff]  }
 0x53a   : > { %8295 = vmatprep.subr.bf16.mxu1 %v11426_v3  ;;  %8454 = vmatprep.subr.bf16.mxu0 %v11429_v5  ;;  %v11483_v3 = vld [vmem:[%s14427_s6 + $0x794] ss:$8 sps:$4 sm:$0xff]   ;;  %v11478_v5 = vld [vmem:[%s14427_s6 + $0x710] ss:$8 sps:$4 sm:$0xff]  }
 0x53d   : > { %8296 = vmatpush1.bf16.msra.mxu1 %v11424_v53  ;;  %8455 = vmatpush1.bf16.msra.mxu0 %v11427_v52  ;;  %v11481_v53 = vld [vmem:[%s14427_s6 + $0x790] ss:$8 sps:$4 sm:$0xff]   ;;  %v11486_v52 = vld [vmem:[%s14427_s6 + $0x704] ss:$8 sps:$4 sm:$0xff]  }
 0x53e   : > { %8297 = vmatprep.subr.bf16.mxu1 %v11432_v56  ;;  %8456 = vmatprep.subr.bf16.mxu0 %v11435_v25  ;;  %v11489_v56 = vld [vmem:[%s14427_s6 + $0x784] ss:$8 sps:$4 sm:$0xff]   ;;  %v11484_v25 = vld [vmem:[%s14427_s6 + $0x700] ss:$8 sps:$4 sm:$0xff]  }
 0x541   : > { %8298 = vmatpush1.bf16.msra.mxu1 %v11430_v61  ;;  %8457 = vmatpush1.bf16.msra.mxu0 %v11433_v34  ;;  %v11487_v61 = vld [vmem:[%s14427_s6 + $0x780] ss:$8 sps:$4 sm:$0xff]   ;;  %v8504_v34 = vld [vmem:[#allocation3 + $0xe] sm:$0x1] }
 0x542   : > { %8299 = vmatprep.subr.bf16.mxu1 %v11438_v54  ;;  %8458 = vmatprep.subr.bf16.mxu0 %v11441_v37  ;;  %v8663_v54 = vld [vmem:[#allocation3 + $0xf] sm:$0x1]  ;;  %v8505_v37 = vpack.c.bf16 %v8504_v34, %v8504_v34 }
 0x545   : > { %8300 = vmatpush1.bf16.msra.mxu1 %v11436_v30  ;;  %8459 = vmatpush1.bf16.msra.mxu0 %v11439_v33  ;;  %v8664_v30 = vpack.c.bf16 %v8663_v54, %v8663_v54 }
 0x546   : > { %8603 = vmatprep.subr.bf16.mxu1 %v11444_v13  ;;  %8762 = vmatprep.subr.bf16.mxu0 %v11447_v15 }
 0x548   : > { %8318 = vmatmul.mubr.bf16.vlgmr.msra.gmra.mxu1 %v8187_v62  ;;  %8477 = vmatmul.mubr.bf16.vlgmr.msra.gmra.mxu0 %v8346_v4  ;;  %v6411_v47 = vpop.f32.mrf.mxu1  ;;  %v6570_v35 = vpop.f32.mrf.mxu0 }
 0x549   : > { %8604 = vmatpush1.bf16.msra.mxu1 %v11442_v21  ;;  %8763 = vmatpush1.bf16.msra.mxu0 %v11445_v27 }
 0x54a   : > { %v6413_v45 = vpop.f32.mrf.mxu1  ;;  %v6572_v63 = vpop.f32.mrf.mxu0  ;;  %8605 = vmatprep.subr.bf16.mxu1 %v11450_v60  ;;  %8764 = vmatprep.subr.bf16.mxu0 %v11453_v42 }
 0x54b   : > { %v6420_v55 = vcombine.low %v6411_v47, %v6413_v45  ;;  %v6579_v31 = vcombine.low %v6570_v35, %v6572_v63  ;;  %8635 = vmatprep.mubr.bf16.mxu1 %v11500_v1  ;;  %8794 = vmatprep.mubr.bf16.mxu0 %v11500_v1  ;;  %v6278_v1 = vld [vmem:[%s14428_s7] sm:$0x3] }
 0x54c   : > { %v6415_v43 = vpop.f32.mrf.mxu1  ;;  %v6574_v40 = vpop.f32.mrf.mxu0 }
 0x54d   : > { %v6427_v29 = vrot.slane %v6420_v55, %v14296_v20  ;;  %v6586_v32 = vrot.slane %v6579_v31, %v14296_v20  ;;  %8606 = vmatpush1.bf16.msra.mxu1 %v11448_v28  ;;  %8765 = vmatpush1.bf16.msra.mxu0 %v11451_v6 }
 0x54e   : > { %v6416_v48 = vpop.f32.mrf.mxu1  ;;  %v6575_v46 = vpop.f32.mrf.mxu0  ;;  %8607 = vmatprep.subr.bf16.mxu1 %v11456_v8  ;;  %8766 = vmatprep.subr.bf16.mxu0 %v11459_v51 }
 0x54f   : > { %v6434_v36 = vrot.slane %v6427_v29, %v14296_v20  ;;  %v6593_v2 = vrot.slane %v6586_v32, %v14296_v20 }
 0x551   : > { %v6436_v49 = vadd.f32 %v6434_v36, %v6278_v1  ;;  %8608 = vmatpush1.bf16.msra.mxu1 %v11454_v26  ;;  %8767 = vmatpush1.bf16.msra.mxu0 %v11457_v58 }
 0x552   : > { %8609 = vmatprep.subr.bf16.mxu1 %v11462_v38  ;;  %8768 = vmatprep.subr.bf16.mxu0 %v11465_v41 }
 0x553   : > { %v6595_v10 = vadd.f32 %v6593_v2, %v6436_v49 }
 0x555   : > { %8610 = vmatpush1.bf16.msra.mxu1 %v11460_v50  ;;  %8769 = vmatpush1.bf16.msra.mxu0 %v11463_v22 }
 0x556   : > { %8611 = vmatprep.subr.bf16.mxu1 %v11468_v24  ;;  %8770 = vmatprep.subr.bf16.mxu0 %v11471_v23 }
 0x559   : > { %8612 = vmatpush1.bf16.msra.mxu1 %v11466_v12  ;;  %8771 = vmatpush1.bf16.msra.mxu0 %v11469_v44 }
 0x55a   : > { %8613 = vmatprep.subr.bf16.mxu1 %v11474_v7  ;;  %8772 = vmatprep.subr.bf16.mxu0 %v11477_v57 }
 0x55d   : > { %8614 = vmatpush1.bf16.msra.mxu1 %v11472_v59  ;;  %8773 = vmatpush1.bf16.msra.mxu0 %v11475_v39 }
 0x55e   : > { %8615 = vmatprep.subr.bf16.mxu1 %v11480_v0  ;;  %8774 = vmatprep.subr.bf16.mxu0 %v11483_v3 }
 0x561   : > { %8616 = vmatpush1.bf16.msra.mxu1 %v11478_v5  ;;  %8775 = vmatpush1.bf16.msra.mxu0 %v11481_v53 }
 0x562   : > { %8617 = vmatprep.subr.bf16.mxu1 %v11486_v52  ;;  %8776 = vmatprep.subr.bf16.mxu0 %v11489_v56 }
 0x565   : > { %8618 = vmatpush1.bf16.msra.mxu1 %v11484_v25  ;;  %8777 = vmatpush1.bf16.msra.mxu0 %v11487_v61 }
 0x568   : > { %v6729_v33 = vpop.f32.mrf.mxu1  ;;  %v6888_v9 = vpop.f32.mrf.mxu0  ;;  %8636 = vmatmul.mubr.bf16.vlgmr.msra.gmra.mxu1 %v8505_v37  ;;  %8795 = vmatmul.mubr.bf16.vlgmr.msra.gmra.mxu0 %v8664_v30 }
 0x56a   : > { %v6731_v16 = vpop.f32.mrf.mxu1  ;;  %v6890_v13 = vpop.f32.mrf.mxu0 }
 0x56b   : > { %v6738_v15 = vcombine.low %v6729_v33, %v6731_v16  ;;  %v6897_v17 = vcombine.low %v6888_v9, %v6890_v13 }
 0x56c   : > { %v6733_v19 = vpop.f32.mrf.mxu1  ;;  %v6892_v21 = vpop.f32.mrf.mxu0 }
 0x56d   : > { %v6745_v27 = vrot.slane %v6738_v15, %v14296_v20  ;;  %v6904_v11 = vrot.slane %v6897_v17, %v14296_v20 }
 0x56e   : > { %v6734_v14 = vpop.f32.mrf.mxu1  ;;  %v6893_v62 = vpop.f32.mrf.mxu0 }
 0x56f   : > { %v6752_v4 = vrot.slane %v6745_v27, %v14296_v20  ;;  %v6911_v42 = vrot.slane %v6904_v11, %v14296_v20 }
 0x571   : > { %v6754_v60 = vadd.f32 %v6752_v4, %v6595_v10 }
 0x573   : > { %v6913_v47 = vadd.f32 %v6911_v42, %v6754_v60 }
 0x588   : > { %v7047_v35 = vpop.f32.mrf.mxu1  ;;  %v7206_v28 = vpop.f32.mrf.mxu0 }
 0x58a   : > { %v7049_v6 = vpop.f32.mrf.mxu1  ;;  %v7208_v45 = vpop.f32.mrf.mxu0 }
 0x58b   : > { %v7056_v63 = vcombine.low %v7047_v35, %v7049_v6  ;;  %v7215_v8 = vcombine.low %v7206_v28, %v7208_v45 }
 0x58c   : > { %v7051_v51 = vpop.f32.mrf.mxu1  ;;  %v7210_v55 = vpop.f32.mrf.mxu0 }
 0x58d   : > { %v7063_v31 = vrot.slane %v7056_v63, %v14296_v20  ;;  %v7222_v43 = vrot.slane %v7215_v8, %v14296_v20 }
 0x58e   : > { %v7052_v40 = vpop.f32.mrf.mxu1  ;;  %v7211_v29 = vpop.f32.mrf.mxu0 }
 0x58f   : > { %v7070_v32 = vrot.slane %v7063_v31, %v14296_v20  ;;  %v7229_v58 = vrot.slane %v7222_v43, %v14296_v20 }
 0x591   : > { %v7072_v26 = vadd.f32 %v7070_v32, %v6913_v47 }
 0x593   : > { %v7231_v1 = vadd.f32 %v7229_v58, %v7072_v26 }
 0x5a8   : > { %v7365_v48 = vpop.f32.mrf.mxu1  ;;  %v7524_v46 = vpop.f32.mrf.mxu0 }
 0x5aa   : > { %v7367_v38 = vpop.f32.mrf.mxu1  ;;  %v7526_v41 = vpop.f32.mrf.mxu0 }
 0x5ab   : > { %v7374_v36 = vcombine.low %v7365_v48, %v7367_v38  ;;  %v7533_v49 = vcombine.low %v7524_v46, %v7526_v41 }
 0x5ac   : > { %v7369_v2 = vpop.f32.mrf.mxu1  ;;  %v7528_v50 = vpop.f32.mrf.mxu0 }
 0x5ad   : > { %v7381_v22 = vrot.slane %v7374_v36, %v14296_v20  ;;  %v7540_v24 = vrot.slane %v7533_v49, %v14296_v20 }
 0x5ae   : > { %v7370_v23 = vpop.f32.mrf.mxu1  ;;  %v7529_v10 = vpop.f32.mrf.mxu0 }
 0x5af   : > { %v7388_v12 = vrot.slane %v7381_v22, %v14296_v20  ;;  %v7547_v7 = vrot.slane %v7540_v24, %v14296_v20 }
 0x5b1   : > { %v7390_v44 = vadd.f32 %v7388_v12, %v7231_v1 }
 0x5b3   : > { %v7549_v57 = vadd.f32 %v7547_v7, %v7390_v44 }
 0x5c8   : > { %v7683_v59 = vpop.f32.mrf.mxu1  ;;  %v7842_v39 = vpop.f32.mrf.mxu0 }
 0x5ca   : > { %v7685_v0 = vpop.f32.mrf.mxu1  ;;  %v7844_v3 = vpop.f32.mrf.mxu0 }
 0x5cb   : > { %v7692_v5 = vcombine.low %v7683_v59, %v7685_v0  ;;  %v7851_v53 = vcombine.low %v7842_v39, %v7844_v3 }
 0x5cc   : > { %v7687_v52 = vpop.f32.mrf.mxu1  ;;  %v7846_v56 = vpop.f32.mrf.mxu0 }
 0x5cd   : > { %v7699_v25 = vrot.slane %v7692_v5, %v14296_v20  ;;  %v7858_v61 = vrot.slane %v7851_v53, %v14296_v20 }
 0x5ce   : > { %v7688_v34 = vpop.f32.mrf.mxu1  ;;  %v7847_v54 = vpop.f32.mrf.mxu0 }
 0x5cf   : > { %v7706_v37 = vrot.slane %v7699_v25, %v14296_v20  ;;  %v7865_v33 = vrot.slane %v7858_v61, %v14296_v20 }
 0x5d1   : > { %v7708_v30 = vadd.f32 %v7706_v37, %v7549_v57 }
 0x5d3   : > { %v7867_v9 = vadd.f32 %v7865_v33, %v7708_v30 }
 0x5e8   : > { %v8001_v16 = vpop.f32.mrf.mxu1  ;;  %v8160_v13 = vpop.f32.mrf.mxu0 }
 0x5ea   : > { %v8003_v15 = vpop.f32.mrf.mxu1  ;;  %v8162_v17 = vpop.f32.mrf.mxu0 }
 0x5eb   : > { %v8010_v6 = vcombine.low %v8001_v16, %v8003_v15  ;;  %v8169_v63 = vcombine.low %v8160_v13, %v8162_v17 }
 0x5ec   : > { %v8005_v19 = vpop.f32.mrf.mxu1  ;;  %v8164_v21 = vpop.f32.mrf.mxu0 }
 0x5ed   : > { %v8017_v45 = vrot.slane %v8010_v6, %v14296_v20  ;;  %v8176_v55 = vrot.slane %v8169_v63, %v14296_v20 }
 0x5ee   : > { %v8006_v27 = vpop.f32.mrf.mxu1  ;;  %v8165_v11 = vpop.f32.mrf.mxu0 }
 0x5ef   : > { %v8024_v51 = vrot.slane %v8017_v45, %v14296_v20  ;;  %v8183_v29 = vrot.slane %v8176_v55, %v14296_v20 }
 0x5f1   : > { %v8026_v43 = vadd.f32 %v8024_v51, %v7867_v9 }
 0x5f3   : > { %v8185_v1 = vadd.f32 %v8183_v29, %v8026_v43 }
 0x608   : > { %v8319_v14 = vpop.f32.mrf.mxu1  ;;  %v8478_v62 = vpop.f32.mrf.mxu0 }
 0x60a   : > { %v8321_v4 = vpop.f32.mrf.mxu1  ;;  %v8480_v60 = vpop.f32.mrf.mxu0 }
 0x60b   : > { %v8328_v8 = vcombine.low %v8319_v14, %v8321_v4  ;;  %v8487_v40 = vcombine.low %v8478_v62, %v8480_v60 }
 0x60c   : > { %v8323_v42 = vpop.f32.mrf.mxu1  ;;  %v8482_v47 = vpop.f32.mrf.mxu0 }
 0x60d   : > { %v8335_v31 = vrot.slane %v8328_v8, %v14296_v20  ;;  %v8494_v48 = vrot.slane %v8487_v40, %v14296_v20 }
 0x60e   : > { %v8324_v35 = vpop.f32.mrf.mxu1  ;;  %v8483_v28 = vpop.f32.mrf.mxu0 }
 0x60f   : > { %v8342_v32 = vrot.slane %v8335_v31, %v14296_v20  ;;  %v8501_v22 = vrot.slane %v8494_v48, %v14296_v20 }
 0x611   : > { %v8344_v41 = vadd.f32 %v8342_v32, %v8185_v1 }
 0x613   : > { %v8503_v44 = vadd.f32 %v8501_v22, %v8344_v41 }
 0x628   : > { %v8637_v26 = vpop.f32.mrf.mxu1  ;;  %v8796_v58 = vpop.f32.mrf.mxu0 }
 0x62a   : > { %v8639_v46 = vpop.f32.mrf.mxu1  ;;  %v8798_v38 = vpop.f32.mrf.mxu0 }
 0x62b   : > { %v8646_v36 = vcombine.low %v8637_v26, %v8639_v46  ;;  %v8805_v49 = vcombine.low %v8796_v58, %v8798_v38 }
 0x62c   : > { %v8641_v2 = vpop.f32.mrf.mxu1  ;;  %v8800_v50 = vpop.f32.mrf.mxu0 }
 0x62d   : > { %v8653_v24 = vrot.slane %v8646_v36, %v14296_v20  ;;  %v8812_v23 = vrot.slane %v8805_v49, %v14296_v20 }
 0x62e   : > { %v8642_v10 = vpop.f32.mrf.mxu1  ;;  %v8801_v12 = vpop.f32.mrf.mxu0 }
 0x62f   : > { %v8660_v7 = vrot.slane %v8653_v24, %v14296_v20  ;;  %v8819_v59 = vrot.slane %v8812_v23, %v14296_v20 }
 0x631   : > { %v8662_v57 = vadd.f32 %v8660_v7, %v8503_v44 }
 0x633   : > { %v8821_v39 = vadd.f32 %v8819_v59, %v8662_v57 }
 0x635   : > { %v8822_v0 = vmax.f32 %v8821_v39, 0.0 }
 0x637   : > { %8827 = vst.msk [vmem:[%s303_s14] sm:$0x3] %vm8825_vm7, %v8822_v0 }
 0x638 PF: > { %s18_s27 = sadd.s32 1, %s11496_s27  }
 0x639   : > { %p15_p4 = scmp.ge.s32.totalorder %s18_s27, 4  }
 0x63b   :  { %17 = sbr.rel (!%p15_p4) target bundleno = 1 (0x1), region = 121 }

</bundles_post_ra>
